<compile_context>
chip_gen: v5e
topology: v5e:2x2
jax: 0.10.0
libtpu: 0.0.40
codegen_flags: <defaults>
</compile_context>

<pallas_src>
import functools
from typing import NamedTuple

import jax
import jax.numpy as jnp
from jax.experimental import pallas as pl
from jax.experimental.pallas import tpu as pltpu

OUT_SIZE = 2
HIDDEN = 128
FC_BLOCK_K = 8192                            # fc1 K tile: 8192*128 bf16 = 2 MiB / buffer
_M2_ALIGN = max(128, FC_BLOCK_K // 16)       # 512 -> Kp = 16*M2p is a multiple of FC_BLOCK_K
_VMEM_LIMIT = 32 * 1024 * 1024               # scoped-VMEM cap that fits v5e/v6e/v7x


def conv2d_size_out(size, kernel_size, stride):
    return (size - (kernel_size - 1) - 1) // stride + 1


def _round_up(x, m):
    return (x + m - 1) // m * m


class _Dims(NamedTuple):
    H: int
    W: int
    Hh: int
    Wh: int
    OH1: int
    OW1: int
    OH2: int
    OW2: int
    M1v: int   # Hh*Wh  : conv1 virtual (full-width) grid size
    M2v: int   # OH2*Wh : conv2 virtual (full-width) grid size
    M2p: int   # M2v rounded up -> conv2 output lane length (per channel)
    M1L: int   # y1 flat length kept in VMEM (covers max conv2 tap shift)
    P1: int    # parity-plane flat length (covers max conv1 tap shift)
    Kp: int    # 16*M2p : fc1 input length (multiple of FC_BLOCK_K)


def _derive_dims(H, W):
    assert H % 2 == 0 and W % 2 == 0, "stride-2 parity split needs even H, W"
    Hh, Wh = H // 2, W // 2
    OH1, OW1 = conv2d_size_out(H, 4, 2), conv2d_size_out(W, 4, 2)      # = Hh-1, Wh-1
    OH2, OW2 = conv2d_size_out(OH1, 3, 1), conv2d_size_out(OW1, 3, 1)
    assert OH2 >= 1 and OW2 >= 1, "observation too small"
    M1v = Hh * Wh
    M2v = OH2 * Wh
    M2p = _round_up(M2v, _M2_ALIGN)
    M1L = _round_up(M2p + 2 * Wh + 2, 128)
    P1 = _round_up(M1L + Wh + 1, 128)
    return _Dims(H, W, Hh, Wh, OH1, OW1, OH2, OW2, M1v, M2v, M2p, M1L, P1, 16 * M2p)


# ----------------------------- Pallas kernels ------------------------------

def _conv_stage_kernel(planes_ref, w1_ref, w2_ref, o_ref, p1_ref, y1_ref, p2_ref,
                       *, Wh, M1L, M2p):
    """Fused conv1(4x4,s2)+sigmoid -> conv2(3x3,s1)+sigmoid, all VMEM-resident.

    Feature maps are kept flattened over a full-width (Wh columns) virtual grid so
    every im2col tap is a pure lane shift; the invalid columns are garbage-but-
    finite and are nulled later by exactly-zero rows in the re-laid-out fc1 weights.
    """
    # conv1 im2col: tap (kh,kw) of channel ci is a contiguous lane slice of parity
    # plane (kh%2, kw%2) shifted by (kh//2)*Wh + kw//2.
    for kh in range(4):
        for kw in range(4):
            t = kh * 4 + kw
            off = (kh // 2) * Wh + (kw // 2)
            p1_ref[pl.ds(3 * t, 3), :] = planes_ref[kh % 2, kw % 2, :,
                                                    pl.ds(off, M1L)]
    a1 = jnp.dot(w1_ref[...], p1_ref[...], preferred_element_type=jnp.float32)
    y1_ref[...] = jax.nn.sigmoid(a1).astype(y1_ref.dtype)          # (8, M1L) bf16

    # conv2 im2col: tap (kh,kw) is y1 shifted by kh*Wh + kw (stride 1).
    for kh in range(3):
        for kw in range(3):
            t = kh * 3 + kw
            p2_ref[pl.ds(8 * t, 8), :] = y1_ref[:, pl.ds(kh * Wh + kw, M2p)]
    a2 = jnp.dot(w2_ref[...], p2_ref[...], preferred_element_type=jnp.float32)
    o_ref[...] = jax.nn.sigmoid(a2).astype(o_ref.dtype)            # (16, M2p) bf16


def _fc_head_kernel(flat_ref, w1_ref, w2_ref, act_ref, logits_ref, acc_ref, *, tk):
    """K-tiled fc1 (+ReLU) into a f32 VMEM accumulator; fc2 + argmax at finalize."""
    k = pl.program_id(0)

    @pl.when(k == 0)
    def _init():
        acc_ref[...] = jnp.zeros_like(acc_ref)

    start = pl.multiple_of(k * tk, 128)
    f = flat_ref[:, pl.ds(start, tk)]                  # (1, tk), VMEM-resident slice
    acc_ref[...] += jnp.dot(f, w1_ref[...], preferred_element_type=jnp.float32)

    @pl.when(k == pl.num_programs(0) - 1)
    def _finalize():
        h = jnp.maximum(acc_ref[...], 0.0)                             # ReLU, f32
        logits = jnp.dot(h, w2_ref[...], preferred_element_type=jnp.float32)
        logits_ref[...] = logits                                       # (1, OUT_SIZE)
        # argmax over logits (== argmax over softmax), first-max tie-break.
        idx = jax.lax.broadcasted_iota(jnp.int32, logits.shape, 1)
        gmax = jnp.max(logits, axis=-1, keepdims=True)
        cand = jnp.where(logits >= gmax, idx, jnp.int32(logits.shape[-1]))
        act_ref[...] = jnp.min(cand, axis=-1, keepdims=True)


# ----------------------------- kernel wrappers ------------------------------

def conv_stage(planes, conv1_mat, conv2_mat, d):
    """One fused pallas_call for conv1+sigmoid+conv2+sigmoid (im2col built in VMEM)."""
    flops = 2 * 8 * 48 * d.M1L + 2 * 16 * 72 * d.M2p
    trans = 8 * d.M1L + 16 * d.M2p
    bytes_acc = 2 * (planes.size + conv1_mat.size + conv2_mat.size + 16 * d.M2p)
    return pl.pallas_call(
        functools.partial(_conv_stage_kernel, Wh=d.Wh, M1L=d.M1L, M2p=d.M2p),
        out_shape=jax.ShapeDtypeStruct((16, d.M2p), jnp.bfloat16),
        grid_spec=pltpu.PrefetchScalarGridSpec(
            num_scalar_prefetch=0,
            grid=(1,),
            in_specs=[pl.BlockSpec((2, 2, 3, d.P1), lambda i: (0, 0, 0, 0)),
                      pl.BlockSpec((8, 48), lambda i: (0, 0)),
                      pl.BlockSpec((16, 72), lambda i: (0, 0))],
            out_specs=pl.BlockSpec((16, d.M2p), lambda i: (0, 0)),
            scratch_shapes=[pltpu.VMEM((48, d.M1L), jnp.bfloat16),    # conv1 patches
                            pltpu.VMEM((8, d.M1L), jnp.bfloat16),     # y1 (post-sigmoid)
                            pltpu.VMEM((72, d.M2p), jnp.bfloat16)]),  # conv2 patches
        compiler_params=pltpu.CompilerParams(
            dimension_semantics=("arbitrary",),
            vmem_limit_bytes=_VMEM_LIMIT),
        cost_estimate=pl.CostEstimate(flops=flops, transcendentals=trans,
                                      bytes_accessed=bytes_acc),
    )(planes, conv1_mat, conv2_mat)


def fc_head(flat, fc1_wT, fc2_wT, *, block_k=FC_BLOCK_K):
    """Fused Linear(Kp->128, no bias)+ReLU -> Linear(128->2, no bias) -> argmax."""
    B, Kp = flat.shape
    assert B == 1
    assert fc1_wT.shape == (Kp, HIDDEN) and fc2_wT.shape == (HIDDEN, OUT_SIZE)
    tk = min(block_k, Kp)
    # Kp = 16*M2p is a multiple of FC_BLOCK_K by construction (see _derive_dims),
    # so the K stream divides evenly without any runtime padding.
    assert Kp % tk == 0
    n_k = Kp // tk

    w1_kwargs = {"pipeline_mode": pl.Buffered(3)} if n_k >= 3 else {}
    w1_spec = pl.BlockSpec((tk, HIDDEN), lambda k: (k, 0), **w1_kwargs)

    flops = 2 * Kp * HIDDEN + 2 * HIDDEN * OUT_SIZE
    bytes_acc = 2 * Kp + 2 * Kp * HIDDEN + 4 * HIDDEN * OUT_SIZE + 4 + 4 * OUT_SIZE
    act, logits = pl.pallas_call(
        functools.partial(_fc_head_kernel, tk=tk),
        out_shape=(jax.ShapeDtypeStruct((1, 1), jnp.int32),
                   jax.ShapeDtypeStruct((1, OUT_SIZE), jnp.float32)),
        grid_spec=pltpu.PrefetchScalarGridSpec(
            num_scalar_prefetch=0,
            grid=(n_k,),
            in_specs=[pl.BlockSpec((1, Kp), lambda k: (0, 0)),   # flat: resident in VMEM
                      w1_spec,
                      pl.BlockSpec((HIDDEN, OUT_SIZE), lambda k: (0, 0))],
            out_specs=[pl.BlockSpec((1, 1), lambda k: (0, 0)),
                       pl.BlockSpec((1, OUT_SIZE), lambda k: (0, 0))],
            scratch_shapes=[pltpu.VMEM((1, HIDDEN), jnp.float32)]),
        compiler_params=pltpu.CompilerParams(
            dimension_semantics=("arbitrary",),                  # K is a reduction axis
            vmem_limit_bytes=_VMEM_LIMIT),
        cost_estimate=pl.CostEstimate(flops=flops, transcendentals=0,
                                      bytes_accessed=bytes_acc),
    )(flat, fc1_wT, fc2_wT)
    return act, logits


# ------------------------------- JAX glue ----------------------------------

def _parity_planes(x, d):
    """x: (3,H,W) -> (2,2,3,P1) with planes[pr,pc,c, i*Wh+j] = x[c, 2i+pr, 2j+pc].

    Tiny XLA reshuffle of the input (~input size); it turns every stride-2 conv1
    tap into a pure lane shift inside the kernel.  Zero-padded to P1 lanes.
    """
    C = x.shape[0]
    p = x.reshape(C, d.Hh, 2, d.Wh, 2).transpose(2, 4, 0, 1, 3)
    p = p.reshape(2, 2, C, d.M1v)
    return jnp.pad(p, ((0, 0), (0, 0), (0, 0), (0, d.P1 - d.M1v)))


def bird_rgb_forward(obs, params):
    assert obs.shape[0] == 1, "batch-1 inference, like the original module"
    C, H, W = obs.shape[1:]
    assert C == 3
    d = _derive_dims(H, W)
    x = obs[0].astype(jnp.bfloat16)

    planes = _parity_planes(x, d)
    y2 = conv_stage(planes, params["conv1_mat"], params["conv2_mat"], d)  # (16, M2p)

    # nn.Flatten is a free, contiguous reshape: fc1 rows were re-laid-out at init
    # to match the kernel's padded (16, M2p) conv2 layout (pad rows are zero).
    flat = y2.reshape(1, d.Kp)

    act, logits = fc_head(flat, params["fc1_wT"], params["fc2_wT"])
    return act[0, 0], logits


def init_params(key, H, W):
    """Kernel-ready parameter layouts (+ raw f32 weights for the pure-JAX check)."""
    d = _derive_dims(H, W)
    flat_dim = 16 * d.OH2 * d.OW2                  # same formula as the PyTorch module
    k1, k2, k3, k4 = jax.random.split(key, 4)

    def u(k, shape, fan_in):
        bound = 1.0 / jnp.sqrt(fan_in)
        return jax.random.uniform(k, shape, jnp.float32, -bound, bound)

    conv1_w = u(k1, (8, 3, 4, 4), 3 * 4 * 4)
    conv2_w = u(k2, (16, 8, 3, 3), 8 * 3 * 3)
    fc1_w = u(k3, (HIDDEN, flat_dim), flat_dim)    # torch Linear layout (out, in)
    fc2_w = u(k4, (OUT_SIZE, HIDDEN), HIDDEN)

    # Conv weights as (Cout, K) with K ordered (kh, kw, ci) to match the in-kernel
    # patch row order.
    conv1_mat = conv1_w.transpose(0, 2, 3, 1).reshape(8, 48).astype(jnp.bfloat16)
    conv2_mat = conv2_w.transpose(0, 2, 3, 1).reshape(16, 72).astype(jnp.bfloat16)

    # fc1 rows re-laid-out for the kernel's (16, M2p) conv2 output: kernel flat
    # index c*M2p + oh2*Wh + ow2  <-  torch column c*OH2*OW2 + oh2*OW2 + ow2, with
    # exactly-zero rows at all garbage/pad columns (preserves the flatten fusion).
    wt = fc1_w.T.reshape(16, d.OH2, d.OW2, HIDDEN)
    wt = jnp.pad(wt, ((0, 0), (0, 0), (0, d.Wh - d.OW2), (0, 0)))
    wt = wt.reshape(16, d.M2v, HIDDEN)
    wt = jnp.pad(wt, ((0, 0), (0, d.M2p - d.M2v), (0, 0)))
    fc1_wT = wt.reshape(d.Kp, HIDDEN).astype(jnp.bfloat16)

    params = {
        "conv1_mat": conv1_mat,
        "conv2_mat": conv2_mat,
        "fc1_wT": fc1_wT,
        "fc2_wT": fc2_w.T.astype(jnp.float32),     # tiny head kept in f32
    }
    raw = {"conv1_w": conv1_w, "conv2_w": conv2_w, "fc1_w": fc1_w, "fc2_w": fc2_w}
    return params, raw


def reference_logits(obs, raw):
    """Pure-JAX (XLA) reference of the same bf16-weight forward, for a sanity check."""
    f32 = jnp.float32
    dn = ("NCHW", "OIHW", "NCHW")
    x = obs.astype(jnp.bfloat16).astype(f32)
    w1 = raw["conv1_w"].astype(jnp.bfloat16).astype(f32)
    w2 = raw["conv2_w"].astype(jnp.bfloat16).astype(f32)
    y1 = jax.nn.sigmoid(jax.lax.conv_general_dilated(x, w1, (2, 2), "VALID",
                                                     dimension_numbers=dn))
    y2 = jax.nn.sigmoid(jax.lax.conv_general_dilated(y1, w2, (1, 1), "VALID",
                                                     dimension_numbers=dn))
    flat = y2.reshape(1, -1)
    w1f = raw["fc1_w"].astype(jnp.bfloat16).astype(f32)
    h = jnp.maximum(flat @ w1f.T, 0.0)
    return h @ raw["fc2_w"].astype(f32).T


if __name__ == "__main__":
    H, W = 24, 32                 # small stand-in for the module's 288x512 observation
    key = jax.random.PRNGKey(0)
    k_obs, k_par = jax.random.split(key)
    obs = jax.random.uniform(k_obs, (1, 3, H, W), jnp.float32)     # NCHW, batch=1
    params, raw = init_params(k_par, H, W)

    fwd = jax.jit(bird_rgb_forward)
    action, logits = jax.block_until_ready(fwd(obs, params))

    ref = reference_logits(obs, raw)
    err = float(jnp.max(jnp.abs(logits - ref)))
    tol = 2e-2 * (1.0 + float(jnp.max(jnp.abs(ref))))
    assert err <= tol, f"logit mismatch vs pure-JAX reference: {err} > {tol}"
    assert int(action) in range(OUT_SIZE)
    print("KERNEL_OK")
</pallas_src>

<mosaic_0001>
module attributes {stable_mosaic.version = 11 : i64} {
  func.func @_conv_stage_kernel(%arg0: i32, %arg1: memref<2x2x3x768xbf16, #tpu.memory_space<vmem>>, %arg2: memref<8x48xbf16, #tpu.memory_space<vmem>>, %arg3: memref<16x72xbf16, #tpu.memory_space<vmem>>, %arg4: memref<16x512xbf16, #tpu.memory_space<vmem>>, %arg5: memref<48x640xbf16, #tpu.memory_space<vmem>>, %arg6: memref<8x640xbf16, #tpu.memory_space<vmem>>, %arg7: memref<72x512xbf16, #tpu.memory_space<vmem>>) attributes {dimension_semantics = [#tpu.dimension_semantics<arbitrary>], iteration_bounds = array<i64: 1>, scalar_prefetch = 0 : i64, scratch_operands = 3 : i64, tpu.core_type = #tpu.core_type<tc>, window_params = [{pipeline_mode = #tpu.pipeline_mode<synchronous>, transform_indices = @transform_0, window_bounds = array<i64: 2, 2, 3, 768>}, {pipeline_mode = #tpu.pipeline_mode<synchronous>, transform_indices = @transform_1, window_bounds = array<i64: 8, 48>}, {pipeline_mode = #tpu.pipeline_mode<synchronous>, transform_indices = @transform_2, window_bounds = array<i64: 16, 72>}, {pipeline_mode = #tpu.pipeline_mode<synchronous>, transform_indices = @transform_3, window_bounds = array<i64: 16, 512>}]} {
    %c0 = arith.constant 0 : index
    %c0_0 = arith.constant 0 : index
    %c0_1 = arith.constant 0 : index
    %c0_2 = arith.constant 0 : index
    %0 = vector.load %arg1[%c0, %c0_0, %c0_1, %c0_2] : memref<2x2x3x768xbf16, #tpu.memory_space<vmem>>, vector<1x1x3x640xbf16>
    %1 = vector.shape_cast %0 : vector<1x1x3x640xbf16> to vector<3x640xbf16>
    %c0_3 = arith.constant 0 : index
    %c0_4 = arith.constant 0 : index
    %2 = vector.load %arg5[%c0_3, %c0_4] : memref<48x640xbf16, #tpu.memory_space<vmem>>, vector<3x640xbf16>
    tpu.vector_store %arg5[%c0_3, %c0_4], %1 {strides = array<i32>} : memref<48x640xbf16, #tpu.memory_space<vmem>>, vector<3x640xbf16>,
    %c0_5 = arith.constant 0 : index
    %c1 = arith.constant 1 : index
    %c0_6 = arith.constant 0 : index
    %c0_7 = arith.constant 0 : index
    %3 = vector.load %arg1[%c0_5, %c1, %c0_6, %c0_7] : memref<2x2x3x768xbf16, #tpu.memory_space<vmem>>, vector<1x1x3x640xbf16>
    %4 = vector.shape_cast %3 : vector<1x1x3x640xbf16> to vector<3x640xbf16>
    %c3 = arith.constant 3 : index
    %c0_8 = arith.constant 0 : index
    %5 = vector.load %arg5[%c3, %c0_8] : memref<48x640xbf16, #tpu.memory_space<vmem>>, vector<3x640xbf16>
    tpu.vector_store %arg5[%c3, %c0_8], %4 {strides = array<i32>} : memref<48x640xbf16, #tpu.memory_space<vmem>>, vector<3x640xbf16>,
    %c0_9 = arith.constant 0 : index
    %c0_10 = arith.constant 0 : index
    %c0_11 = arith.constant 0 : index
    %c1_12 = arith.constant 1 : index
    %6 = vector.load %arg1[%c0_9, %c0_10, %c0_11, %c1_12] : memref<2x2x3x768xbf16, #tpu.memory_space<vmem>>, vector<1x1x3x640xbf16>
    %7 = vector.shape_cast %6 : vector<1x1x3x640xbf16> to vector<3x640xbf16>
    %c6 = arith.constant 6 : index
    %c0_13 = arith.constant 0 : index
    %8 = vector.load %arg5[%c6, %c0_13] : memref<48x640xbf16, #tpu.memory_space<vmem>>, vector<3x640xbf16>
    tpu.vector_store %arg5[%c6, %c0_13], %7 {strides = array<i32>} : memref<48x640xbf16, #tpu.memory_space<vmem>>, vector<3x640xbf16>,
    %c0_14 = arith.constant 0 : index
    %c1_15 = arith.constant 1 : index
    %c0_16 = arith.constant 0 : index
    %c1_17 = arith.constant 1 : index
    %9 = vector.load %arg1[%c0_14, %c1_15, %c0_16, %c1_17] : memref<2x2x3x768xbf16, #tpu.memory_space<vmem>>, vector<1x1x3x640xbf16>
    %10 = vector.shape_cast %9 : vector<1x1x3x640xbf16> to vector<3x640xbf16>
    %c9 = arith.constant 9 : index
    %c0_18 = arith.constant 0 : index
    %11 = vector.load %arg5[%c9, %c0_18] : memref<48x640xbf16, #tpu.memory_space<vmem>>, vector<3x640xbf16>
    tpu.vector_store %arg5[%c9, %c0_18], %10 {strides = array<i32>} : memref<48x640xbf16, #tpu.memory_space<vmem>>, vector<3x640xbf16>,
    %c1_19 = arith.constant 1 : index
    %c0_20 = arith.constant 0 : index
    %c0_21 = arith.constant 0 : index
    %c0_22 = arith.constant 0 : index
    %12 = vector.load %arg1[%c1_19, %c0_20, %c0_21, %c0_22] : memref<2x2x3x768xbf16, #tpu.memory_space<vmem>>, vector<1x1x3x640xbf16>
    %13 = vector.shape_cast %12 : vector<1x1x3x640xbf16> to vector<3x640xbf16>
    %c12 = arith.constant 12 : index
    %c0_23 = arith.constant 0 : index
    %14 = vector.load %arg5[%c12, %c0_23] : memref<48x640xbf16, #tpu.memory_space<vmem>>, vector<3x640xbf16>
    tpu.vector_store %arg5[%c12, %c0_23], %13 {strides = array<i32>} : memref<48x640xbf16, #tpu.memory_space<vmem>>, vector<3x640xbf16>,
    %c1_24 = arith.constant 1 : index
    %c1_25 = arith.constant 1 : index
    %c0_26 = arith.constant 0 : index
    %c0_27 = arith.constant 0 : index
    %15 = vector.load %arg1[%c1_24, %c1_25, %c0_26, %c0_27] : memref<2x2x3x768xbf16, #tpu.memory_space<vmem>>, vector<1x1x3x640xbf16>
    %16 = vector.shape_cast %15 : vector<1x1x3x640xbf16> to vector<3x640xbf16>
    %c15 = arith.constant 15 : index
    %c0_28 = arith.constant 0 : index
    %17 = vector.load %arg5[%c15, %c0_28] : memref<48x640xbf16, #tpu.memory_space<vmem>>, vector<3x640xbf16>
    tpu.vector_store %arg5[%c15, %c0_28], %16 {strides = array<i32>} : memref<48x640xbf16, #tpu.memory_space<vmem>>, vector<3x640xbf16>,
    %c1_29 = arith.constant 1 : index
    %c0_30 = arith.constant 0 : index
    %c0_31 = arith.constant 0 : index
    %c1_32 = arith.constant 1 : index
    %18 = vector.load %arg1[%c1_29, %c0_30, %c0_31, %c1_32] : memref<2x2x3x768xbf16, #tpu.memory_space<vmem>>, vector<1x1x3x640xbf16>
    %19 = vector.shape_cast %18 : vector<1x1x3x640xbf16> to vector<3x640xbf16>
    %c18 = arith.constant 18 : index
    %c0_33 = arith.constant 0 : index
    %20 = vector.load %arg5[%c18, %c0_33] : memref<48x640xbf16, #tpu.memory_space<vmem>>, vector<3x640xbf16>
    tpu.vector_store %arg5[%c18, %c0_33], %19 {strides = array<i32>} : memref<48x640xbf16, #tpu.memory_space<vmem>>, vector<3x640xbf16>,
    %c1_34 = arith.constant 1 : index
    %c1_35 = arith.constant 1 : index
    %c0_36 = arith.constant 0 : index
    %c1_37 = arith.constant 1 : index
    %21 = vector.load %arg1[%c1_34, %c1_35, %c0_36, %c1_37] : memref<2x2x3x768xbf16, #tpu.memory_space<vmem>>, vector<1x1x3x640xbf16>
    %22 = vector.shape_cast %21 : vector<1x1x3x640xbf16> to vector<3x640xbf16>
    %c21 = arith.constant 21 : index
    %c0_38 = arith.constant 0 : index
    %23 = vector.load %arg5[%c21, %c0_38] : memref<48x640xbf16, #tpu.memory_space<vmem>>, vector<3x640xbf16>
    tpu.vector_store %arg5[%c21, %c0_38], %22 {strides = array<i32>} : memref<48x640xbf16, #tpu.memory_space<vmem>>, vector<3x640xbf16>,
    %c0_39 = arith.constant 0 : index
    %c0_40 = arith.constant 0 : index
    %c0_41 = arith.constant 0 : index
    %c16 = arith.constant 16 : index
    %24 = vector.load %arg1[%c0_39, %c0_40, %c0_41, %c16] : memref<2x2x3x768xbf16, #tpu.memory_space<vmem>>, vector<1x1x3x640xbf16>
    %25 = vector.shape_cast %24 : vector<1x1x3x640xbf16> to vector<3x640xbf16>
    %c24 = arith.constant 24 : index
    %c0_42 = arith.constant 0 : index
    %26 = vector.load %arg5[%c24, %c0_42] : memref<48x640xbf16, #tpu.memory_space<vmem>>, vector<3x640xbf16>
    tpu.vector_store %arg5[%c24, %c0_42], %25 {strides = array<i32>} : memref<48x640xbf16, #tpu.memory_space<vmem>>, vector<3x640xbf16>,
    %c0_43 = arith.constant 0 : index
    %c1_44 = arith.constant 1 : index
    %c0_45 = arith.constant 0 : index
    %c16_46 = arith.constant 16 : index
    %27 = vector.load %arg1[%c0_43, %c1_44, %c0_45, %c16_46] : memref<2x2x3x768xbf16, #tpu.memory_space<vmem>>, vector<1x1x3x640xbf16>
    %28 = vector.shape_cast %27 : vector<1x1x3x640xbf16> to vector<3x640xbf16>
    %c27 = arith.constant 27 : index
    %c0_47 = arith.constant 0 : index
    %29 = vector.load %arg5[%c27, %c0_47] : memref<48x640xbf16, #tpu.memory_space<vmem>>, vector<3x640xbf16>
    tpu.vector_store %arg5[%c27, %c0_47], %28 {strides = array<i32>} : memref<48x640xbf16, #tpu.memory_space<vmem>>, vector<3x640xbf16>,
    %c0_48 = arith.constant 0 : index
    %c0_49 = arith.constant 0 : index
    %c0_50 = arith.constant 0 : index
    %c17 = arith.constant 17 : index
    %30 = vector.load %arg1[%c0_48, %c0_49, %c0_50, %c17] : memref<2x2x3x768xbf16, #tpu.memory_space<vmem>>, vector<1x1x3x640xbf16>
    %31 = vector.shape_cast %30 : vector<1x1x3x640xbf16> to vector<3x640xbf16>
    %c30 = arith.constant 30 : index
    %c0_51 = arith.constant 0 : index
    %32 = vector.load %arg5[%c30, %c0_51] : memref<48x640xbf16, #tpu.memory_space<vmem>>, vector<3x640xbf16>
    tpu.vector_store %arg5[%c30, %c0_51], %31 {strides = array<i32>} : memref<48x640xbf16, #tpu.memory_space<vmem>>, vector<3x640xbf16>,
    %c0_52 = arith.constant 0 : index
    %c1_53 = arith.constant 1 : index
    %c0_54 = arith.constant 0 : index
    %c17_55 = arith.constant 17 : index
    %33 = vector.load %arg1[%c0_52, %c1_53, %c0_54, %c17_55] : memref<2x2x3x768xbf16, #tpu.memory_space<vmem>>, vector<1x1x3x640xbf16>
    %34 = vector.shape_cast %33 : vector<1x1x3x640xbf16> to vector<3x640xbf16>
    %c33 = arith.constant 33 : index
    %c0_56 = arith.constant 0 : index
    %35 = vector.load %arg5[%c33, %c0_56] : memref<48x640xbf16, #tpu.memory_space<vmem>>, vector<3x640xbf16>
    tpu.vector_store %arg5[%c33, %c0_56], %34 {strides = array<i32>} : memref<48x640xbf16, #tpu.memory_space<vmem>>, vector<3x640xbf16>,
    %c1_57 = arith.constant 1 : index
    %c0_58 = arith.constant 0 : index
    %c0_59 = arith.constant 0 : index
    %c16_60 = arith.constant 16 : index
    %36 = vector.load %arg1[%c1_57, %c0_58, %c0_59, %c16_60] : memref<2x2x3x768xbf16, #tpu.memory_space<vmem>>, vector<1x1x3x640xbf16>
    %37 = vector.shape_cast %36 : vector<1x1x3x640xbf16> to vector<3x640xbf16>
    %c36 = arith.constant 36 : index
    %c0_61 = arith.constant 0 : index
    %38 = vector.load %arg5[%c36, %c0_61] : memref<48x640xbf16, #tpu.memory_space<vmem>>, vector<3x640xbf16>
    tpu.vector_store %arg5[%c36, %c0_61], %37 {strides = array<i32>} : memref<48x640xbf16, #tpu.memory_space<vmem>>, vector<3x640xbf16>,
    %c1_62 = arith.constant 1 : index
    %c1_63 = arith.constant 1 : index
    %c0_64 = arith.constant 0 : index
    %c16_65 = arith.constant 16 : index
    %39 = vector.load %arg1[%c1_62, %c1_63, %c0_64, %c16_65] : memref<2x2x3x768xbf16, #tpu.memory_space<vmem>>, vector<1x1x3x640xbf16>
    %40 = vector.shape_cast %39 : vector<1x1x3x640xbf16> to vector<3x640xbf16>
    %c39 = arith.constant 39 : index
    %c0_66 = arith.constant 0 : index
    %41 = vector.load %arg5[%c39, %c0_66] : memref<48x640xbf16, #tpu.memory_space<vmem>>, vector<3x640xbf16>
    tpu.vector_store %arg5[%c39, %c0_66], %40 {strides = array<i32>} : memref<48x640xbf16, #tpu.memory_space<vmem>>, vector<3x640xbf16>,
    %c1_67 = arith.constant 1 : index
    %c0_68 = arith.constant 0 : index
    %c0_69 = arith.constant 0 : index
    %c17_70 = arith.constant 17 : index
    %42 = vector.load %arg1[%c1_67, %c0_68, %c0_69, %c17_70] : memref<2x2x3x768xbf16, #tpu.memory_space<vmem>>, vector<1x1x3x640xbf16>
    %43 = vector.shape_cast %42 : vector<1x1x3x640xbf16> to vector<3x640xbf16>
    %c42 = arith.constant 42 : index
    %c0_71 = arith.constant 0 : index
    %44 = vector.load %arg5[%c42, %c0_71] : memref<48x640xbf16, #tpu.memory_space<vmem>>, vector<3x640xbf16>
    tpu.vector_store %arg5[%c42, %c0_71], %43 {strides = array<i32>} : memref<48x640xbf16, #tpu.memory_space<vmem>>, vector<3x640xbf16>,
    %c1_72 = arith.constant 1 : index
    %c1_73 = arith.constant 1 : index
    %c0_74 = arith.constant 0 : index
    %c17_75 = arith.constant 17 : index
    %45 = vector.load %arg1[%c1_72, %c1_73, %c0_74, %c17_75] : memref<2x2x3x768xbf16, #tpu.memory_space<vmem>>, vector<1x1x3x640xbf16>
    %46 = vector.shape_cast %45 : vector<1x1x3x640xbf16> to vector<3x640xbf16>
    %c45 = arith.constant 45 : index
    %c0_76 = arith.constant 0 : index
    %47 = vector.load %arg5[%c45, %c0_76] : memref<48x640xbf16, #tpu.memory_space<vmem>>, vector<3x640xbf16>
    tpu.vector_store %arg5[%c45, %c0_76], %46 {strides = array<i32>} : memref<48x640xbf16, #tpu.memory_space<vmem>>, vector<3x640xbf16>,
    %c0_77 = arith.constant 0 : index
    %c0_78 = arith.constant 0 : index
    %48 = vector.load %arg2[%c0_77, %c0_78] : memref<8x48xbf16, #tpu.memory_space<vmem>>, vector<8x48xbf16>
    %c0_79 = arith.constant 0 : index
    %c0_80 = arith.constant 0 : index
    %49 = vector.load %arg5[%c0_79, %c0_80] : memref<48x640xbf16, #tpu.memory_space<vmem>>, vector<48x640xbf16>
    %cst = arith.constant dense<0.000000e+00> : vector<8x640xf32>
    %50 = tpu.matmul %48, %49, %cst {dimension_numbers = #tpu.dot_dimension_numbers<[1], [0], [0], [1], [0, 0, 1, 1], [], []>} : vector<8x48xbf16>, vector<48x640xbf16>, vector<8x640xf32> -> vector<8x640xf32>
    %51 = arith.negf %50 : vector<8x640xf32>
    %52 = math.exp %51 : vector<8x640xf32>
    %cst_81 = arith.constant 1.000000e+00 : f32
    %53 = vector.broadcast %cst_81 : f32 to vector<8x640xf32>
    %54 = arith.addf %53, %52 : vector<8x640xf32>
    %55 = arith.divf %53, %54 : vector<8x640xf32>
    %56 = arith.truncf %55 : vector<8x640xf32> to vector<8x640xbf16>
    %c0_82 = arith.constant 0 : index
    %c0_83 = arith.constant 0 : index
    %57 = vector.load %arg6[%c0_82, %c0_83] : memref<8x640xbf16, #tpu.memory_space<vmem>>, vector<8x640xbf16>
    tpu.vector_store %arg6[%c0_82, %c0_83], %56 {strides = array<i32>} : memref<8x640xbf16, #tpu.memory_space<vmem>>, vector<8x640xbf16>,
    %c0_84 = arith.constant 0 : index
    %c0_85 = arith.constant 0 : index
    %58 = vector.load %arg6[%c0_84, %c0_85] : memref<8x640xbf16, #tpu.memory_space<vmem>>, vector<8x512xbf16>
    %c0_86 = arith.constant 0 : index
    %c0_87 = arith.constant 0 : index
    %59 = vector.load %arg7[%c0_86, %c0_87] : memref<72x512xbf16, #tpu.memory_space<vmem>>, vector<8x512xbf16>
    tpu.vector_store %arg7[%c0_86, %c0_87], %58 {strides = array<i32>} : memref<72x512xbf16, #tpu.memory_space<vmem>>, vector<8x512xbf16>,
    %c0_88 = arith.constant 0 : index
    %c1_89 = arith.constant 1 : index
    %60 = vector.load %arg6[%c0_88, %c1_89] : memref<8x640xbf16, #tpu.memory_space<vmem>>, vector<8x512xbf16>
    %c8 = arith.constant 8 : index
    %c0_90 = arith.constant 0 : index
    %61 = vector.load %arg7[%c8, %c0_90] : memref<72x512xbf16, #tpu.memory_space<vmem>>, vector<8x512xbf16>
    tpu.vector_store %arg7[%c8, %c0_90], %60 {strides = array<i32>} : memref<72x512xbf16, #tpu.memory_space<vmem>>, vector<8x512xbf16>,
    %c0_91 = arith.constant 0 : index
    %c2 = arith.constant 2 : index
    %62 = vector.load %arg6[%c0_91, %c2] : memref<8x640xbf16, #tpu.memory_space<vmem>>, vector<8x512xbf16>
    %c16_92 = arith.constant 16 : index
    %c0_93 = arith.constant 0 : index
    %63 = vector.load %arg7[%c16_92, %c0_93] : memref<72x512xbf16, #tpu.memory_space<vmem>>, vector<8x512xbf16>
    tpu.vector_store %arg7[%c16_92, %c0_93], %62 {strides = array<i32>} : memref<72x512xbf16, #tpu.memory_space<vmem>>, vector<8x512xbf16>,
    %c0_94 = arith.constant 0 : index
    %c16_95 = arith.constant 16 : index
    %64 = vector.load %arg6[%c0_94, %c16_95] : memref<8x640xbf16, #tpu.memory_space<vmem>>, vector<8x512xbf16>
    %c24_96 = arith.constant 24 : index
    %c0_97 = arith.constant 0 : index
    %65 = vector.load %arg7[%c24_96, %c0_97] : memref<72x512xbf16, #tpu.memory_space<vmem>>, vector<8x512xbf16>
    tpu.vector_store %arg7[%c24_96, %c0_97], %64 {strides = array<i32>} : memref<72x512xbf16, #tpu.memory_space<vmem>>, vector<8x512xbf16>,
    %c0_98 = arith.constant 0 : index
    %c17_99 = arith.constant 17 : index
    %66 = vector.load %arg6[%c0_98, %c17_99] : memref<8x640xbf16, #tpu.memory_space<vmem>>, vector<8x512xbf16>
    %c32 = arith.constant 32 : index
    %c0_100 = arith.constant 0 : index
    %67 = vector.load %arg7[%c32, %c0_100] : memref<72x512xbf16, #tpu.memory_space<vmem>>, vector<8x512xbf16>
    tpu.vector_store %arg7[%c32, %c0_100], %66 {strides = array<i32>} : memref<72x512xbf16, #tpu.memory_space<vmem>>, vector<8x512xbf16>,
    %c0_101 = arith.constant 0 : index
    %c18_102 = arith.constant 18 : index
    %68 = vector.load %arg6[%c0_101, %c18_102] : memref<8x640xbf16, #tpu.memory_space<vmem>>, vector<8x512xbf16>
    %c40 = arith.constant 40 : index
    %c0_103 = arith.constant 0 : index
    %69 = vector.load %arg7[%c40, %c0_103] : memref<72x512xbf16, #tpu.memory_space<vmem>>, vector<8x512xbf16>
    tpu.vector_store %arg7[%c40, %c0_103], %68 {strides = array<i32>} : memref<72x512xbf16, #tpu.memory_space<vmem>>, vector<8x512xbf16>,
    %c0_104 = arith.constant 0 : index
    %c32_105 = arith.constant 32 : index
    %70 = vector.load %arg6[%c0_104, %c32_105] : memref<8x640xbf16, #tpu.memory_space<vmem>>, vector<8x512xbf16>
    %c48 = arith.constant 48 : index
    %c0_106 = arith.constant 0 : index
    %71 = vector.load %arg7[%c48, %c0_106] : memref<72x512xbf16, #tpu.memory_space<vmem>>, vector<8x512xbf16>
    tpu.vector_store %arg7[%c48, %c0_106], %70 {strides = array<i32>} : memref<72x512xbf16, #tpu.memory_space<vmem>>, vector<8x512xbf16>,
    %c0_107 = arith.constant 0 : index
    %c33_108 = arith.constant 33 : index
    %72 = vector.load %arg6[%c0_107, %c33_108] : memref<8x640xbf16, #tpu.memory_space<vmem>>, vector<8x512xbf16>
    %c56 = arith.constant 56 : index
    %c0_109 = arith.constant 0 : index
    %73 = vector.load %arg7[%c56, %c0_109] : memref<72x512xbf16, #tpu.memory_space<vmem>>, vector<8x512xbf16>
    tpu.vector_store %arg7[%c56, %c0_109], %72 {strides = array<i32>} : memref<72x512xbf16, #tpu.memory_space<vmem>>, vector<8x512xbf16>,
    %c0_110 = arith.constant 0 : index
    %c34 = arith.constant 34 : index
    %74 = vector.load %arg6[%c0_110, %c34] : memref<8x640xbf16, #tpu.memory_space<vmem>>, vector<8x512xbf16>
    %c64 = arith.constant 64 : index
    %c0_111 = arith.constant 0 : index
    %75 = vector.load %arg7[%c64, %c0_111] : memref<72x512xbf16, #tpu.memory_space<vmem>>, vector<8x512xbf16>
    tpu.vector_store %arg7[%c64, %c0_111], %74 {strides = array<i32>} : memref<72x512xbf16, #tpu.memory_space<vmem>>, vector<8x512xbf16>,
    %c0_112 = arith.constant 0 : index
    %c0_113 = arith.constant 0 : index
    %76 = vector.load %arg3[%c0_112, %c0_113] : memref<16x72xbf16, #tpu.memory_space<vmem>>, vector<16x72xbf16>
    %c0_114 = arith.constant 0 : index
    %c0_115 = arith.constant 0 : index
    %77 = vector.load %arg7[%c0_114, %c0_115] : memref<72x512xbf16, #tpu.memory_space<vmem>>, vector<72x512xbf16>
    %cst_116 = arith.constant dense<0.000000e+00> : vector<16x512xf32>
    %78 = tpu.matmul %76, %77, %cst_116 {dimension_numbers = #tpu.dot_dimension_numbers<[1], [0], [0], [1], [0, 0, 1, 1], [], []>} : vector<16x72xbf16>, vector<72x512xbf16>, vector<16x512xf32> -> vector<16x512xf32>
    %79 = arith.negf %78 : vector<16x512xf32>
    %80 = math.exp %79 : vector<16x512xf32>
    %cst_117 = arith.constant 1.000000e+00 : f32
    %81 = vector.broadcast %cst_117 : f32 to vector<16x512xf32>
    %82 = arith.addf %81, %80 : vector<16x512xf32>
    %83 = arith.divf %81, %82 : vector<16x512xf32>
    %84 = arith.truncf %83 : vector<16x512xf32> to vector<16x512xbf16>
    %c0_118 = arith.constant 0 : index
    %c0_119 = arith.constant 0 : index
    %85 = vector.load %arg4[%c0_118, %c0_119] : memref<16x512xbf16, #tpu.memory_space<vmem>>, vector<16x512xbf16>
    tpu.vector_store %arg4[%c0_118, %c0_119], %84 {strides = array<i32>} : memref<16x512xbf16, #tpu.memory_space<vmem>>, vector<16x512xbf16>,
    return
  }
  func.func @transform_0(%arg0: i32) -> (i32, i32, i32, i32) {
    %c0_i32 = arith.constant 0 : i32
    %c0_i32_0 = arith.constant 0 : i32
    %c0_i32_1 = arith.constant 0 : i32
    %c0_i32_2 = arith.constant 0 : i32
    %c0_i32_3 = arith.constant 0 : i32
    return %c0_i32, %c0_i32_0, %c0_i32_1, %c0_i32_2 : i32, i32, i32, i32
  }
  func.func @transform_1(%arg0: i32) -> (i32, i32) {
    %c0_i32 = arith.constant 0 : i32
    %c0_i32_0 = arith.constant 0 : i32
    %c0_i32_1 = arith.constant 0 : i32
    return %c0_i32, %c0_i32_0 : i32, i32
  }
  func.func @transform_2(%arg0: i32) -> (i32, i32) {
    %c0_i32 = arith.constant 0 : i32
    %c0_i32_0 = arith.constant 0 : i32
    %c0_i32_1 = arith.constant 0 : i32
    return %c0_i32, %c0_i32_0 : i32, i32
  }
  func.func @transform_3(%arg0: i32) -> (i32, i32) {
    %c0_i32 = arith.constant 0 : i32
    %c0_i32_0 = arith.constant 0 : i32
    %c0_i32_1 = arith.constant 0 : i32
    return %c0_i32, %c0_i32_0 : i32, i32
  }
}

module attributes {stable_mosaic.version = 11 : i64} {
  func.func @_fc_head_kernel(%arg0: i32, %arg1: memref<1x8192xbf16, #tpu.memory_space<vmem>>, %arg2: memref<8192x128xbf16, #tpu.memory_space<vmem>>, %arg3: memref<128x2xf32, #tpu.memory_space<vmem>>, %arg4: memref<1x1xi32, #tpu.memory_space<vmem>>, %arg5: memref<1x2xf32, #tpu.memory_space<vmem>>, %arg6: memref<1x128xf32, #tpu.memory_space<vmem>>) attributes {dimension_semantics = [#tpu.dimension_semantics<arbitrary>], iteration_bounds = array<i64: 1>, scalar_prefetch = 0 : i64, scratch_operands = 1 : i64, tpu.core_type = #tpu.core_type<tc>, window_params = [{pipeline_mode = #tpu.pipeline_mode<synchronous>, transform_indices = @transform_0, window_bounds = array<i64: 1, 8192>}, {transform_indices = @transform_1, window_bounds = array<i64: 8192, 128>}, {pipeline_mode = #tpu.pipeline_mode<synchronous>, transform_indices = @transform_2, window_bounds = array<i64: 128, 2>}, {pipeline_mode = #tpu.pipeline_mode<synchronous>, transform_indices = @transform_3, window_bounds = array<i64: 1, 1>}, {pipeline_mode = #tpu.pipeline_mode<synchronous>, transform_indices = @transform_4, window_bounds = array<i64: 1, 2>}]} {
    %c0_i32 = arith.constant 0 : i32
    %0 = arith.cmpi eq, %arg0, %c0_i32 : i32
    %1 = arith.extui %0 : i1 to i32
    %c0_i32_0 = arith.constant 0 : i32
    %2 = arith.cmpi ne, %1, %c0_i32_0 : i32
    scf.if %2 {
      %cst_9 = arith.constant 0.000000e+00 : f32
      %15 = vector.broadcast %cst_9 : f32 to vector<1x128xf32>
      %c0_10 = arith.constant 0 : index
      %c0_11 = arith.constant 0 : index
      %16 = vector.load %arg6[%c0_10, %c0_11] : memref<1x128xf32, #tpu.memory_space<vmem>>, vector<1x128xf32>
      tpu.vector_store %arg6[%c0_10, %c0_11], %15 {strides = array<i32>} : memref<1x128xf32, #tpu.memory_space<vmem>>, vector<1x128xf32>,
    } else {
    }
    %c8192_i32 = arith.constant 8192 : i32
    %3 = arith.muli %arg0, %c8192_i32 : i32
    %4 = tpu.assume_multiple %3, 128 : i32
    %c0 = arith.constant 0 : index
    %5 = arith.index_cast %4 : i32 to index
    %6 = vector.load %arg1[%c0, %5] : memref<1x8192xbf16, #tpu.memory_space<vmem>>, vector<1x8192xbf16>
    %c0_1 = arith.constant 0 : index
    %c0_2 = arith.constant 0 : index
    %7 = vector.load %arg6[%c0_1, %c0_2] : memref<1x128xf32, #tpu.memory_space<vmem>>, vector<1x128xf32>
    %c0_3 = arith.constant 0 : index
    %c0_4 = arith.constant 0 : index
    %8 = vector.load %arg2[%c0_3, %c0_4] : memref<8192x128xbf16, #tpu.memory_space<vmem>>, vector<8192x128xbf16>
    %cst = arith.constant dense<0.000000e+00> : vector<1x128xf32>
    %9 = tpu.matmul %6, %8, %cst {dimension_numbers = #tpu.dot_dimension_numbers<[1], [0], [0], [1], [0, 0, 1, 1], [], []>} : vector<1x8192xbf16>, vector<8192x128xbf16>, vector<1x128xf32> -> vector<1x128xf32>
    %10 = arith.addf %7, %9 : vector<1x128xf32>
    %c0_5 = arith.constant 0 : index
    %c0_6 = arith.constant 0 : index
    %11 = vector.load %arg6[%c0_5, %c0_6] : memref<1x128xf32, #tpu.memory_space<vmem>>, vector<1x128xf32>
    tpu.vector_store %arg6[%c0_5, %c0_6], %10 {strides = array<i32>} : memref<1x128xf32, #tpu.memory_space<vmem>>, vector<1x128xf32>,
    %c0_i32_7 = arith.constant 0 : i32
    %12 = arith.cmpi eq, %arg0, %c0_i32_7 : i32
    %13 = arith.extui %12 : i1 to i32
    %c0_i32_8 = arith.constant 0 : i32
    %14 = arith.cmpi ne, %13, %c0_i32_8 : i32
    scf.if %14 {
      %c0_9 = arith.constant 0 : index
      %c0_10 = arith.constant 0 : index
      %15 = vector.load %arg6[%c0_9, %c0_10] : memref<1x128xf32, #tpu.memory_space<vmem>>, vector<1x128xf32>
      %cst_11 = arith.constant 0.000000e+00 : f32
      %16 = vector.broadcast %cst_11 : f32 to vector<1x128xf32>
      %17 = arith.maximumf %15, %16 : vector<1x128xf32>
      %c0_12 = arith.constant 0 : index
      %c0_13 = arith.constant 0 : index
      %18 = vector.load %arg3[%c0_12, %c0_13] : memref<128x2xf32, #tpu.memory_space<vmem>>, vector<128x2xf32>
      %cst_14 = arith.constant dense<0.000000e+00> : vector<1x2xf32>
      %19 = tpu.matmul %17, %18, %cst_14 {dimension_numbers = #tpu.dot_dimension_numbers<[1], [0], [0], [1], [0, 0, 1, 1], [], []>} : vector<1x128xf32>, vector<128x2xf32>, vector<1x2xf32> -> vector<1x2xf32>
      %c0_15 = arith.constant 0 : index
      %c0_16 = arith.constant 0 : index
      %20 = vector.load %arg5[%c0_15, %c0_16] : memref<1x2xf32, #tpu.memory_space<vmem>>, vector<1x2xf32>
      tpu.vector_store %arg5[%c0_15, %c0_16], %19 {strides = array<i32>} : memref<1x2xf32, #tpu.memory_space<vmem>>, vector<1x2xf32>,
      %21 = tpu.iota {dimensions = array<i32: 1>} : vector<1x2xi32>
      %cst_17 = arith.constant dense<0xFF800000> : vector<1xf32>
      %22 = vector.multi_reduction <maximumf>, %19, %cst_17 [1] : vector<1x2xf32> to vector<1xf32>
      %23 = vector.shape_cast %22 : vector<1xf32> to vector<1x1xf32>
      %24 = vector.broadcast %23 : vector<1x1xf32> to vector<1x2xf32>
      %25 = arith.cmpf oge, %19, %24 : vector<1x2xf32>
      %c2_i32 = arith.constant 2 : i32
      %26 = vector.broadcast %c2_i32 : i32 to vector<1x2xi32>
      %27 = arith.select %25, %21, %26 : vector<1x2xi1>, vector<1x2xi32>
      %cst_18 = arith.constant dense<2147483647> : vector<1xi32>
      %28 = vector.multi_reduction <minsi>, %27, %cst_18 [1] : vector<1x2xi32> to vector<1xi32>
      %29 = vector.shape_cast %28 : vector<1xi32> to vector<1x1xi32>
      %c0_19 = arith.constant 0 : index
      %c0_20 = arith.constant 0 : index
      %30 = vector.load %arg4[%c0_19, %c0_20] : memref<1x1xi32, #tpu.memory_space<vmem>>, vector<1x1xi32>
      tpu.vector_store %arg4[%c0_19, %c0_20], %29 {strides = array<i32>} : memref<1x1xi32, #tpu.memory_space<vmem>>, vector<1x1xi32>,
    } else {
    }
    return
  }
  func.func @transform_0(%arg0: i32) -> (i32, i32) {
    %c0_i32 = arith.constant 0 : i32
    %c0_i32_0 = arith.constant 0 : i32
    %c0_i32_1 = arith.constant 0 : i32
    return %c0_i32, %c0_i32_0 : i32, i32
  }
  func.func @transform_1(%arg0: i32) -> (i32, i32) {
    %c0_i32 = arith.constant 0 : i32
    %c0_i32_0 = arith.constant 0 : i32
    return %arg0, %c0_i32 : i32, i32
  }
  func.func @transform_2(%arg0: i32) -> (i32, i32) {
    %c0_i32 = arith.constant 0 : i32
    %c0_i32_0 = arith.constant 0 : i32
    %c0_i32_1 = arith.constant 0 : i32
    return %c0_i32, %c0_i32_0 : i32, i32
  }
  func.func @transform_3(%arg0: i32) -> (i32, i32) {
    %c0_i32 = arith.constant 0 : i32
    %c0_i32_0 = arith.constant 0 : i32
    %c0_i32_1 = arith.constant 0 : i32
    return %c0_i32, %c0_i32_0 : i32, i32
  }
  func.func @transform_4(%arg0: i32) -> (i32, i32) {
    %c0_i32 = arith.constant 0 : i32
    %c0_i32_0 = arith.constant 0 : i32
    %c0_i32_1 = arith.constant 0 : i32
    return %c0_i32, %c0_i32_0 : i32, i32
  }
}

</mosaic_0001>

<bundles_post_ra>
// kernel: bird_rgb_forward.2
= control target key start
LH: loop header
LB: loop body
LE: loop exit
PB: predicated region body
PF: predicated region fallthrough
CT: control target
= control target key end

     0   :  { %8 = vsyncpa [#allocation6], 0  ;;  %s2842_s0 = inlined_call_operand.vmem [shape: bf16[2,2,3,768], index: 0, kind: input, shape index: {}]   ;;  %s2843_s1 = inlined_call_operand.hbm [shape: bf16[8,48], index: 1, kind: input, shape index: {}]   ;;  %s2844_s2 = inlined_call_operand.hbm [shape: bf16[16,72], index: 2, kind: input, shape index: {}]   ;;  %s2845_s3 = inlined_call_operand.vmem [shape: bf16[16,512], index: 3, kind: output, shape index: {}]  }
   0x1   :  { %s17_s14 = sshll.u32 %s2843_s1, 4  ;;  %s18_s14 = int_to_ptr.hbm [resolvable:$true] %s17_s14 }
   0x2   :  { %9 = vsyncpa [#allocation8], 0  ;;  %s2035_s15 = smov [#allocation5]   ;;  %s27_s19 = sshll.u32 %s2844_s2, 4  ;;  %s28_s19 = int_to_ptr.hbm [resolvable:$true] %s27_s19 }
   0x3   :  { %s19_s16 = sshll.u32 %s2035_s15, 4  ;;  %s2036_s20 = smov [#allocation7]   ;;  %s20_s16 = int_to_ptr.vmem [resolvable:$true] %s19_s16 }
   0x4   :  { %22 = dma.hbm_to_vmem [thread:$0]  %s18_s14, 64, %s20_s16, [#allocation6]  }
   0x5   :  { %s29_s21 = sshll.u32 %s2036_s20, 4  ;;  %s2037_s22 = smov 64   ;;  %s30_s21 = int_to_ptr.vmem [resolvable:$true] %s29_s21 }
   0x6   :  { %s2038_s23 = smov 4  }
   0x7   :  { %35 = dma.hbm_to_vmem [thread:$0]  %s28_s19, 128, %s30_s21, [#allocation8], %s2037_s22, %s2037_s22, %s2038_s23  }
   0x8   :  { %2031 = dma.done.wait [#allocation6], 64  }
   0x9   :  { %2032 = vsyncadd [#allocation6], 4294967232 }
   0xa   :  { %2033 = dma.done.wait [#allocation8], 128  }
   0xb   :  { %2034 = vsyncadd [#allocation8], 4294967168  ;;  %v2076_v0 = vld [vmem:[%s2842_s0] sm:$0xff]  ;;  %v46_v1 = vld [vmem:[%s2842_s0 + $0x8] sm:$0x3]  ;;  %s2039_s7 = smov 127  }
   0xc   :  { %48 = vst [vmem:[#allocation1] ss:$2 sm:$0xff] %v2076_v0  ;;  %v2085_v2 = vld [vmem:[%s2842_s0 + $0xc] sm:$0xff]  ;;  %v1709_v3 = vld [vmem:[%s2842_s0 + $0x14] sm:$0x3]  ;;  %v2120_v20 = vld [vmem:[%s2842_s0 + $0x18] sm:$0xff] }
   0xd   :  { %51 = vst [vmem:[#allocation1 + $0x10] ss:$2 sm:$0xff] %v46_v1  ;;  %v126_v7 = vld [vmem:[%s2842_s0 + $0x8] sm:$0xf]  ;;  %v1711_v11 = vld [vmem:[%s2842_s0 + $0x14] sm:$0xf] }
   0xe   :  { %v1713_v23 = vld [vmem:[%s2842_s0 + $0x20] sm:$0x3]  ;;  %v2135_v33 = vld [vmem:[%s2842_s0 + $0x24] sm:$0xff]  ;;  %v1715_v35 = vld [vmem:[%s2842_s0 + $0x2c] sm:$0x3]  ;;  %s2040_s1 = smov 112  }
   0xf   :  { %v1717_v39 = vld [vmem:[%s2842_s0 + $0x20] sm:$0xf]  ;;  %v1719_v43 = vld [vmem:[%s2842_s0 + $0x2c] sm:$0xf]  ;;  %v459_v50 = vld [vmem:[%s2842_s0 + $0x8] sm:$0xf] }
  0x10   :  { %v1721_v1 = vld [vmem:[%s2842_s0 + $0x14] sm:$0xf]  ;;  %s2041_s27 = smov 111   ;;  %vm2849_vm0 = vcmask 1041408   ;;  %vm59_vm1 = vsmask.f32 1280 }
  0x11   :  { %vm2847_vm2 = vcmask 1045508   ;;  %vm2236_vm3 = vmand %vm2849_vm0, %vm59_vm1  ;;  %vm62_vm4 = vsmask.f32 5376  ;;  %vm2850_vm7 = vcmask 1042433   ;;  %vm2846_vm8 = vcmask 1046533   ;;  %s2043_s10 = smov 96  }
  0x12   :  { %vm63_vm5 = vmand %vm2847_vm2, %vm62_vm4  ;;  %vm110_vm9 = vsmask.f32 7942  ;;  %vm113_vm10 = vsmask.f32 7958  ;;  %vm183_vm12 = vcmask 1040384   ;;  %vm186_vm1 = vcmask 1044484  }
  0x13   :  { %v2090_v4 = vld.sshfl [vmem:[#allocation1] sm:$0xff pattern:$0x75643120]  ;;  %v2092_v5 = vld.sshfl [vmem:[#allocation1 + $0x8] sm:$0xff pattern:$0x75643120]  ;;  %vm2246_vm6 = vmor %vm63_vm5, %vm2236_vm3 }
  0x14   :  { %78 = vst [vmem:[#allocation1] ss:$2 sm:$0xff] %v2085_v2  ;;  %v2095_v6 = vld.sshfl [vmem:[#allocation1 + $0x10] sm:$0xff pattern:$0x75643120]  ;;  %vm2254_vm11 = vmand %vm2850_vm7, %vm110_vm9  ;;  %vm333_vm7 = vcmask 1047559  }
  0x15   :  { %81 = vst [vmem:[#allocation1 + $0x10] ss:$2 sm:$0xff] %v1709_v3  ;;  %vm114_vm13 = vmand %vm2846_vm8, %vm113_vm10  ;;  %vm184_vm14 = vsmask.f32 256  ;;  %vm187_vm4 = vsmask.f32 4352 }
  0x16   :  { %vm2268_vm15 = vmor %vm114_vm13, %vm2254_vm11  ;;  %vm2848_vm10 = vcmask 1043458   ;;  %vm2857_vm13 = vcmask 1043456   ;;  %vm2851_vm8 = vcmask 1047558   ;;  %vm331_vm0 = vsmask.f32 7950  ;;  %s2044_s11 = smov 95  }
  0x17   :  { %vm2280_vm5 = vmand %vm183_vm12, %vm184_vm14  ;;  %vm274_vm12 = vsmask.f32 3328  ;;  %vm2852_vm14 = vcmask 1039360   ;;  %s2045_s12 = smov 110   ;;  %s2046_s13 = smov 126  }
  0x18   :  { %vm188_vm9 = vmand %vm186_vm1, %vm187_vm4  ;;  %vm277_vm4 = vsmask.f32 7424 }
  0x19   :  { %vm2299_vm1 = vmor %vm188_vm9, %vm2280_vm5 }
  0x1a   :  { %vm2310_vm2 = vmand %vm2848_vm10, %vm274_vm12  ;;  %vm330_vm10 = vcmask 1043459  }
  0x1b   :  { %v2100_v8 = vld.sshfl [vmem:[#allocation1] sm:$0xff pattern:$0x75643120]  ;;  %v2102_v9 = vld.sshfl [vmem:[#allocation1 + $0x8] sm:$0xff pattern:$0x75643120]  ;;  %vm278_vm9 = vmand %vm2851_vm8, %vm277_vm4 }
  0x1c   :  { %128 = vst [vmem:[#allocation1] ss:$2 sm:$0xff] %v2076_v0  ;;  %v2105_v10 = vld.sshfl [vmem:[#allocation1 + $0x10] sm:$0xff pattern:$0x75643120]  ;;  %vm2324_vm12 = vmor %vm278_vm9, %vm2310_vm2  ;;  %vm2884_vm9 = vcmask 1039360  }
  0x1d   :  { %131 = vst [vmem:[#allocation1 + $0x10] ss:$2 sm:$0xff] %v126_v7  ;;  %vm334_vm4 = vsmask.f32 7966  ;;  %vm2333_vm8 = vmand %vm330_vm10, %vm331_vm0  ;;  %vm244_vm0 = vsmask.f32 7938 }
  0x1e   :  { %vm246_vm10 = vsmask.f32 7954 }
  0x23   :  { %v132_v12 = vld.sshfl [vmem:[#allocation1] sm:$0xff pattern:$0x75643120]  ;;  %v134_v13 = vld.sshfl [vmem:[#allocation1 + $0x8] sm:$0xff pattern:$0x75643120] }
  0x24   :  { %v138_v14 = vrot.slane %v132_v12, 5  ;;  %v139_v15 = vrot.slane %v134_v13, 5  ;;  %v2110_v16 = vld.sshfl [vmem:[#allocation1 + $0x10] sm:$0xff pattern:$0x75643120] }
  0x25   :  { %205 = vst [vmem:[#allocation1 + $0x10] ss:$2 sm:$0xff] %v1711_v11  ;;  %v140_v18 = vrot.slane %v2110_v16, 5  ;;  %v556_v12 = vld [vmem:[%s2842_s0 + $0x8] sm:$0xf] }
  0x26   :  { %v141_v17 = vrot.slane %v138_v14, 4  ;;  %146 = vrot.lane.b32.xlu0 %v139_v15, %s2039_s7  ;;  %202 = vst [vmem:[#allocation1] ss:$2 sm:$0xff] %v2085_v2  ;;  %144 = vrot.lane.b32.xlu2 %v138_v14, %s2039_s7  ;;  %v142_v19 = vrot.slane %v139_v15, 4 }
  0x27   :  { %v143_v21 = vrot.slane %v140_v18, 4 }
  0x28   :  { %150 = vrot.lane.b32.xlu1 %v141_v17, %s2039_s7 }
  0x2c   :  { %v2124_v22 = vld.sshfl [vmem:[#allocation1 + $0x10] sm:$0xff pattern:$0x75643120] }
  0x2d   :  { %v206_v24 = vld.sshfl [vmem:[#allocation1] sm:$0xff pattern:$0x75643120]  ;;  %v207_v25 = vld.sshfl [vmem:[#allocation1 + $0x8] sm:$0xff pattern:$0x75643120] }
  0x2e   :  { %v209_v26 = vshrl.u32 %v206_v24, 16  ;;  %v212_v27 = vshll.u32 %v206_v24, 16  ;;  %v215_v28 = vshrl.u32 %v207_v25, 16  ;;  %263 = vst [vmem:[#allocation1 + $0x1] ss:$2 sm:$0xff] %v2120_v20  ;;  %152 = vrot.lane.b32.xlu2 %v142_v19, %s2039_s7  ;;  %v218_v31 = vshll.u32 %v207_v25, 16 }
  0x2f   :  { %266 = vst [vmem:[#allocation1 + $0x11] ss:$2 sm:$0xff] %v1713_v23 }
  0x30   :  { %154 = vrot.lane.b32.xlu1 %v143_v21, %s2039_s7  ;;  %v211_v29 = vrot.slane %v209_v26, 7  ;;  %v217_v30 = vrot.slane %v215_v28, 7 }
  0x32   :  { %v214_v32 = vor.u32 %v212_v27, %v211_v29  ;;  %v220_v34 = vor.u32 %v218_v31, %v217_v30  ;;  %v1723_v30 = vld [vmem:[%s2842_s0 + $0x14] sm:$0xf] }
  0x34   :  { %227 = vrot.lane.b32.xlu0 %v214_v32, %s2039_s7 }
  0x35   :  { %v2141_v36 = vld.sshfl [vmem:[#allocation1] sm:$0xff pattern:$0x75643120]  ;;  %v2143_v37 = vld.sshfl [vmem:[#allocation1 + $0x8] sm:$0xff pattern:$0x75643120] }
  0x36   :  { %293 = vst [vmem:[#allocation1] ss:$2 sm:$0xff] %v2135_v33  ;;  %v2146_v38 = vld.sshfl [vmem:[#allocation1 + $0x10] sm:$0xff pattern:$0x75643120] }
  0x37   :  { %296 = vst [vmem:[#allocation1 + $0x10] ss:$2 sm:$0xff] %v1715_v35 }
  0x38   :  { %229 = vrot.lane.b32.xlu1 %v220_v34, %s2039_s7 }
  0x3d   :  { %v2152_v40 = vld.sshfl [vmem:[#allocation1] sm:$0xff pattern:$0x75643120]  ;;  %v2154_v41 = vld.sshfl [vmem:[#allocation1 + $0x8] sm:$0xff pattern:$0x75643120] }
  0x3e   :  { %352 = vst [vmem:[#allocation1] ss:$2 sm:$0xff] %v2120_v20  ;;  %v2157_v42 = vld.sshfl [vmem:[#allocation1 + $0x10] sm:$0xff pattern:$0x75643120] }
  0x3f   :  { %355 = vst [vmem:[#allocation1 + $0x10] ss:$2 sm:$0xff] %v1717_v39 }
  0x45   :  { %v356_v44 = vld.sshfl [vmem:[#allocation1] sm:$0xff pattern:$0x75643120]  ;;  %v358_v45 = vld.sshfl [vmem:[#allocation1 + $0x8] sm:$0xff pattern:$0x75643120] }
  0x46   :  { %v362_v46 = vrot.slane %v356_v44, 7  ;;  %v363_v47 = vrot.slane %v358_v45, 7  ;;  %399 = vst [vmem:[#allocation1] ss:$2 sm:$0xff] %v2135_v33  ;;  %v1725_v45 = vld [vmem:[%s2842_s0 + $0x20] sm:$0xf] }
  0x47   :  { %v360_v48 = vld.sshfl [vmem:[#allocation1 + $0x10] sm:$0xff pattern:$0x75643120] }
  0x48   :  { %365 = vrot.lane.b32.xlu0 %v362_v46, %s2039_s7  ;;  %367 = vrot.lane.b32.xlu1 %v363_v47, %s2039_s7  ;;  %v364_v49 = vrot.slane %v360_v48, 7  ;;  %402 = vst [vmem:[#allocation1 + $0x10] ss:$2 sm:$0xff] %v1719_v43 }
  0x4a   :  { %369 = vrot.lane.b32.xlu2 %v364_v49, %s2039_s7 }
  0x4d   :  { %v404_v51 = vld.sshfl [vmem:[#allocation1 + $0x8] sm:$0xff pattern:$0x75643120]  ;;  %v403_v52 = vld.sshfl [vmem:[#allocation1] sm:$0xff pattern:$0x75643120] }
  0x4e   :  { %v406_v53 = vshrl.u32 %v403_v52, 16  ;;  %v409_v54 = vshll.u32 %v403_v52, 16  ;;  %461 = vst [vmem:[#allocation1] ss:$2 sm:$0xff] %v2076_v0  ;;  %v413_v55 = vshrl.u32 %v404_v51, 16  ;;  %v416_v56 = vshll.u32 %v404_v51, 16 }
  0x4f   :  { %v2170_v57 = vld.sshfl [vmem:[#allocation1 + $0x10] sm:$0xff pattern:$0x75643120] }
  0x50   :  { %v408_v58 = vrot.slane %v406_v53, 5  ;;  %v411_v59 = vrot.slane %v409_v54, 6  ;;  %464 = vst [vmem:[#allocation1 + $0x10] ss:$2 sm:$0xff] %v459_v50  ;;  %v415_v60 = vrot.slane %v413_v55, 5  ;;  %v418_v61 = vrot.slane %v416_v56, 6 }
  0x51   :  { %v1727_v54 = vld [vmem:[%s2842_s0 + $0x2c] sm:$0xf] }
  0x52   :  { %v412_v62 = vor.u32 %v411_v59, %v408_v58  ;;  %v419_v63 = vor.u32 %v418_v61, %v415_v60 }
  0x54   :  { %427 = vrot.lane.b32.xlu1 %v412_v62, %s2039_s7  ;;  %429 = vrot.lane.b32.xlu2 %v419_v63, %s2039_s7  ;;  %v1729_v62 = vld [vmem:[%s2842_s0 + $0x20] sm:$0xf] }
  0x55   :  { %v465_v3 = vld.sshfl [vmem:[#allocation1] sm:$0xff pattern:$0x75643120]  ;;  %v467_v7 = vld.sshfl [vmem:[#allocation1 + $0x8] sm:$0xff pattern:$0x75643120] }
  0x56   :  { %473 = vrot.lane.b32.xlu0 %v467_v7, %s2040_s1  ;;  %501 = vst [vmem:[#allocation1] ss:$2 sm:$0xff] %v2085_v2 }
  0x57   :  { %v469_v11 = vld.sshfl [vmem:[#allocation1 + $0x10] sm:$0xff pattern:$0x75643120] }
  0x58   :  { %504 = vst [vmem:[#allocation1 + $0x10] ss:$2 sm:$0xff] %v1721_v1 }
  0x5c   :  { %471 = vrot.lane.b32.xlu2 %v465_v3, %s2040_s1 }
  0x5d   :  { %v506_v13 = vld.sshfl [vmem:[#allocation1 + $0x8] sm:$0xff pattern:$0x75643120]  ;;  %v505_v14 = vld.sshfl [vmem:[#allocation1] sm:$0xff pattern:$0x75643120] }
  0x5e   :  { %475 = vrot.lane.b32.xlu0 %v469_v11, %s2040_s1  ;;  %v515_v15 = vshrl.u32 %v506_v13, 16  ;;  %v518_v17 = vshll.u32 %v506_v13, 16  ;;  %v508_v19 = vshrl.u32 %v505_v14, 16  ;;  %v511_v21 = vshll.u32 %v505_v14, 16  ;;  %558 = vst [vmem:[#allocation1] ss:$2 sm:$0xff] %v2076_v0 }
  0x5f   :  { %v2185_v23 = vld.sshfl [vmem:[#allocation1 + $0x10] sm:$0xff pattern:$0x75643120] }
  0x60   :  { %v517_v24 = vrot.slane %v515_v15, 6  ;;  %v520_v25 = vrot.slane %v518_v17, 7  ;;  %v510_v26 = vrot.slane %v508_v19, 6  ;;  %v513_v27 = vrot.slane %v511_v21, 7  ;;  %561 = vst [vmem:[#allocation1 + $0x10] ss:$2 sm:$0xff] %v556_v12 }
  0x62   :  { %v521_v28 = vor.u32 %v520_v25, %v517_v24  ;;  %v514_v29 = vor.u32 %v513_v27, %v510_v26  ;;  %v1731_v26 = vld [vmem:[%s2842_s0 + $0x2c] sm:$0xf]  ;;  %s2042_s0 = smov 94  }
  0x64   :  { %531 = vrot.lane.b32.xlu1 %v521_v28, %s2040_s1 }
  0x65   :  { %v562_v31 = vld.sshfl [vmem:[#allocation1] sm:$0xff pattern:$0x75643120]  ;;  %v564_v32 = vld.sshfl [vmem:[#allocation1 + $0x8] sm:$0xff pattern:$0x75643120] }
  0x66   :  { %529 = vrot.lane.b32.xlu0 %v514_v29, %s2040_s1  ;;  %v568_v0 = vrot.slane %v562_v31, 5  ;;  %v569_v34 = vrot.slane %v564_v32, 5  ;;  %624 = vst [vmem:[#allocation1] ss:$2 sm:$0xff] %v2085_v2 }
  0x67   :  { %v2193_v35 = vld.sshfl [vmem:[#allocation1 + $0x10] sm:$0xff pattern:$0x75643120] }
  0x68   :  { %576 = vrot.lane.b32.xlu2 %v569_v34, %s2041_s27  ;;  %v570_v39 = vrot.slane %v2193_v35, 5  ;;  %627 = vst [vmem:[#allocation1 + $0x10] ss:$2 sm:$0xff] %v1723_v30  ;;  %v571_v43 = vrot.slane %v568_v0, 4  ;;  %v572_v52 = vrot.slane %v569_v34, 4  ;;  %v85_v34 = vshrl.u32 %v2100_v8, 16 }
  0x6a   :  { %v573_v44 = vrot.slane %v570_v39, 4 }
  0x6c   :  { %574 = vrot.lane.b32.xlu1 %v568_v0, %s2041_s27  ;;  %v283_v0 = vld [vmem:[#allocation2 + $0x1c] sm:$0xcc] }
  0x6d   :  { %v628_v46 = vld.sshfl [vmem:[#allocation1] sm:$0xff pattern:$0x75643120]  ;;  %v629_v2 = vld.sshfl [vmem:[#allocation1 + $0x8] sm:$0xff pattern:$0x75643120] }
  0x6e   :  { %580 = vrot.lane.b32.xlu0 %v571_v43, %s2041_s27  ;;  %679 = vst [vmem:[#allocation1 + $0x1] ss:$2 sm:$0xff] %v2120_v20  ;;  %v637_v47 = vshrl.u32 %v629_v2, 16  ;;  %v640_v48 = vshll.u32 %v629_v2, 16  ;;  %v631_v53 = vshrl.u32 %v628_v46, 16  ;;  %v634_v59 = vshll.u32 %v628_v46, 16 }
  0x6f   :  { %v2205_v49 = vld.sshfl [vmem:[#allocation1 + $0x10] sm:$0xff pattern:$0x75643120]  ;;  %v88_v43 = vshll.u32 %v2100_v8, 16 }
  0x70   :  { %v639_v50 = vrot.slane %v637_v47, 7  ;;  %584 = vrot.lane.b32.xlu2 %v573_v44, %s2041_s27  ;;  %682 = vst [vmem:[#allocation1 + $0x11] ss:$2 sm:$0xff] %v1725_v45  ;;  %v633_v58 = vrot.slane %v631_v53, 7 }
  0x72   :  { %v642_v51 = vor.u32 %v640_v48, %v639_v50  ;;  %v636_v61 = vor.u32 %v634_v59, %v633_v58 }
  0x74   :  { %651 = vrot.lane.b32.xlu1 %v642_v51, %s2041_s27 }
  0x75   :  { %v685_v55 = vld.sshfl [vmem:[#allocation1 + $0x8] sm:$0xff pattern:$0x75643120]  ;;  %v683_v56 = vld.sshfl [vmem:[#allocation1] sm:$0xff pattern:$0x75643120] }
  0x76   :  { %582 = vrot.lane.b32.xlu0 %v572_v52, %s2041_s27  ;;  %718 = vst [vmem:[#allocation1] ss:$2 sm:$0xff] %v2135_v33 }
  0x77   :  { %v687_v60 = vld.sshfl [vmem:[#allocation1 + $0x10] sm:$0xff pattern:$0x75643120] }
  0x78   :  { %721 = vst [vmem:[#allocation1 + $0x10] ss:$2 sm:$0xff] %v1727_v54 }
  0x7c   :  { %689 = vrot.lane.b32.xlu1 %v683_v56, %s2040_s1 }
  0x7d   :  { %v722_v63 = vld.sshfl [vmem:[#allocation1] sm:$0xff pattern:$0x75643120]  ;;  %v723_v1 = vld.sshfl [vmem:[#allocation1 + $0x8] sm:$0xff pattern:$0x75643120] }
  0x7e   :  { %649 = vrot.lane.b32.xlu0 %v636_v61, %s2041_s27  ;;  %v725_v3 = vshll.u32 %v722_v63, 16  ;;  %v728_v7 = vshll.u32 %v723_v1, 16  ;;  %v739_v11 = vshrl.u32 %v723_v1, 16  ;;  %v734_v12 = vshrl.u32 %v722_v63, 16  ;;  %798 = vst [vmem:[#allocation1] ss:$2 sm:$0xff] %v2120_v20 }
  0x7f   :  { %v2220_v13 = vld.sshfl [vmem:[#allocation1 + $0x10] sm:$0xff pattern:$0x75643120]  ;;  %v87_v63 = vrot.slane %v85_v34, 6  ;;  %v90_v1 = vrot.slane %v88_v43, 7 }
  0x80   :  { %v727_v14 = vrot.slane %v725_v3, 5  ;;  %v730_v15 = vrot.slane %v728_v7, 5  ;;  %v741_v17 = vrot.slane %v739_v11, 4  ;;  %v736_v19 = vrot.slane %v734_v12, 4  ;;  %801 = vst [vmem:[#allocation1 + $0x10] ss:$2 sm:$0xff] %v1729_v62  ;;  %v2231_v32 = vpop.permute.xlu2 %144 }
  0x81   :  { %v2868_v62 = vmov 0  ;;  %v643_v3 = vshrl.u32 %v2205_v49, 16  ;;  %v522_v7 = vshrl.u32 %v2185_v23, 16 }
  0x82   :  { %v1926_v21 = vpack.i.bf16 %v730_v15, %v727_v14  ;;  %v742_v24 = vor.u32 %v741_v17, %v730_v15  ;;  %v737_v25 = vor.u32 %v736_v19, %v727_v14  ;;  %v2869_v62 = vsel %vm2254_vm11, 4294967295, %v2868_v62 }
  0x83   :  { %v91_v14 = vor.u32 %v90_v1, %v87_v63  ;;  %v156_v19 = vrot.slane %v2231_v32, 4  ;;  %v300_v63 = vshll.u32 %v2152_v40, 16 }
  0x84   :  { %1927 = vrot.lane.b32.xlu2 %v1926_v21, %s2040_s1  ;;  %691 = vrot.lane.b32.xlu1 %v685_v55, %s2040_s1  ;;  %v743_v29 = vrot.slane %v742_v24, 4  ;;  %v738_v30 = vrot.slane %v737_v25, 4  ;;  %v646_v21 = vshll.u32 %v2205_v49, 16  ;;  %v525_v24 = vshll.u32 %v2185_v23, 16 }
  0x85   :  { %v802_v27 = vld.sshfl [vmem:[#allocation1] sm:$0xff pattern:$0x75643120]  ;;  %v2227_v20 = vld.sshfl [vmem:[#allocation1 + $0x8] sm:$0xff pattern:$0x75643120] }
  0x86   :  { %693 = vrot.lane.b32.xlu0 %v687_v60, %s2040_s1  ;;  %840 = vst [vmem:[#allocation1] ss:$2 sm:$0xff] %v2135_v33  ;;  %v65_v33 = vld [vmem:[#allocation2] sm:$0x33]  ;;  %v808_v51 = vrot.slane %v802_v27, 7  ;;  %v524_v27 = vrot.slane %v522_v7, 6 }
  0x87   :  { %v806_v28 = vld.sshfl [vmem:[#allocation1 + $0x10] sm:$0xff pattern:$0x75643120]  ;;  %v66_v8 = vsel %vm2246_vm6, %v2090_v4, %v65_v33  ;;  %v731_v4 = vshll.u32 %v2220_v13, 16  ;;  %v2880_v7 = vmov 0 }
  0x88   :  { %843 = vst [vmem:[#allocation1 + $0x10] ss:$2 sm:$0xff] %v1731_v26  ;;  %v810_v31 = vrot.slane %v806_v28, 7  ;;  %v2264_v15 = vpop.permute.xlu2 %152  ;;  %v645_v26 = vrot.slane %v643_v3, 7  ;;  %v420_v28 = vshrl.u32 %v2170_v57, 16  ;;  %v221_v3 = vshrl.u32 %v2124_v22, 16 }
  0x89   :  { %67 = vst [vmem:[#allocation2] sm:$0x33] %v66_v8  ;;  %v2276_v25 = vrot.slane %v731_v4, 5  ;;  %v160_v34 = vrot.slane %v2264_v15, 4  ;;  %v2881_v7 = vsel %vm2333_vm8, 4294967295, %v2880_v7 }
  0x8c   :  { %757 = vrot.lane.b32.xlu2 %v743_v29, %s2040_s1  ;;  %755 = vrot.lane.b32.xlu1 %v738_v30, %s2040_s1 }
  0x8d   :  { %v845_v44 = vld.sshfl [vmem:[#allocation1 + $0x8] sm:$0xff pattern:$0x75643120]  ;;  %v844_v45 = vld.sshfl [vmem:[#allocation1] sm:$0xff pattern:$0x75643120] }
  0x8e   :  { %815 = vrot.lane.b32.xlu0 %v810_v31, %s2041_s27  ;;  %v854_v46 = vshrl.u32 %v845_v44, 16  ;;  %v857_v2 = vshll.u32 %v845_v44, 16  ;;  %v847_v47 = vshrl.u32 %v844_v45, 16  ;;  %v850_v48 = vshll.u32 %v844_v45, 16 }
  0x8f   :  { %v846_v52 = vld.sshfl [vmem:[#allocation1 + $0x10] sm:$0xff pattern:$0x75643120]  ;;  %v809_v31 = vrot.slane %v2227_v20, 7  ;;  %v527_v45 = vrot.slane %v525_v24, 7  ;;  %v423_v20 = vshll.u32 %v2170_v57, 16 }
  0x90   :  { %v856_v53 = vrot.slane %v854_v46, 5  ;;  %v859_v54 = vrot.slane %v857_v2, 6  ;;  %v849_v55 = vrot.slane %v847_v47, 5  ;;  %v852_v56 = vrot.slane %v850_v48, 6  ;;  %v116_v30 = vld [vmem:[#allocation2] sm:$0x66] }
  0x91   :  { %v861_v58 = vshrl.u32 %v846_v52, 16  ;;  %v864_v59 = vshll.u32 %v846_v52, 16  ;;  %v117_v23 = vsel %vm2268_vm15, %v91_v14, %v116_v30  ;;  %v744_v48 = vshrl.u32 %v2220_v13, 16  ;;  %v193_v24 = vld [vmem:[#allocation2 + $0x1c] sm:$0x11] }
  0x92   :  { %v860_v60 = vor.u32 %v859_v54, %v856_v53  ;;  %v853_v61 = vor.u32 %v852_v56, %v849_v55  ;;  %118 = vst [vmem:[#allocation2] sm:$0x66] %v117_v23  ;;  %v2876_v52 = vmov 0  ;;  %v280_v53 = vld [vmem:[#allocation2 + $0x14] sm:$0xcc]  ;;  %v648_v54 = vor.u32 %v646_v21, %v645_v26 }
  0x93   :  { %v863_v11 = vrot.slane %v861_v58, 5  ;;  %v866_v12 = vrot.slane %v864_v59, 6  ;;  %v2877_v52 = vsel %vm2310_vm2, 4294967295, %v2876_v52  ;;  %v422_v55 = vrot.slane %v420_v28, 5  ;;  %v393_v28 = vld [vmem:[#allocation2 + $0x38] sm:$0x6] }
  0x94   :  { %811 = vrot.lane.b32.xlu2 %v808_v51, %s2041_s27  ;;  %870 = vrot.lane.b32.xlu1 %v860_v60, %s2041_s27  ;;  %v190_v51 = vld [vmem:[#allocation2 + $0x14] sm:$0x11]  ;;  %v425_v56 = vrot.slane %v423_v20, 6  ;;  %v528_v13 = vor.u32 %v527_v45, %v524_v27  ;;  %v2878_v59 = vmov 0  ;;  %v746_v60 = vrot.slane %v744_v48, 4 }
  0x95   :  { %v867_v33 = vor.u32 %v866_v12, %v863_v11  ;;  %v2879_v59 = vsel %vm2324_vm12, 4294967295, %v2878_v59  ;;  %v196_v11 = vld [vmem:[#allocation2 + $0x24] sm:$0x1]  ;;  %v224_v14 = vshll.u32 %v2124_v22, 16  ;;  %vm2885_vm2 = vsmask.f32 2304 }
  0x96   :  { %868 = vrot.lane.b32.xlu0 %v853_v61, %s2041_s27  ;;  %v281_v61 = vsel %vm2324_vm12, %v2141_v36, %v280_v53  ;;  %v426_v1 = vor.u32 %v425_v56, %v422_v55  ;;  %v2887_v22 = vmov 0  ;;  %vm2889_vm12 = vmmov %vm2884_vm9  ;;  %v306_v47 = vshll.u32 %v2157_v42, 16 }
  0x97   :  { %282 = vst [vmem:[#allocation2 + $0x14] sm:$0xcc] %v281_v61 }
  0x98   :  { %v2286_v49 = vpop.permute.xlu0 %146 }
  0x99   :  { %v157_v43 = vrot.slane %v2286_v49, 4 }
  0x9a   :  { %v151_v44 = vpop.permute.xlu1 %150 }
  0x9b   :  { %v159_v46 = vrot.slane %v151_v44, 4  ;;  %v163_v2 = vsel %vm2857_vm13, %v156_v19, %v157_v43  ;;  %v747_v19 = vor.u32 %v746_v60, %v2276_v25 }
  0x9c   :  { %813 = vrot.lane.b32.xlu2 %v809_v31, %s2041_s27  ;;  %872 = vrot.lane.b32.xlu1 %v867_v33, %s2041_s27  ;;  %v165_v57 = vsel %vm2852_vm14, %v2231_v32, %v163_v2  ;;  %v302_v31 = vrot.slane %v300_v63, 5 }
  0x9d   :  { %v169_v8 = vsel %vm2857_vm13, %v159_v46, %v160_v34  ;;  %180 = vst [vmem:[#allocation2] sm:$0x88] %v165_v57  ;;  %v748_v46 = vrot.slane %v747_v19, 4 }
  0x9e   :  { %753 = vrot.lane.b32.xlu0 %v2276_v25, %s2040_s1  ;;  %v170_v32 = vsel %vm2852_vm14, %v151_v44, %v169_v8  ;;  %vm2338_vm14 = vmand %vm333_vm7, %vm334_vm4  ;;  %vm2886_vm7 = vcmask 1042433   ;;  %v309_v44 = vshrl.u32 %v2152_v40, 16  ;;  %v2894_v40 = vmov 0  ;;  %v337_v48 = vld [vmem:[#allocation2 + $0x14] sm:$0x88] }
  0x9f   :  { %v191_v58 = vsel %vm2299_vm1, %v170_v32, %v190_v51  ;;  %vm2351_vm4 = vmand %vm2886_vm7, %vm2885_vm2 }
  0xa0   :  { %192 = vst [vmem:[#allocation2 + $0x14] sm:$0x11] %v191_v58  ;;  %v2888_v22 = vsel %vm2351_vm4, 4294967295, %v2887_v22  ;;  %vm2366_vm2 = vmor %vm2338_vm14, %vm2333_vm8  ;;  %vm2896_vm14 = vcmask 1045508   ;;  %v311_v57 = vrot.slane %v309_v44, 4  ;;  %vm2915_vm8 = vcmask 1039360  }
  0xa1   :  { %v338_v8 = vsel %vm2366_vm2, %v302_v31, %v337_v48  ;;  %v71_v58 = vld [vmem:[#allocation2 + $0x10] sm:$0x3] }
  0xa2   :  { %v155_v4 = vpop.permute.xlu1 %154  ;;  %v312_v55 = vor.u32 %v311_v57, %v302_v31  ;;  %339 = vst [vmem:[#allocation2 + $0x14] sm:$0x88] %v338_v8 }
  0xa3   :  { %v161_v12 = vrot.slane %v155_v4, 4 }
  0xa4   :  { %653 = vrot.lane.b32.xlu2 %v648_v54, %s2041_s27  ;;  %533 = vrot.lane.b32.xlu1 %v528_v13, %s2040_s1  ;;  %v2345_v21 = vpop.permute.xlu2 %369  ;;  %v68_v13 = vld [vmem:[#allocation2 + $0x8] sm:$0x33] }
  0xa5   :  { %v171_v26 = vsel %vm2857_vm13, %v160_v34, %v161_v12  ;;  %v173_v27 = vsel %vm2884_vm9, %v155_v4, %v161_v12  ;;  %v373_v30 = vrot.slane %v2345_v21, 4  ;;  %v223_v34 = vrot.slane %v221_v3, 7  ;;  %vm247_vm13 = vmand %vm2896_vm14, %vm246_vm10 }
  0xa6   :  { %431 = vrot.lane.b32.xlu0 %v426_v1, %s2039_s7  ;;  %v172_v25 = vsel %vm2889_vm12, %v2264_v15, %v171_v26  ;;  %v197_v33 = vsel %vm2280_vm5, %v173_v27, %v196_v11  ;;  %v228_v23 = vpop.permute.xlu0 %227  ;;  %vm2892_vm12 = vmmov %vm2884_vm9  ;;  %vm2893_vm9 = vcmask 1041408   ;;  %vm2899_vm10 = vcmask 1043456  }
  0xa7   :  { %198 = vst [vmem:[#allocation2 + $0x24] sm:$0x1] %v197_v33  ;;  %v378_v15 = vsel %vm2892_vm12, %v2345_v21, %v373_v30  ;;  %v194_v20 = vsel %vm2299_vm1, %v172_v25, %v193_v24  ;;  %vm2378_vm7 = vmand %vm2893_vm9, %vm244_vm0  ;;  %v233_v51 = vrot.slane %v228_v23, 4  ;;  %v226_v53 = vor.u32 %v224_v14, %v223_v34  ;;  %v249_v60 = vld [vmem:[#allocation2 + $0x14] sm:$0x33] }
  0xa8   :  { %v2895_v40 = vsel %vm2378_vm7, 4294967295, %v2894_v40  ;;  %v394_v2 = vsel %vm2351_vm4, %v378_v15, %v393_v28  ;;  %195 = vst [vmem:[#allocation2 + $0x1c] sm:$0x11] %v194_v20  ;;  %vm2393_vm0 = vmor %vm247_vm13, %vm2378_vm7  ;;  %v69_v63 = vsel %vm2246_vm6, %v2092_v5, %v68_v13  ;;  %v72_v1 = vsel %vm2236_vm3, %v2095_v6, %v71_v58  ;;  %v390_v34 = vld [vmem:[#allocation2 + $0x30] sm:$0x66] }
  0xa9   :  { %395 = vst [vmem:[#allocation2 + $0x38] sm:$0x6] %v394_v2  ;;  %v313_v4 = vrot.slane %v312_v55, 4  ;;  %vm2900_vm13 = vmmov %vm2892_vm12  ;;  %vm384_vm12 = vsmask.f32 6400  ;;  %v92_v5 = vshrl.u32 %v2102_v9, 16 }
  0xaa   :  { %v2388_v54 = vpop.permute.xlu1 %229  ;;  %70 = vst [vmem:[#allocation2 + $0x8] sm:$0x33] %v69_v63  ;;  %v95_v6 = vshll.u32 %v2102_v9, 16  ;;  %v99_v11 = vshrl.u32 %v2105_v10, 16  ;;  %v102_v14 = vshll.u32 %v2105_v10, 16  ;;  %vm2901_vm9 = vcmask 1046533  }
  0xab   :  { %v234_v56 = vrot.slane %v2388_v54, 4  ;;  %73 = vst [vmem:[#allocation2 + $0x10] sm:$0x3] %v72_v1  ;;  %vm385_vm14 = vmand %vm2901_vm9, %vm384_vm12  ;;  %v94_v36 = vrot.slane %v92_v5, 6  ;;  %v387_v10 = vld [vmem:[#allocation2 + $0x28] sm:$0x66] }
  0xac   :  { %759 = vrot.lane.b32.xlu2 %v748_v46, %s2040_s1  ;;  %148 = vrot.lane.b32.xlu1 %v140_v18, %s2039_s7  ;;  %346 = vst [vmem:[#allocation2 + $0x28] sm:$0x11] %v313_v4  ;;  %v97_v19 = vrot.slane %v95_v6, 7  ;;  %v101_v24 = vrot.slane %v99_v11, 6  ;;  %v104_v28 = vrot.slane %v102_v14, 7  ;;  %vm2906_vm9 = vcmask 1039360  }
  0xad   :  { %v236_v61 = vsel %vm2899_vm10, %v233_v51, %v234_v56  ;;  %vm2426_vm10 = vmor %vm385_vm14, %vm2351_vm4  ;;  %vm444_vm14 = vsmask.f32 7946  ;;  %v618_v11 = vld [vmem:[#allocation2 + $0x60] sm:$0x1] }
  0xae   :  { %231 = vrot.lane.b32.xlu0 %v226_v53, %s2039_s7  ;;  %v237_v16 = vsel %vm2900_vm13, %v228_v23, %v236_v61  ;;  %v2412_v18 = vpop.permute.xlu2 %429  ;;  %v98_v25 = vor.u32 %v97_v19, %v94_v36  ;;  %v105_v23 = vor.u32 %v104_v28, %v101_v24  ;;  %vm2904_vm13 = vcmask 1043456   ;;  %vm2907_vm7 = vmmov %vm2906_vm9  ;;  %v495_v28 = vld [vmem:[#allocation2 + $0x4c] sm:$0x3] }
  0xaf   :  { %v250_v3 = vsel %vm2393_vm0, %v237_v16, %v249_v60  ;;  %vm2905_vm12 = vmmov %vm2904_vm13  ;;  %v434_v8 = vrot.slane %v2412_v18, 4  ;;  %v489_v16 = vld [vmem:[#allocation2 + $0x3c] sm:$0x33] }
  0xb0   :  { %251 = vst [vmem:[#allocation2 + $0x14] sm:$0x33] %v250_v3 }
  0xb1   :  { %v119_v35 = vld [vmem:[#allocation2 + $0x8] sm:$0x66] }
  0xb2   :  { %v122_v33 = vld [vmem:[#allocation2 + $0x10] sm:$0x6]  ;;  %v120_v20 = vsel %vm2268_vm15, %v98_v25, %v119_v35 }
  0xb3   :  { %121 = vst [vmem:[#allocation2 + $0x8] sm:$0x66] %v120_v20  ;;  %v123_v57 = vsel %vm2254_vm11, %v105_v23, %v122_v33 }
  0xb4   :  { %578 = vrot.lane.b32.xlu2 %v570_v39, %s2041_s27  ;;  %124 = vst [vmem:[#allocation2 + $0x10] sm:$0x6] %v123_v57 }
  0xb6   :  { %v472_v12 = vpop.permute.xlu2 %471 }
  0xb7   :  { %v477_v55 = vrot.slane %v472_v12, 4 }
  0xba   :  { %v366_v26 = vpop.permute.xlu0 %365  ;;  %v368_v27 = vpop.permute.xlu1 %367 }
  0xbb   :  { %v371_v39 = vrot.slane %v366_v26, 4  ;;  %v372_v31 = vrot.slane %v368_v27, 4 }
  0xbd   :  { %v374_v44 = vsel %vm2904_vm13, %v371_v39, %v372_v31  ;;  %v376_v15 = vsel %vm2905_vm12, %v372_v31, %v373_v30  ;;  %vm446_vm13 = vsmask.f32 7962  ;;  %vm2908_vm12 = vcmask 1043458   ;;  %v492_v39 = vld [vmem:[#allocation2 + $0x44] sm:$0x33] }
  0xbe   :  { %v375_v46 = vsel %vm2906_vm9, %v366_v26, %v374_v44  ;;  %v377_v2 = vsel %vm2907_vm7, %v368_v27, %v376_v15  ;;  %vm2447_vm9 = vmand %vm2908_vm12, %vm444_vm14  ;;  %vm2911_vm7 = vcmask 1047558   ;;  %vm2914_vm14 = vcmask 1043456  }
  0xbf   :  { %v388_v48 = vsel %vm2426_vm10, %v375_v46, %v387_v10  ;;  %v391_v51 = vsel %vm2426_vm10, %v377_v2, %v390_v34  ;;  %vm447_vm11 = vmand %vm2911_vm7, %vm446_vm13  ;;  %vm481_vm12 = vcmask 916480   ;;  %vm593_vm13 = vcmask 908288   ;;  %v286_v2 = vld [vmem:[#allocation2 + $0x24] sm:$0xc] }
  0xc0   :  { %389 = vst [vmem:[#allocation2 + $0x28] sm:$0x66] %v388_v48  ;;  %vm2455_vm4 = vmor %vm447_vm11, %vm2447_vm9 }
  0xc1   :  { %392 = vst [vmem:[#allocation2 + $0x30] sm:$0x66] %v391_v51  ;;  %vm2916_vm11 = vmmov %vm2914_vm14 }
  0xc2   :  { %v2444_v21 = vpop.permute.xlu2 %576 }
  0xc6   :  { %v428_v53 = vpop.permute.xlu1 %427 }
  0xc7   :  { %v433_v13 = vrot.slane %v428_v53, 4  ;;  %v449_v60 = vld [vmem:[#allocation2 + $0x28] sm:$0xcc] }
  0xc8   :  { %v474_v61 = vpop.permute.xlu0 %473 }
  0xc9   :  { %v436_v63 = vsel %vm2914_vm14, %v433_v13, %v434_v8  ;;  %v478_v1 = vrot.slane %v474_v61, 4 }
  0xca   :  { %v437_v4 = vsel %vm2915_vm8, %v428_v53, %v436_v63  ;;  %v585_v3 = vpop.permute.xlu2 %584  ;;  %vm2917_vm8 = vmmov %vm2916_vm11 }
  0xcb   :  { %v450_v5 = vsel %vm2455_vm4, %v437_v4, %v449_v60  ;;  %v480_v6 = vsel %vm2916_vm11, %v477_v55, %v478_v1  ;;  %v591_v14 = vrot.slane %v585_v3, 4  ;;  %v587_v55 = vrot.slane %v2444_v21, 4 }
  0xcc   :  { %451 = vst [vmem:[#allocation2 + $0x28] sm:$0xcc] %v450_v5  ;;  %v482_v36 = vsel %vm481_vm12, %v472_v12, %v480_v6  ;;  %v615_v5 = vld [vmem:[#allocation2 + $0x58] sm:$0x11] }
  0xcd   :  { %v490_v19 = vsel %vm2246_vm6, %v482_v36, %v489_v16  ;;  %v602_v24 = vsel %vm593_vm13, %v585_v3, %v591_v14  ;;  %v612_v3 = vld [vmem:[#allocation2 + $0x50] sm:$0x11] }
  0xce   :  { %491 = vst [vmem:[#allocation2 + $0x3c] sm:$0x33] %v490_v19  ;;  %v619_v26 = vsel %vm2280_vm5, %v602_v24, %v618_v11  ;;  %vm2918_vm5 = vmmov %vm2917_vm8 }
  0xcf   :  { %620 = vst [vmem:[#allocation2 + $0x60] sm:$0x1] %v619_v26  ;;  %vm2921_vm7 = vmmov %vm2918_vm5 }
  0xd0   :  { %v476_v27 = vpop.permute.xlu0 %475  ;;  %vm2922_vm14 = vmmov %vm2918_vm5 }
  0xd1   :  { %v479_v35 = vrot.slane %v476_v27, 4  ;;  %vm2923_vm11 = vmmov %vm2918_vm5 }
  0xd3   :  { %v483_v31 = vsel %vm2917_vm8, %v478_v1, %v479_v35  ;;  %v485_v25 = vsel %vm481_vm12, %v476_v27, %v479_v35  ;;  %vm2924_vm8 = vmmov %vm2918_vm5 }
  0xd4   :  { %v484_v12 = vsel %vm481_vm12, %v474_v61, %v483_v31  ;;  %v496_v33 = vsel %vm2236_vm3, %v485_v25, %v495_v28  ;;  %vm2919_vm3 = vnez %v2879_v59 }
  0xd5   :  { %v493_v10 = vsel %vm2246_vm6, %v484_v12, %v492_v39  ;;  %497 = vst [vmem:[#allocation2 + $0x4c] sm:$0x3] %v496_v33  ;;  %v546_v46 = vld [vmem:[#allocation2 + $0x3c] sm:$0x66]  ;;  %v284_v57 = vsel %vm2919_vm3, %v2143_v37, %v283_v0  ;;  %vm2920_vm6 = vnez %v2877_v52 }
  0xd6   :  { %494 = vst [vmem:[#allocation2 + $0x44] sm:$0x33] %v493_v10  ;;  %v2479_v29 = vpop.permute.xlu1 %531  ;;  %v287_v48 = vsel %vm2920_vm6, %v2146_v38, %v286_v2  ;;  %v303_v10 = vshll.u32 %v2154_v41, 16 }
  0xd7   :  { %v536_v34 = vrot.slane %v2479_v29, 4  ;;  %285 = vst [vmem:[#allocation2 + $0x1c] sm:$0xcc] %v284_v57 }
  0xd8   :  { %v530_v23 = vpop.permute.xlu0 %529  ;;  %288 = vst [vmem:[#allocation2 + $0x24] sm:$0xc] %v287_v48  ;;  %v305_v48 = vrot.slane %v303_v10, 5 }
  0xd9   :  { %v535_v44 = vrot.slane %v530_v23, 4 }
  0xdb   :  { %v538_v15 = vsel %vm2918_vm5, %v535_v44, %v536_v34  ;;  %v319_v44 = vshrl.u32 %v2157_v42, 16  ;;  %v706_v42 = vld [vmem:[#allocation2 + $0x50] sm:$0xcc] }
  0xdc   :  { %v539_v20 = vsel %vm481_vm12, %v530_v23, %v538_v15  ;;  %v314_v23 = vshrl.u32 %v2154_v41, 16 }
  0xdd   :  { %v547_v50 = vsel %vm2268_vm15, %v539_v20, %v546_v46 }
  0xde   :  { %548 = vst [vmem:[#allocation2 + $0x3c] sm:$0x66] %v547_v50  ;;  %v2494_v51 = vpop.permute.xlu2 %1927  ;;  %v575_v53 = vpop.permute.xlu1 %574  ;;  %v340_v2 = vld [vmem:[#allocation2 + $0x1c] sm:$0x88] }
  0xdf   :  { %v586_v13 = vrot.slane %v575_v53, 4  ;;  %v1929_v41 = vunpack.i.l.bf16 %v2494_v51 }
  0xe0   :  { %v581_v60 = vpop.permute.xlu0 %580 }
  0xe1   :  { %v592_v61 = vsel %vm2921_vm7, %v586_v13, %v587_v55  ;;  %v589_v4 = vrot.slane %v581_v60, 4  ;;  %v1930_v13 = vunpack.i.h.bf16 %v2494_v51  ;;  %v1754_v51 = vld [vmem:[#allocation2 + $0x28] sm:$0xf] }
  0xe2   :  { %v594_v37 = vsel %vm593_vm13, %v575_v53, %v592_v61  ;;  %v308_v53 = vrot.slane %v306_v47, 5 }
  0xe3   :  { %609 = vst [vmem:[#allocation2 + $0x3c] sm:$0x88] %v594_v37  ;;  %v316_v37 = vrot.slane %v314_v23, 4 }
  0xe6   :  { %v2501_v63 = vpop.permute.xlu2 %757  ;;  %v2503_v38 = vpop.permute.xlu1 %651 }
  0xe7   :  { %v656_v39 = vrot.slane %v2503_v38, 4 }
  0xe8   :  { %v583_v1 = vpop.permute.xlu0 %582 }
  0xe9   :  { %v590_v16 = vrot.slane %v583_v1, 4 }
  0xeb   :  { %v598_v6 = vsel %vm2922_vm14, %v589_v4, %v590_v16  ;;  %v600_v11 = vsel %vm2923_vm11, %v590_v16, %v591_v14  ;;  %vm2928_vm14 = vnez %v2881_v7 }
  0xec   :  { %v599_v36 = vsel %vm593_vm13, %v581_v60, %v598_v6  ;;  %v601_v19 = vsel %vm593_vm13, %v583_v1, %v600_v11  ;;  %v828_v60 = vld [vmem:[#allocation2 + $0x64] sm:$0x66]  ;;  %v321_v1 = vrot.slane %v319_v44, 4  ;;  %v341_v6 = vsel %vm2366_vm2, %v305_v48, %v340_v2 }
  0xed   :  { %v613_v24 = vsel %vm2299_vm1, %v599_v36, %v612_v3  ;;  %v616_v26 = vsel %vm2299_vm1, %v601_v19, %v615_v5  ;;  %vm2925_vm1 = vmmov %vm2918_vm5  ;;  %v712_v3 = vld [vmem:[#allocation2 + $0x60] sm:$0xc]  ;;  %v709_v19 = vld [vmem:[#allocation2 + $0x58] sm:$0xcc]  ;;  %342 = vst [vmem:[#allocation2 + $0x1c] sm:$0x88] %v341_v6 }
  0xee   :  { %614 = vst [vmem:[#allocation2 + $0x50] sm:$0x11] %v613_v24  ;;  %v812_v27 = vpop.permute.xlu2 %811  ;;  %v690_v28 = vpop.permute.xlu1 %689  ;;  %vm2926_vm5 = vmmov %vm2925_vm1  ;;  %v317_v24 = vor.u32 %v316_v37, %v305_v48  ;;  %v834_v37 = vld [vmem:[#allocation2 + $0x74] sm:$0x6]  ;;  %v831_v6 = vld [vmem:[#allocation2 + $0x6c] sm:$0x66] }
  0xef   :  { %617 = vst [vmem:[#allocation2 + $0x58] sm:$0x11] %v616_v26  ;;  %v817_v25 = vrot.slane %v812_v27, 4  ;;  %v695_v15 = vrot.slane %v690_v28, 4  ;;  %v322_v26 = vor.u32 %v321_v1, %v308_v53  ;;  %vm2927_vm7 = vmmov %vm2925_vm1 }
  0xf0   :  { %v650_v35 = vpop.permute.xlu0 %649  ;;  %v318_v23 = vrot.slane %v317_v24, 4  ;;  %vm2929_vm11 = vmmov %vm2925_vm1 }
  0xf1   :  { %v655_v31 = vrot.slane %v650_v35, 4  ;;  %v323_v2 = vrot.slane %v322_v26, 4 }
  0xf2   :  { %347 = vst [vmem:[#allocation2 + $0x30] sm:$0x11] %v318_v23 }
  0xf3   :  { %v658_v14 = vsel %vm2924_vm8, %v655_v31, %v656_v39  ;;  %vm2932_vm8 = vnez %v2895_v40  ;;  %348 = vst [vmem:[#allocation2 + $0x38] sm:$0x1] %v323_v2 }
  0xf4   :  { %v659_v12 = vsel %vm593_vm13, %v650_v35, %v658_v14  ;;  %v343_v35 = vld [vmem:[#allocation2 + $0x24] sm:$0x8] }
  0xf5   :  { %v666_v33 = vld [vmem:[#allocation2 + $0x50] sm:$0x33]  ;;  %v344_v44 = vsel %vm2928_vm14, %v308_v53, %v343_v35 }
  0xf6   :  { %v667_v20 = vsel %vm2393_vm0, %v659_v12, %v666_v33  ;;  %v2524_v46 = vpop.permute.xlu2 %813  ;;  %v692_v0 = vpop.permute.xlu1 %691  ;;  %345 = vst [vmem:[#allocation2 + $0x24] sm:$0x8] %v344_v44 }
  0xf7   :  { %668 = vst [vmem:[#allocation2 + $0x50] sm:$0x33] %v667_v20  ;;  %v818_v50 = vrot.slane %v2524_v46, 4  ;;  %v696_v57 = vrot.slane %v692_v0, 4 }
  0xf8   :  { %v694_v61 = vpop.permute.xlu0 %693 }
  0xf9   :  { %v820_v4 = vsel %vm2925_vm1, %v817_v25, %v818_v50  ;;  %v698_v16 = vsel %vm2926_vm5, %v695_v15, %v696_v57  ;;  %v697_v5 = vrot.slane %v694_v61, 4  ;;  %vm2933_vm5 = vnez %v2888_v22 }
  0xfa   :  { %v821_v11 = vsel %vm593_vm13, %v812_v27, %v820_v4  ;;  %v699_v36 = vsel %vm481_vm12, %v690_v28, %v698_v16  ;;  %v2545_v27 = vrot.slane %v1930_v13, 4  ;;  %v761_v28 = vrot.slane %v1929_v41, 4  ;;  %v669_v4 = vld [vmem:[#allocation2 + $0x58] sm:$0x33] }
  0xfb   :  { %v829_v31 = vsel %vm2426_vm10, %v821_v11, %v828_v60  ;;  %v700_v14 = vsel %vm2927_vm7, %v696_v57, %v697_v5  ;;  %v702_v25 = vsel %vm481_vm12, %v694_v61, %v697_v5  ;;  %v707_v12 = vsel %vm2919_vm3, %v699_v36, %v706_v42  ;;  %v672_v60 = vld [vmem:[#allocation2 + $0x60] sm:$0x3]  ;;  %vm2934_vm7 = vmmov %vm2925_vm1 }
  0xfc   :  { %830 = vst [vmem:[#allocation2 + $0x64] sm:$0x66] %v829_v31  ;;  %v701_v33 = vsel %vm481_vm12, %v692_v0, %v700_v14  ;;  %v713_v10 = vsel %vm2920_vm6, %v702_v25, %v712_v3  ;;  %v765_v57 = vrot.slane %v2501_v63, 4  ;;  %v767_v52 = vsel %vm2929_vm11, %v761_v28, %v2545_v27  ;;  %vm2931_vm6 = vmmov %vm2925_vm1 }
  0xfd   :  { %708 = vst [vmem:[#allocation2 + $0x50] sm:$0xcc] %v707_v12  ;;  %v710_v47 = vsel %vm2919_vm3, %v701_v33, %v709_v19  ;;  %vm2930_vm3 = vmmov %vm2925_vm1  ;;  %v768_v19 = vsel %vm481_vm12, %v1929_v41, %v767_v52 }
  0xfe   :  { %711 = vst [vmem:[#allocation2 + $0x58] sm:$0xcc] %v710_v47  ;;  %v654_v15 = vpop.permute.xlu2 %653  ;;  %v756_v20 = vpop.permute.xlu1 %755  ;;  %vm2936_vm11 = vmmov %vm2925_vm1 }
  0xff   :  { %714 = vst [vmem:[#allocation2 + $0x60] sm:$0xc] %v713_v10  ;;  %v657_v48 = vrot.slane %v654_v15, 4  ;;  %v764_v0 = vrot.slane %v756_v20, 4 }
 0x100   :  { %v816_v42 = vpop.permute.xlu0 %815 }
 0x101   :  { %v660_v59 = vsel %vm2930_vm3, %v656_v39, %v657_v48  ;;  %v662_v53 = vsel %vm593_vm13, %v654_v15, %v657_v48  ;;  %v772_v61 = vsel %vm2931_vm6, %v764_v0, %v765_v57  ;;  %v819_v1 = vrot.slane %v816_v42, 4  ;;  %vm2937_vm3 = vmmov %vm2925_vm1 }
 0x102   :  { %v661_v16 = vsel %vm593_vm13, %v2503_v38, %v660_v59  ;;  %v673_v3 = vsel %vm2932_vm8, %v662_v53, %v672_v60  ;;  %v773_v5 = vsel %vm481_vm12, %v756_v20, %v772_v61  ;;  %vm2938_vm6 = vmmov %vm2925_vm1 }
 0x103   :  { %v670_v39 = vsel %vm2393_vm0, %v661_v16, %v669_v4  ;;  %674 = vst [vmem:[#allocation2 + $0x60] sm:$0x3] %v673_v3  ;;  %v822_v11 = vsel %vm2925_vm1, %v818_v50, %v819_v1  ;;  %v824_v36 = vsel %vm593_vm13, %v816_v42, %v819_v1  ;;  %v885_v47 = vld [vmem:[#allocation2 + $0x64] sm:$0xcc] }
 0x104   :  { %671 = vst [vmem:[#allocation2 + $0x58] sm:$0x33] %v670_v39  ;;  %v823_v38 = vsel %vm593_vm13, %v2524_v46, %v822_v11  ;;  %v835_v24 = vsel %vm2933_vm5, %v824_v36, %v834_v37  ;;  %v783_v26 = vld [vmem:[#allocation2 + $0x50] sm:$0x88]  ;;  %vm2941_vm5 = vcmask 1039360  }
 0x105   :  { %792 = vst [vmem:[#allocation2 + $0x64] sm:$0x11] %v773_v5  ;;  %v832_v35 = vsel %vm2426_vm10, %v823_v38, %v831_v6  ;;  %v784_v31 = vsel %vm2366_vm2, %v768_v19, %v783_v26  ;;  %vm2935_vm10 = vmmov %vm2925_vm1  ;;  %v786_v4 = vld [vmem:[#allocation2 + $0x58] sm:$0x88] }
 0x106   :  { %833 = vst [vmem:[#allocation2 + $0x6c] sm:$0x66] %v832_v35  ;;  %v760_v50 = vpop.permute.xlu2 %759  ;;  %v871_v14 = vpop.permute.xlu1 %870  ;;  %v789_v1 = vld [vmem:[#allocation2 + $0x60] sm:$0x8]  ;;  %v1889_v26 = vld [vmem:[#allocation2 + $0x38] sm:$0xf0] }
 0x107   :  { %836 = vst [vmem:[#allocation2 + $0x74] sm:$0x6] %v835_v24  ;;  %v766_v41 = vrot.slane %v760_v50, 4  ;;  %v875_v25 = vrot.slane %v871_v14, 4 }
 0x108   :  { %v869_v12 = vpop.permute.xlu0 %868  ;;  %785 = vst [vmem:[#allocation2 + $0x50] sm:$0x88] %v784_v31  ;;  %v1756_v31 = vld [vmem:[#allocation2 + $0x3c] sm:$0xf0] }
 0x109   :  { %v774_v46 = vsel %vm2934_vm7, %v765_v57, %v766_v41  ;;  %v776_v22 = vsel %vm481_vm12, %v760_v50, %v766_v41  ;;  %v874_v28 = vrot.slane %v869_v12, 4  ;;  %v1887_v41 = vld [vmem:[#allocation2 + $0x2c] sm:$0xf]  ;;  %vm2942_vm7 = vmmov %vm2941_vm5 }
 0x10a   :  { %v775_v9 = vsel %vm481_vm12, %v2501_v63, %v774_v46  ;;  %794 = vst [vmem:[#allocation2 + $0x74] sm:$0x1] %v776_v22 }
 0x10b   :  { %793 = vst [vmem:[#allocation2 + $0x6c] sm:$0x11] %v775_v9  ;;  %v877_v33 = vsel %vm2935_vm10, %v874_v28, %v875_v25  ;;  %v455_v28 = vld [vmem:[#allocation2 + $0x38] sm:$0xc]  ;;  %v1755_v9 = vor.u32 %v1889_v26, %v1754_v51  ;;  %vm2945_vm10 = vmmov %vm2941_vm5 }
 0x10c   :  { %v878_v10 = vsel %vm593_vm13, %v869_v12, %v877_v33  ;;  %v549_v12 = vld [vmem:[#allocation2 + $0x44] sm:$0x66]  ;;  %v1759_v33 = vor.u32 %v1887_v41, %v1756_v31 }
 0x10d   :  { %v886_v23 = vsel %vm2455_vm4, %v878_v10, %v885_v47  ;;  %v888_v59 = vld [vmem:[#allocation2 + $0x6c] sm:$0xcc]  ;;  %v1882_v10 = vld [vmem:[#allocation2 + $0x4] sm:$0xf] }
 0x10e   :  { %887 = vst [vmem:[#allocation2 + $0x64] sm:$0xcc] %v886_v23  ;;  %v579_v44 = vpop.permute.xlu2 %578  ;;  %v873_v15 = vpop.permute.xlu1 %872  ;;  %v891_v0 = vld [vmem:[#allocation2 + $0x74] sm:$0xc] }
 0x10f   :  { %v588_v20 = vrot.slane %v579_v44, 4  ;;  %v876_v2 = vrot.slane %v873_v15, 4  ;;  %v1774_v3 = vld [vmem:[#allocation2 + $0x50] sm:$0xf]  ;;  %v1892_v5 = vld [vmem:[#allocation2 + $0x54] sm:$0xf] }
 0x110   :  { %v754_v57 = vpop.permute.xlu0 %753 }
 0x111   :  { %v595_v63 = vsel %vm2936_vm11, %v587_v55, %v588_v20  ;;  %v597_v48 = vsel %vm593_vm13, %v579_v44, %v588_v20  ;;  %v879_v52 = vsel %vm2937_vm3, %v875_v25, %v876_v2  ;;  %v881_v60 = vsel %vm593_vm13, %v873_v15, %v876_v2  ;;  %v1734_v25 = vld [vmem:[#allocation2] sm:$0xf]  ;;  %v1884_v44 = vld [vmem:[#allocation2 + $0x10] sm:$0xf0]  ;;  %v1736_v15 = vld [vmem:[#allocation2 + $0x14] sm:$0xf0] }
 0x112   :  { %v596_v42 = vsel %vm593_vm13, %v2444_v21, %v595_v63  ;;  %611 = vst [vmem:[#allocation2 + $0x4c] sm:$0x8] %v597_v48  ;;  %v880_v53 = vsel %vm593_vm13, %v871_v14, %v879_v52  ;;  %v892_v61 = vsel %vm2447_vm9, %v881_v60, %v891_v0  ;;  %v763_v37 = vrot.slane %v754_v57, 4  ;;  %vm2946_vm11 = vmmov %vm2925_vm1 }
 0x113   :  { %610 = vst [vmem:[#allocation2 + $0x44] sm:$0x88] %v596_v42  ;;  %v889_v55 = vsel %vm2455_vm4, %v880_v53, %v888_v59  ;;  %v1735_v48 = vor.u32 %v1884_v44, %v1734_v25  ;;  %v1739_v0 = vor.u32 %v1882_v10, %v1736_v15  ;;  %vm2947_vm3 = vmmov %vm2941_vm5 }
 0x114   :  { %890 = vst [vmem:[#allocation2 + $0x6c] sm:$0xcc] %v889_v55  ;;  %v769_v16 = vsel %vm2938_vm6, %v2545_v27, %v763_v37  ;;  %v771_v21 = vsel %vm481_vm12, %v754_v57, %v763_v37  ;;  %v894_v37 = vld [vmem:[#allocation5] sm:$0xf]  ;;  %vm2948_vm6 = vmmov %vm2947_vm3 }
 0x115   :  { %893 = vst [vmem:[#allocation2 + $0x74] sm:$0xc] %v892_v61  ;;  %v770_v6 = vsel %vm481_vm12, %v1930_v13, %v769_v16  ;;  %v790_v39 = vsel %vm2928_vm14, %v771_v21, %v789_v1  ;;  %v1894_v11 = vld [vmem:[#allocation2 + $0x60] sm:$0xf0]  ;;  %v1776_v36 = vld [vmem:[#allocation2 + $0x64] sm:$0xf0]  ;;  %vm2939_vm14 = vmmov %vm2925_vm1 }
 0x116   :  { %v787_v19 = vsel %vm2366_vm2, %v770_v6, %v786_v4  ;;  %791 = vst [vmem:[#allocation2 + $0x60] sm:$0x8] %v790_v39  ;;  %v534_v38 = vpop.permute.xlu1 %533  ;;  %v1775_v27 = vor.u32 %v1894_v11, %v1774_v3  ;;  %v1779_v24 = vor.u32 %v1892_v5, %v1776_v36  ;;  %v552_v13 = vld [vmem:[#allocation2 + $0x4c] sm:$0x6]  ;;  %vm2940_vm2 = vnez %v2869_v62  ;;  %v255_v16 = vld [vmem:[#allocation2 + $0x24] sm:$0x3] }
 0x117   :  { %788 = vst [vmem:[#allocation2 + $0x58] sm:$0x88] %v787_v19  ;;  %v537_v35 = vrot.slane %v534_v38, 4  ;;  %v252_v5 = vld [vmem:[#allocation2 + $0x1c] sm:$0x33] }
 0x118   :  { %v432_v50 = vpop.permute.xlu0 %431  ;;  %1000 = vmatpush.bf16.msra.mxu0 %v1775_v27  ;;  %1013 = vmatpush.bf16.msra.mxu1 %v1779_v24 }
 0x119   :  { %v540_v7 = vsel %vm2939_vm14, %v536_v34, %v537_v35  ;;  %v542_v45 = vsel %vm481_vm12, %v534_v38, %v537_v35  ;;  %v435_v14 = vrot.slane %v432_v50, 4 }
 0x11a   :  { %v541_v46 = vsel %vm481_vm12, %v2479_v29, %v540_v7  ;;  %v553_v22 = vsel %vm2940_vm2, %v542_v45, %v552_v13  ;;  %v452_v29 = vld [vmem:[#allocation2 + $0x30] sm:$0xcc] }
 0x11b   :  { %v550_v47 = vsel %vm2268_vm15, %v541_v46, %v549_v12  ;;  %554 = vst [vmem:[#allocation2 + $0x4c] sm:$0x6] %v553_v22  ;;  %v438_v34 = vsel %vm2925_vm1, %v434_v8, %v435_v14  ;;  %v440_v23 = vsel %vm2941_vm5, %v432_v50, %v435_v14  ;;  %v1895_v17 = vld [vmem:[#allocation2 + $0x68] sm:$0xf0]  ;;  %v1784_v8 = vld [vmem:[#allocation2 + $0x6c] sm:$0xf0] }
 0x11c   :  { %551 = vst [vmem:[#allocation2 + $0x44] sm:$0x66] %v550_v47  ;;  %v439_v62 = vsel %vm2942_vm7, %v2412_v18, %v438_v34  ;;  %v456_v20 = vsel %vm2447_vm9, %v440_v23, %v455_v28  ;;  %1001 = vmatpush.bf16.msra.mxu0 %v1755_v9  ;;  %1014 = vmatpush.bf16.msra.mxu1 %v1759_v33  ;;  %v1896_v30 = vld [vmem:[#allocation2 + $0x70] sm:$0xf0]  ;;  %vm991_vm15 = vcmask 392192   ;;  %vm2944_vm9 = vmmov %vm2941_vm5 }
 0x11d   :  { %v453_v2 = vsel %vm2455_vm4, %v439_v62, %v452_v29  ;;  %457 = vst [vmem:[#allocation2 + $0x38] sm:$0xc] %v456_v20  ;;  %v1790_v57 = vld [vmem:[#allocation2 + $0x60] sm:$0xf]  ;;  %vm2943_vm4 = vmmov %vm2925_vm1 }
 0x11e   :  { %454 = vst [vmem:[#allocation2 + $0x30] sm:$0xcc] %v453_v2  ;;  %v149_v63 = vpop.permute.xlu1 %148  ;;  %v1782_v52 = vld [vmem:[#allocation2 + $0x58] sm:$0xf]  ;;  %v1893_v60 = vld [vmem:[#allocation2 + $0x5c] sm:$0xf]  ;;  %v1791_v61 = vor.u32 %v1896_v30, %v1790_v57 }
 0x11f   :  { %v158_v18 = vrot.slane %v149_v63, 4  ;;  %v1783_v42 = vor.u32 %v1895_v17, %v1782_v52  ;;  %v1787_v59 = vor.u32 %v1893_v60, %v1784_v8 }
 0x120   :  { %v232_v53 = vpop.permute.xlu0 %231  ;;  %1002 = vmatpush.bf16.msra.mxu0 %v1735_v48  ;;  %1015 = vmatpush.bf16.msra.mxu1 %v1739_v0 }
 0x121   :  { %v166_v58 = vsel %vm2943_vm4, %v157_v43, %v158_v18  ;;  %v168_v55 = vsel %vm2944_vm9, %v149_v63, %v158_v18  ;;  %v235_v1 = vrot.slane %v232_v53, 4  ;;  %1026 = vmatpush.bf16.msra.mxu2 %v1783_v42  ;;  %1039 = vmatpush.bf16.msra.mxu3 %v1787_v59 }
 0x122   :  { %v167_v4 = vsel %vm2945_vm10, %v2286_v49, %v166_v58  ;;  %182 = vst [vmem:[#allocation2 + $0x10] sm:$0x8] %v168_v55  ;;  %v1891_v43 = vld [vmem:[#allocation2 + $0x48] sm:$0xf0] }
 0x123   :  { %181 = vst [vmem:[#allocation2 + $0x8] sm:$0x88] %v167_v4  ;;  %v238_v21 = vsel %vm2946_vm11, %v234_v56, %v235_v1  ;;  %v240_v3 = vsel %vm2947_vm3, %v232_v53, %v235_v1  ;;  %1792 = vmatmul.msk.bf16.vlgmr.msra.gmra.mxu0 %vm991_vm15, %v894_v37  ;;  %1793 = vmatmul.msk.bf16.vlgmr.msra.gmra.mxu1 %vm991_vm15, %v894_v37  ;;  %v1890_v11 = vld [vmem:[#allocation2 + $0x40] sm:$0xf0]  ;;  %v1764_v36 = vld [vmem:[#allocation2 + $0x44] sm:$0xf0] }
 0x124   :  { %1052 = vmatpush.bf16.msrb.mxu0 %v1791_v61  ;;  %v239_v6 = vsel %vm2948_vm6, %v2388_v54, %v238_v21  ;;  %v256_v49 = vsel %vm2932_vm8, %v240_v3, %v255_v16  ;;  %v1770_v39 = vld [vmem:[#allocation2 + $0x38] sm:$0xf] }
 0x125   :  { %v253_v56 = vsel %vm2393_vm0, %v239_v6, %v252_v5  ;;  %257 = vst [vmem:[#allocation2 + $0x24] sm:$0x3] %v256_v49  ;;  %v1771_v19 = vor.u32 %v1891_v43, %v1770_v39  ;;  %v1762_v38 = vld [vmem:[#allocation2 + $0x30] sm:$0xf]  ;;  %v1888_v27 = vld [vmem:[#allocation2 + $0x34] sm:$0xf] }
 0x126   :  { %254 = vst [vmem:[#allocation2 + $0x1c] sm:$0x33] %v253_v56  ;;  %v1763_v24 = vor.u32 %v1890_v11, %v1762_v38  ;;  %v1767_v26 = vor.u32 %v1888_v27, %v1764_v36 }
 0x128   :  { %1053 = vmatpush.bf16.msrb.mxu0 %v1771_v19  ;;  %1027 = vmatpush.bf16.msra.mxu2 %v1763_v24 }
 0x129   :  { %1040 = vmatpush.bf16.msra.mxu3 %v1767_v26  ;;  %v1750_v54 = vld [vmem:[#allocation2 + $0x10] sm:$0xf] }
 0x12a   :  { %v1742_v40 = vld [vmem:[#allocation2 + $0x8] sm:$0xf]  ;;  %v1883_v51 = vld [vmem:[#allocation2 + $0xc] sm:$0xf] }
 0x12c   :  { %v1886_v35 = vld [vmem:[#allocation2 + $0x20] sm:$0xf0] }
 0x12d   :  { %v1751_v31 = vor.u32 %v1886_v35, %v1750_v54  ;;  %v1885_v50 = vld [vmem:[#allocation2 + $0x18] sm:$0xf0]  ;;  %v1744_v13 = vld [vmem:[#allocation2 + $0x1c] sm:$0xf0] }
 0x12e   :  { %v1743_v7 = vor.u32 %v1885_v50, %v1742_v40  ;;  %v1747_v32 = vor.u32 %v1883_v51, %v1744_v13 }
 0x12f   :  { %1054 = vmatpush.bf16.msrb.mxu0 %v1751_v31 }
 0x130   :  { %1028 = vmatpush.bf16.msra.mxu2 %v1743_v7  ;;  %1041 = vmatpush.bf16.msra.mxu3 %v1747_v32 }
 0x133   :  { %1794 = vmatmul.msk.bf16.vlgmr.msra.gmra.mxu2 %vm991_vm15, %v894_v37  ;;  %1795 = vmatmul.msk.bf16.vlgmr.msra.gmra.mxu3 %vm991_vm15, %v894_v37 }
 0x134   :  { %1796 = vmatmul.msk.bf16.vlgmr.msrb.gmra.mxu0 %vm991_vm15, %v894_v37 }
 0x1a0   :  { %v1004_v45 = vpop.f32.mrf.mxu0  ;;  %v1017_v14 = vpop.f32.mrf.mxu1 }
 0x1a1   :  { %v1797_v41 = vmul.f32 -1.442695, %v1004_v45  ;;  %v1798_v25 = vmul.f32 -1.442695, %v1017_v14 }
 0x1a3   :  { %1931 = vpow2.f32 %v1797_v41 }
 0x1a4   :  { %1933 = vpow2.f32 %v1798_v25 }
 0x1a8   :  { %v1006_v12 = vpop.f32.mrf.mxu0  ;;  %v1019_v46 = vpop.f32.mrf.mxu1 }
 0x1a9   :  { %v1932_v22 = vpop.eup %1931 }
 0x1aa   :  { %v1934_v28 = vpop.eup %1933  ;;  %v1075_v9 = vadd.f32 1.0, %v1932_v22 }
 0x1ab   :  { %v1076_v33 = vadd.f32 1.0, %v1934_v28 }
 0x1ac   :  { %1935 = vrcp.f32 %v1075_v9  ;;  %v1089_v29 = vand.u32 2147483647, %v1075_v9  ;;  %v1091_v20 = vand.u32 2147483648, %v1075_v9  ;;  %vm1085_vm2 = vweird.f32 %v1075_v9 }
 0x1ad   :  { %1937 = vrcp.f32 %v1076_v33  ;;  %v1106_v17 = vand.u32 2147483648, %v1076_v33  ;;  %vm1100_vm0 = vweird.f32 %v1076_v33  ;;  %v1104_v8 = vand.u32 2147483647, %v1076_v33 }
 0x1ae   :  { %v1092_v61 = vor.u32 1.1754944e-38, %v1091_v20  ;;  %vm1090_vm15 = vcmp.eq.f32.partialorder %v1089_v29, 8.507059e+37 }
 0x1af   :  { %v1107_v59 = vor.u32 1.1754944e-38, %v1106_v17  ;;  %vm1105_vm7 = vcmp.eq.f32.partialorder %v1104_v8, 8.507059e+37 }
 0x1b1   :  { %v1056_v10 = vpop.f32.mrf.mxu0 }
 0x1b2   :  { %v1936_v47 = vpop.eup %1935  ;;  %v1801_v34 = vmul.f32 -1.442695, %v1056_v10 }
 0x1b3   :  { %v1938_v23 = vpop.eup %1937  ;;  %v1081_v44 = vmul.f32 %v1936_v47, %v1075_v9  ;;  %vm1086_vm14 = vweird.f32 %v1936_v47 }
 0x1b4   :  { %v1096_v15 = vmul.f32 %v1938_v23, %v1076_v33  ;;  %1939 = vpow2.f32 %v1801_v34  ;;  %vm1101_vm8 = vweird.f32 %v1938_v23  ;;  %vm1087_vm5 = vmor %vm1085_vm2, %vm1086_vm14 }
 0x1b5   :  { %v1082_v62 = vsub.f32 1.0, %v1081_v44  ;;  %vm2654_vm1 = vmor %vm1100_vm0, %vm1101_vm8 }
 0x1b6   :  { %v1097_v2 = vsub.f32 1.0, %v1096_v15  ;;  %v1030_v57 = vpop.f32.mrf.mxu2  ;;  %v1043_v63 = vpop.f32.mrf.mxu3 }
 0x1b7   :  { %v1083_v48 = vmul.f32 %v1936_v47, %v1082_v62  ;;  %v1799_v0 = vmul.f32 -1.442695, %v1030_v57  ;;  %v1800_v52 = vmul.f32 -1.442695, %v1043_v63 }
 0x1b8   :  { %v1098_v60 = vmul.f32 %v1938_v23, %v1097_v2 }
 0x1b9   :  { %v1084_v18 = vadd.f32 %v1936_v47, %v1083_v48  ;;  %1941 = vpow2.f32 %v1799_v0  ;;  %v1058_v30 = vpop.f32.mrf.mxu0 }
 0x1ba   :  { %v1940_v53 = vpop.eup %1939  ;;  %v1099_v37 = vadd.f32 %v1938_v23, %v1098_v60  ;;  %1943 = vpow2.f32 %v1800_v52 }
 0x1bb   :  { %v1088_v58 = vsel %vm1087_vm5, %v1936_v47, %v1084_v18  ;;  %v1079_v55 = vadd.f32 1.0, %v1940_v53 }
 0x1bc   :  { %v1093_v1 = vsel %vm1090_vm15, %v1092_v61, %v1088_v58  ;;  %v1103_v4 = vsel %vm2654_vm1, %v1938_v23, %v1099_v37  ;;  %vm2951_vm15 = vcmask 1043456  }
 0x1bd   :  { %v1108_v16 = vsel %vm1105_vm7, %v1107_v59, %v1103_v4  ;;  %1945 = vrcp.f32 %v1079_v55  ;;  %v1149_v19 = vand.u32 2147483647, %v1079_v55  ;;  %v1151_v38 = vand.u32 2147483648, %v1079_v55 }
 0x1be   :  { %v2660_v21 = vpack.c.bf16 %v1108_v16, %v1093_v1  ;;  %v1032_v3 = vpop.f32.mrf.mxu2  ;;  %v1045_v5 = vpop.f32.mrf.mxu3  ;;  %vm1145_vm9 = vweird.f32 %v1079_v55  ;;  %vm1346_vm7 = vcmask 769024  }
 0x1bf   :  { %v1942_v43 = vpop.eup %1941  ;;  %vm1150_vm11 = vcmp.eq.f32.partialorder %v1149_v19, 8.507059e+37  ;;  %v1152_v31 = vor.u32 1.1754944e-38, %v1151_v38 }
 0x1c0   :  { %v1944_v6 = vpop.eup %1943  ;;  %v1077_v49 = vadd.f32 1.0, %v1942_v43  ;;  %1336 = vrot.lane.b32.xlu2 %v2660_v21, %s2042_s0  ;;  %1163 = vst [vmem:[#allocation4] sm:$0xff] %v2660_v21 }
 0x1c1   :  { %v1078_v39 = vadd.f32 1.0, %v1944_v6 }
 0x1c2   :  { %1947 = vrcp.f32 %v1077_v49  ;;  %v1119_v13 = vand.u32 2147483647, %v1077_v49  ;;  %v1121_v7 = vand.u32 2147483648, %v1077_v49  ;;  %vm1115_vm0 = vweird.f32 %v1077_v49 }
 0x1c3   :  { %v1946_v11 = vpop.eup %1945  ;;  %1949 = vrcp.f32 %v1078_v39  ;;  %v1136_v41 = vand.u32 2147483648, %v1078_v39  ;;  %v1134_v46 = vand.u32 2147483647, %v1078_v39  ;;  %vm1130_vm14 = vweird.f32 %v1078_v39 }
 0x1c4   :  { %v1141_v36 = vmul.f32 %v1946_v11, %v1079_v55  ;;  %vm1146_vm4 = vweird.f32 %v1946_v11  ;;  %v1122_v28 = vor.u32 1.1754944e-38, %v1121_v7  ;;  %vm1120_vm2 = vcmp.eq.f32.partialorder %v1119_v13, 8.507059e+37 }
 0x1c5   :  { %vm1147_vm10 = vmor %vm1145_vm9, %vm1146_vm4  ;;  %v1137_v10 = vor.u32 1.1754944e-38, %v1136_v41  ;;  %vm1135_vm5 = vcmp.eq.f32.partialorder %v1134_v46, 8.507059e+37  ;;  %vm1298_vm9 = vcmask 785408  }
 0x1c6   :  { %v1142_v56 = vsub.f32 1.0, %v1141_v36  ;;  %vm2952_vm4 = vmmov %vm2951_vm15 }
 0x1c8   :  { %v1948_v27 = vpop.eup %1947  ;;  %v1143_v24 = vmul.f32 %v1946_v11, %v1142_v56  ;;  %1288 = vrot.lane.b32.xlu2 %v2660_v21, %s2043_s10 }
 0x1c9   :  { %v1950_v26 = vpop.eup %1949  ;;  %v1111_v54 = vmul.f32 %v1948_v27, %v1077_v49  ;;  %vm1116_vm3 = vweird.f32 %v1948_v27 }
 0x1ca   :  { %v1144_v35 = vadd.f32 %v1946_v11, %v1143_v24  ;;  %v1126_v40 = vmul.f32 %v1950_v26, %v1078_v39  ;;  %vm1131_vm6 = vweird.f32 %v1950_v26  ;;  %vm1117_vm8 = vmor %vm1115_vm0, %vm1116_vm3 }
 0x1cb   :  { %v1112_v50 = vsub.f32 1.0, %v1111_v54  ;;  %vm1132_vm1 = vmor %vm1130_vm14, %vm1131_vm6  ;;  %vm1322_vm14 = vcmask 777216  }
 0x1cc   :  { %v1148_v51 = vsel %vm1147_vm10, %v1946_v11, %v1144_v35  ;;  %v1127_v32 = vsub.f32 1.0, %v1126_v40  ;;  %vm2953_vm10 = vmmov %vm2952_vm4 }
 0x1cd   :  { %v1153_v45 = vsel %vm1150_vm11, %v1152_v31, %v1148_v51  ;;  %v1113_v14 = vmul.f32 %v1948_v27, %v1112_v50  ;;  %vm2954_vm11 = vmmov %vm2952_vm4 }
 0x1ce   :  { %v1157_v25 = vpack.c.bf16 %v1153_v45, %v1153_v45  ;;  %v1128_v12 = vmul.f32 %v1950_v26, %v1127_v32  ;;  %vm2955_vm3 = vmmov %vm2952_vm4 }
 0x1cf   :  { %v1114_v22 = vadd.f32 %v1948_v27, %v1113_v14  ;;  %vm2956_vm6 = vmmov %vm2955_vm3 }
 0x1d0   :  { %1160 = vst [vmem:[#allocation3 + $0x10] sm:$0xf] %v1157_v25  ;;  %v1129_v9 = vadd.f32 %v1950_v26, %v1128_v12  ;;  %1312 = vrot.lane.b32.xlu2 %v2660_v21, %s2044_s11  ;;  %vm2957_vm0 = vmmov %vm2955_vm3 }
 0x1d1   :  { %v1118_v33 = vsel %vm1117_vm8, %v1948_v27, %v1114_v22  ;;  %vm2958_vm8 = vmmov %vm2957_vm0 }
 0x1d2   :  { %v1123_v47 = vsel %vm1120_vm2, %v1122_v28, %v1118_v33  ;;  %v1133_v34 = vsel %vm1132_vm1, %v1950_v26, %v1129_v9  ;;  %vm2959_vm2 = vmmov %vm2957_vm0 }
 0x1d3   :  { %v1138_v23 = vsel %vm1135_vm5, %v1137_v10, %v1133_v34  ;;  %vm2960_vm1 = vmmov %vm2957_vm0 }
 0x1d4   :  { %v1156_v44 = vpack.c.bf16 %v1138_v23, %v1123_v47  ;;  %vm2961_vm5 = vmmov %vm2957_vm0 }
 0x1d6   :  { %1338 = vrot.lane.b32.xlu0 %v1156_v44, %s2042_s0  ;;  %1164 = vst [vmem:[#allocation4 + $0x8] sm:$0xff] %v1156_v44 }
 0x1d7   :  { %v1332_v15 = vld [vmem:[#allocation3 + $0x10] sm:$0xf] }
 0x1d8   :  { %1340 = vrot.lane.b32.xlu1 %v1332_v15, %s2042_s0  ;;  %1241 = vrot.lane.b32.xlu2 %v2660_v21, %s2041_s27  ;;  %v1284_v62 = vld [vmem:[#allocation3 + $0x10] sm:$0xf] }
 0x1d9   :  { %v1308_v29 = vld [vmem:[#allocation3 + $0x10] sm:$0xf] }
 0x1da   :  { %v1237_v20 = vld [vmem:[#allocation3 + $0x10] sm:$0xf] }
 0x1db   :  { %v1260_v17 = vld [vmem:[#allocation3 + $0x10] sm:$0xf] }
 0x1dc   :  { %v1190_v2 = vld [vmem:[#allocation3 + $0x10] sm:$0xf] }
 0x1dd   :  { %v1214_v8 = vld [vmem:[#allocation3 + $0x10] sm:$0xf] }
 0x1de   :  { %1290 = vrot.lane.b32.xlu0 %v1156_v44, %s2043_s10  ;;  %v1167_v57 = vld [vmem:[#allocation3 + $0x10] sm:$0xf] }
 0x1e0   :  { %1292 = vrot.lane.b32.xlu1 %v1284_v62, %s2043_s10  ;;  %1264 = vrot.lane.b32.xlu2 %v2660_v21, %s2045_s12 }
 0x1e6   :  { %1314 = vrot.lane.b32.xlu0 %v1156_v44, %s2044_s11 }
 0x1e8   :  { %1316 = vrot.lane.b32.xlu1 %v1308_v29, %s2044_s11  ;;  %1194 = vrot.lane.b32.xlu2 %v2660_v21, %s2046_s13 }
 0x1ee   :  { %1243 = vrot.lane.b32.xlu0 %v1156_v44, %s2041_s27 }
 0x1f0   :  { %1245 = vrot.lane.b32.xlu1 %v1237_v20, %s2041_s27  ;;  %1218 = vrot.lane.b32.xlu2 %v2660_v21, %s2040_s1 }
 0x1f6   :  { %1266 = vrot.lane.b32.xlu0 %v1156_v44, %s2045_s12 }
 0x1f8   :  { %1268 = vrot.lane.b32.xlu1 %v1260_v17, %s2045_s12  ;;  %1171 = vrot.lane.b32.xlu2 %v2660_v21, %s2039_s7 }
 0x1fe   :  { %1196 = vrot.lane.b32.xlu0 %v1156_v44, %s2046_s13 }
 0x200   :  { %1198 = vrot.lane.b32.xlu1 %v1190_v2, %s2046_s13 }
 0x206   :  { %1220 = vrot.lane.b32.xlu0 %v1156_v44, %s2040_s1 }
 0x208   :  { %1222 = vrot.lane.b32.xlu1 %v1214_v8, %s2040_s1 }
 0x20e   :  { %1173 = vrot.lane.b32.xlu0 %v1156_v44, %s2039_s7 }
 0x210   :  { %1175 = vrot.lane.b32.xlu1 %v1167_v57, %s2039_s7 }
 0x21a   :  { %v1337_v63 = vpop.permute.xlu2 %1336 }
 0x21b   :  { %v1342_v52 = vrot.slane %v1337_v63, 4 }
 0x222   :  { %v1289_v48 = vpop.permute.xlu2 %1288 }
 0x223   :  { %v1294_v3 = vrot.slane %v1289_v48, 4 }
 0x22a   :  { %v1313_v30 = vpop.permute.xlu2 %1312 }
 0x22b   :  { %v1318_v31 = vrot.slane %v1313_v30, 4 }
 0x232   :  { %v1242_v54 = vpop.permute.xlu2 %1241 }
 0x233   :  { %v1247_v12 = vrot.slane %v1242_v54, 4 }
 0x23a   :  { %v1265_v41 = vpop.permute.xlu2 %1264 }
 0x248   :  { %v1339_v0 = vpop.permute.xlu0 %1338 }
 0x249   :  { %v1343_v60 = vrot.slane %v1339_v0, 4 }
 0x24a   :  { %v1341_v18 = vpop.permute.xlu1 %1340 }
 0x24b   :  { %v1344_v42 = vrot.slane %v1341_v18, 4  ;;  %v1345_v59 = vsel %vm2951_vm15, %v1342_v52, %v1343_v60  ;;  %vm1274_vm15 = vcmask 900096  }
 0x24c   :  { %v1347_v53 = vsel %vm1346_vm7, %v1337_v63, %v1345_v59 }
 0x24d   :  { %v1348_v61 = vsel %vm2952_vm4, %v1343_v60, %v1344_v42  ;;  %v1429_v37 = vunpack.c.l.b16 %v1347_v53  ;;  %v1430_v58 = vunpack.c.h.b16 %v1347_v53  ;;  %v1195_v60 = vpop.permute.xlu2 %1194  ;;  %vm2963_vm4 = vmmov %vm2957_vm0 }
 0x24e   :  { %v1349_v55 = vsel %vm1346_vm7, %v1339_v0, %v1348_v61  ;;  %vm2962_vm7 = vmmov %vm2957_vm0  ;;  %v1270_v0 = vrot.slane %v1265_v41, 4 }
 0x24f   :  { %v1431_v1 = vunpack.c.l.b16 %v1349_v55  ;;  %v1432_v4 = vunpack.c.h.b16 %v1349_v55  ;;  %v1449_v16 = vpack.c.b16 %v1429_v37, %v1429_v37  ;;  %v1450_v21 = vpack.c.b16 %v1430_v58, %v1430_v58 }
 0x250   :  { %v1291_v5 = vpop.permute.xlu0 %1290  ;;  %v1200_v58 = vrot.slane %v1195_v60, 4 }
 0x251   :  { %v1295_v43 = vrot.slane %v1291_v5, 4  ;;  %v1451_v6 = vpack.c.b16 %v1431_v1, %v1431_v1  ;;  %v1452_v49 = vpack.c.b16 %v1432_v4, %v1432_v4  ;;  %v1475_v39 = vsel %vm2953_vm10, %v1449_v16, 0  ;;  %vm2965_vm10 = vmmov %vm2957_vm0 }
 0x252   :  { %v1293_v11 = vpop.permute.xlu1 %1292  ;;  %1489 = vmatpush.bf16.msrb.mxu1 %v1475_v39  ;;  %v1478_v36 = vsel %vm2954_vm11, %v1450_v21, 0  ;;  %vm2966_vm11 = vmmov %vm2957_vm0 }
 0x253   :  { %v1296_v56 = vrot.slane %v1293_v11, 4  ;;  %v1297_v19 = vsel %vm2955_vm3, %v1294_v3, %v1295_v43  ;;  %v1481_v38 = vsel %vm2956_vm6, %v1451_v6, 0  ;;  %1503 = vmatpush.bf16.msrb.mxu2 %v1478_v36  ;;  %v1484_v24 = vsel %vm2957_vm0, %v1452_v49, 0  ;;  %vm2967_vm3 = vmmov %vm2957_vm0 }
 0x254   :  { %v1299_v27 = vsel %vm1298_vm9, %v1289_v48, %v1297_v19  ;;  %1517 = vmatpush.bf16.msrb.mxu3 %v1481_v38  ;;  %1531 = vmatpush.bf16.msra.mxu0 %v1484_v24  ;;  %vm2968_vm6 = vmmov %vm2957_vm0 }
 0x255   :  { %v1300_v26 = vsel %vm2958_vm8, %v1295_v43, %v1296_v56  ;;  %1304 = vst [vmem:[#allocation4 + $0x60] sm:$0xff] %v1299_v27  ;;  %v1219_v3 = vpop.permute.xlu2 %1218  ;;  %vm2969_vm8 = vcmask 1039360  }
 0x256   :  { %v1301_v35 = vsel %vm1298_vm9, %v1291_v5, %v1300_v26  ;;  %vm1204_vm9 = vcmask 1031168  }
 0x257   :  { %1305 = vst [vmem:[#allocation4 + $0x68] sm:$0xff] %v1301_v35 }
 0x258   :  { %v1315_v40 = vpop.permute.xlu0 %1314 }
 0x259   :  { %v1319_v50 = vrot.slane %v1315_v40, 4 }
 0x25a   :  { %v1317_v51 = vpop.permute.xlu1 %1316 }
 0x25b   :  { %v1320_v13 = vrot.slane %v1317_v51, 4  ;;  %v1321_v7 = vsel %vm2959_vm2, %v1318_v31, %v1319_v50  ;;  %vm1469_vm2 = vcmask 588800  }
 0x25c   :  { %v1323_v32 = vsel %vm1322_vm14, %v1313_v30, %v1321_v7  ;;  %v1856_v33 = vld [vmem:[#allocation4 + $0x60] sm:$0xf]  ;;  %v1910_v34 = vld [vmem:[#allocation4 + $0x64] sm:$0xf] }
 0x25d   :  { %v1324_v45 = vsel %vm2960_vm1, %v1319_v50, %v1320_v13  ;;  %1328 = vst [vmem:[#allocation4 + $0x70] sm:$0xff] %v1323_v32 }
 0x25e   :  { %v1325_v14 = vsel %vm1322_vm14, %v1315_v40, %v1324_v45  ;;  %v1864_v29 = vld [vmem:[#allocation4 + $0x68] sm:$0xf]  ;;  %v1911_v2 = vld [vmem:[#allocation4 + $0x6c] sm:$0xf]  ;;  %v1224_v40 = vrot.slane %v1219_v3, 4  ;;  %v1172_v45 = vpop.permute.xlu2 %1171  ;;  %vm2970_vm14 = vmmov %vm2957_vm0 }
 0x25f   :  { %1329 = vst [vmem:[#allocation4 + $0x78] sm:$0xff] %v1325_v14 }
 0x260   :  { %v1244_v25 = vpop.permute.xlu0 %1243 }
 0x261   :  { %v1248_v46 = vrot.slane %v1244_v25, 4 }
 0x262   :  { %v1246_v22 = vpop.permute.xlu1 %1245 }
 0x263   :  { %v1249_v28 = vrot.slane %v1246_v22, 4  ;;  %v1250_v9 = vsel %vm2961_vm5, %v1247_v12, %v1248_v46 }
 0x264   :  { %v1251_v10 = vsel %vm593_vm13, %v1242_v54, %v1250_v9  ;;  %v1912_v47 = vld [vmem:[#allocation4 + $0x6c] sm:$0xf0]  ;;  %v1858_v23 = vld [vmem:[#allocation4 + $0x70] sm:$0xf0] }
 0x265   :  { %v1252_v44 = vsel %vm2962_vm7, %v1248_v46, %v1249_v28  ;;  %1256 = vst [vmem:[#allocation4 + $0x40] sm:$0xff] %v1251_v10  ;;  %v1857_v15 = vor.u32 %v1912_v47, %v1856_v33  ;;  %v1861_v62 = vor.u32 %v1910_v34, %v1858_v23 }
 0x266   :  { %v1253_v20 = vsel %vm593_vm13, %v1244_v25, %v1252_v44  ;;  %v1913_v17 = vld [vmem:[#allocation4 + $0x74] sm:$0xf0]  ;;  %v1866_v8 = vld [vmem:[#allocation4 + $0x78] sm:$0xf0]  ;;  %vm2964_vm13 = vmmov %vm2957_vm0  ;;  %v1177_v25 = vrot.slane %v1172_v45, 4 }
 0x267   :  { %1257 = vst [vmem:[#allocation4 + $0x48] sm:$0xff] %v1253_v20  ;;  %1490 = vmatpush.bf16.msrb.mxu1 %v1857_v15  ;;  %1504 = vmatpush.bf16.msrb.mxu2 %v1861_v62  ;;  %v1865_v57 = vor.u32 %v1913_v17, %v1864_v29  ;;  %v1869_v63 = vor.u32 %v1911_v2, %v1866_v8 }
 0x268   :  { %v1267_v48 = vpop.permute.xlu0 %1266 }
 0x269   :  { %1518 = vmatpush.bf16.msrb.mxu3 %v1865_v57  ;;  %1532 = vmatpush.bf16.msra.mxu0 %v1869_v63  ;;  %v1271_v52 = vrot.slane %v1267_v48, 4  ;;  %v1808_v63 = vld [vmem:[#allocation4] sm:$0xf] }
 0x26a   :  { %v1269_v18 = vpop.permute.xlu1 %1268 }
 0x26b   :  { %v1272_v42 = vrot.slane %v1269_v18, 4  ;;  %v1273_v59 = vsel %vm2963_vm4, %v1270_v0, %v1271_v52  ;;  %v1898_v0 = vld [vmem:[#allocation4 + $0x4] sm:$0xf] }
 0x26c   :  { %v1275_v30 = vsel %vm1274_vm15, %v1265_v41, %v1273_v59  ;;  %v1840_v21 = vld [vmem:[#allocation4 + $0x40] sm:$0xf]  ;;  %v1906_v6 = vld [vmem:[#allocation4 + $0x44] sm:$0xf]  ;;  %v1899_v59 = vld [vmem:[#allocation4 + $0xc] sm:$0xf] }
 0x26d   :  { %v1276_v53 = vsel %vm2964_vm13, %v1271_v52, %v1272_v42  ;;  %1280 = vst [vmem:[#allocation4 + $0x50] sm:$0xff] %v1275_v30  ;;  %v1816_v42 = vld [vmem:[#allocation4 + $0x8] sm:$0xf] }
 0x26e   :  { %v1277_v61 = vsel %vm1274_vm15, %v1267_v48, %v1276_v53  ;;  %v1848_v56 = vld [vmem:[#allocation4 + $0x48] sm:$0xf]  ;;  %v1907_v27 = vld [vmem:[#allocation4 + $0x4c] sm:$0xf] }
 0x26f   :  { %1281 = vst [vmem:[#allocation4 + $0x58] sm:$0xff] %v1277_v61  ;;  %v1897_v61 = vld [vmem:[#allocation7] sm:$0xff] }
 0x270   :  { %v1197_v37 = vpop.permute.xlu0 %1196 }
 0x271   :  { %v1201_v55 = vrot.slane %v1197_v37, 4 }
 0x272   :  { %v1199_v1 = vpop.permute.xlu1 %1198 }
 0x273   :  { %v1202_v4 = vrot.slane %v1199_v1, 4  ;;  %v1203_v16 = vsel %vm2965_vm10, %v1200_v58, %v1201_v55 }
 0x274   :  { %v1205_v5 = vsel %vm1204_vm9, %v1195_v60, %v1203_v16  ;;  %v1908_v43 = vld [vmem:[#allocation4 + $0x4c] sm:$0xf0]  ;;  %v1842_v49 = vld [vmem:[#allocation4 + $0x50] sm:$0xf0] }
 0x275   :  { %v1206_v39 = vsel %vm2966_vm11, %v1201_v55, %v1202_v4  ;;  %1210 = vst [vmem:[#allocation4 + $0x20] sm:$0xff] %v1205_v5  ;;  %v1841_v11 = vor.u32 %v1908_v43, %v1840_v21  ;;  %v1845_v36 = vor.u32 %v1906_v6, %v1842_v49 }
 0x276   :  { %v1207_v19 = vsel %vm1204_vm9, %v1197_v37, %v1206_v39  ;;  %v1909_v38 = vld [vmem:[#allocation4 + $0x54] sm:$0xf0]  ;;  %v1850_v24 = vld [vmem:[#allocation4 + $0x58] sm:$0xf0] }
 0x277   :  { %1211 = vst [vmem:[#allocation4 + $0x28] sm:$0xff] %v1207_v19  ;;  %1491 = vmatpush.bf16.msrb.mxu1 %v1841_v11  ;;  %1505 = vmatpush.bf16.msrb.mxu2 %v1845_v36  ;;  %v1849_v26 = vor.u32 %v1909_v38, %v1848_v56  ;;  %v1853_v54 = vor.u32 %v1907_v27, %v1850_v24 }
 0x278   :  { %v1221_v35 = vpop.permute.xlu0 %1220 }
 0x279   :  { %1519 = vmatpush.bf16.msrb.mxu3 %v1849_v26  ;;  %1533 = vmatpush.bf16.msra.mxu0 %v1853_v54  ;;  %v1225_v31 = vrot.slane %v1221_v35, 4 }
 0x27a   :  { %v1223_v50 = vpop.permute.xlu1 %1222 }
 0x27b   :  { %v1226_v51 = vrot.slane %v1223_v50, 4  ;;  %v1227_v13 = vsel %vm2967_vm3, %v1224_v40, %v1225_v31 }
 0x27c   :  { %v1228_v7 = vsel %vm481_vm12, %v1219_v3, %v1227_v13  ;;  %v1824_v9 = vld [vmem:[#allocation4 + $0x20] sm:$0xf]  ;;  %v1902_v47 = vld [vmem:[#allocation4 + $0x24] sm:$0xf] }
 0x27d   :  { %v1229_v32 = vsel %vm2968_vm6, %v1225_v31, %v1226_v51  ;;  %1233 = vst [vmem:[#allocation4 + $0x30] sm:$0xff] %v1228_v7 }
 0x27e   :  { %v1230_v14 = vsel %vm481_vm12, %v1221_v35, %v1229_v32  ;;  %v1832_v62 = vld [vmem:[#allocation4 + $0x28] sm:$0xf]  ;;  %vm2971_vm12 = vmmov %vm2969_vm8  ;;  %v1903_v17 = vld [vmem:[#allocation4 + $0x2c] sm:$0xf] }
 0x27f   :  { %1234 = vst [vmem:[#allocation4 + $0x38] sm:$0xff] %v1230_v14 }
 0x280   :  { %v1174_v41 = vpop.permute.xlu0 %1173 }
 0x281   :  { %v1178_v12 = vrot.slane %v1174_v41, 4 }
 0x282   :  { %v1176_v46 = vpop.permute.xlu1 %1175 }
 0x283   :  { %v1179_v22 = vrot.slane %v1176_v46, 4  ;;  %v1180_v28 = vsel %vm2957_vm0, %v1177_v25, %v1178_v12 }
 0x284   :  { %v1181_v33 = vsel %vm2969_vm8, %v1172_v45, %v1180_v28  ;;  %v1904_v10 = vld [vmem:[#allocation4 + $0x2c] sm:$0xf0]  ;;  %v1826_v34 = vld [vmem:[#allocation4 + $0x30] sm:$0xf0] }
 0x285   :  { %v1182_v23 = vsel %vm2970_vm14, %v1178_v12, %v1179_v22  ;;  %1186 = vst [vmem:[#allocation4 + $0x10] sm:$0xff] %v1181_v33  ;;  %v1825_v44 = vor.u32 %v1904_v10, %v1824_v9  ;;  %v1829_v15 = vor.u32 %v1902_v47, %v1826_v34 }
 0x286   :  { %v1183_v29 = vsel %vm2971_vm12, %v1174_v41, %v1182_v23  ;;  %v1905_v20 = vld [vmem:[#allocation4 + $0x34] sm:$0xf0]  ;;  %v1834_v2 = vld [vmem:[#allocation4 + $0x38] sm:$0xf0] }
 0x287   :  { %1187 = vst [vmem:[#allocation4 + $0x18] sm:$0xff] %v1183_v29  ;;  %1492 = vmatpush.bf16.msrb.mxu1 %v1825_v44  ;;  %1506 = vmatpush.bf16.msrb.mxu2 %v1829_v15  ;;  %v1833_v8 = vor.u32 %v1905_v20, %v1832_v62  ;;  %v1837_v57 = vor.u32 %v1903_v17, %v1834_v2 }
 0x289   :  { %1520 = vmatpush.bf16.msrb.mxu3 %v1833_v8  ;;  %1534 = vmatpush.bf16.msra.mxu0 %v1837_v57 }
 0x28c   :  { %v1900_v48 = vld [vmem:[#allocation4 + $0xc] sm:$0xf0]  ;;  %v1810_v52 = vld [vmem:[#allocation4 + $0x10] sm:$0xf0] }
 0x28d   :  { %v1809_v60 = vor.u32 %v1900_v48, %v1808_v63  ;;  %v1813_v18 = vor.u32 %v1898_v0, %v1810_v52 }
 0x28e   :  { %v1901_v30 = vld [vmem:[#allocation4 + $0x14] sm:$0xf0]  ;;  %v1818_v53 = vld [vmem:[#allocation4 + $0x18] sm:$0xf0] }
 0x28f   :  { %1493 = vmatpush.bf16.msrb.mxu1 %v1809_v60  ;;  %1507 = vmatpush.bf16.msrb.mxu2 %v1813_v18  ;;  %v1817_v37 = vor.u32 %v1901_v30, %v1816_v42  ;;  %v1821_v58 = vor.u32 %v1899_v59, %v1818_v53 }
 0x291   :  { %1521 = vmatpush.bf16.msrb.mxu3 %v1817_v37  ;;  %1535 = vmatpush.bf16.msra.mxu0 %v1821_v58 }
 0x292   :  { %1870 = vmatmul.msk.bf16.vlgmr.msrb.gmra.mxu1 %vm1469_vm2, %v1897_v61  ;;  %1871 = vmatmul.msk.bf16.vlgmr.msrb.gmra.mxu2 %vm1469_vm2, %v1897_v61 }
 0x294   :  { %1872 = vmatmul.msk.bf16.vlgmr.msrb.gmra.mxu3 %vm1469_vm2, %v1897_v61  ;;  %1873 = vmatmul.msk.bf16.vlgmr.msra.gmra.mxu0 %vm1469_vm2, %v1897_v61 }
 0x30f   :  { %v1495_v55 = vpop.f32.mrf.mxu1 }
 0x310   :  { %v1874_v1 = vmul.f32 -1.442695, %v1495_v55 }
 0x311   :  { %v1537_v4 = vpop.f32.mrf.mxu0 }
 0x312   :  { %1951 = vpow2.f32 %v1874_v1  ;;  %v1877_v16 = vmul.f32 -1.442695, %v1537_v4 }
 0x314   :  { %1953 = vpow2.f32 %v1877_v16 }
 0x315   :  { %v1509_v21 = vpop.f32.mrf.mxu2 }
 0x316   :  { %v1875_v3 = vmul.f32 -1.442695, %v1509_v21 }
 0x317   :  { %v1523_v5 = vpop.f32.mrf.mxu3  ;;  %v1497_v43 = vpop.f32.mrf.mxu1 }
 0x318   :  { %v1952_v6 = vpop.eup %1951  ;;  %1955 = vpow2.f32 %v1875_v3  ;;  %v1876_v49 = vmul.f32 -1.442695, %v1523_v5  ;;  %v1878_v39 = vmul.f32 -1.442695, %v1497_v43 }
 0x319   :  { %v1566_v11 = vadd.f32 1.0, %v1952_v6  ;;  %v1539_v36 = vpop.f32.mrf.mxu0 }
 0x31a   :  { %v1954_v56 = vpop.eup %1953  ;;  %1957 = vpow2.f32 %v1876_v49  ;;  %v1881_v19 = vmul.f32 -1.442695, %v1539_v36 }
 0x31b   :  { %1959 = vrcp.f32 %v1566_v11  ;;  %v2716_v38 = vadd.f32 1.0, %v1954_v56  ;;  %v1583_v25 = vand.u32 2147483647, %v1566_v11  ;;  %v1585_v12 = vand.u32 2147483648, %v1566_v11 }
 0x31c   :  { %1961 = vpow2.f32 %v1878_v39  ;;  %vm1579_vm1 = vweird.f32 %v1566_v11 }
 0x31d   :  { %1963 = vpow2.f32 %v1881_v19  ;;  %v1511_v27 = vpop.f32.mrf.mxu2  ;;  %vm2735_vm5 = vcmp.eq.f32.partialorder %v1583_v25, 8.507059e+37  ;;  %v1586_v62 = vor.u32 1.1754944e-38, %v1585_v12  ;;  %vm1624_vm7 = vweird.f32 %v2716_v38 }
 0x31e   :  { %v1956_v24 = vpop.eup %1955  ;;  %1965 = vrcp.f32 %v2716_v38  ;;  %v1879_v54 = vmul.f32 -1.442695, %v1511_v27  ;;  %v1628_v2 = vand.u32 2147483647, %v2716_v38  ;;  %v1630_v63 = vand.u32 2147483648, %v2716_v38 }
 0x31f   :  { %v1567_v26 = vadd.f32 1.0, %v1956_v24  ;;  %v1525_v35 = vpop.f32.mrf.mxu3 }
 0x320   :  { %v1958_v40 = vpop.eup %1957  ;;  %v1880_v31 = vmul.f32 -1.442695, %v1525_v35  ;;  %v1631_v36 = vor.u32 1.1754944e-38, %v1630_v63  ;;  %vm1629_vm12 = vcmp.eq.f32.partialorder %v1628_v2, 8.507059e+37 }
 0x321   :  { %v2719_v50 = vpop.eup %1959  ;;  %1967 = vrcp.f32 %v1567_v26  ;;  %v2722_v7 = vadd.f32 1.0, %v1958_v40  ;;  %v1598_v33 = vand.u32 2147483647, %v1567_v26  ;;  %v1600_v44 = vand.u32 2147483648, %v1567_v26 }
 0x322   :  { %v1962_v51 = vpop.eup %1961  ;;  %v1575_v13 = vmul.f32 %v2719_v50, %v1566_v11  ;;  %1969 = vpow2.f32 %v1879_v54  ;;  %vm1580_vm15 = vweird.f32 %v2719_v50  ;;  %vm1594_vm4 = vweird.f32 %v1567_v26 }
 0x323   :  { %v1964_v32 = vpop.eup %1963  ;;  %v2724_v45 = vadd.f32 1.0, %v1962_v51  ;;  %1971 = vpow2.f32 %v1880_v31  ;;  %vm2748_vm13 = vcmp.eq.f32.partialorder %v1598_v33, 8.507059e+37  ;;  %v1601_v60 = vor.u32 1.1754944e-38, %v1600_v44  ;;  %vm2756_vm10 = vmor %vm1579_vm1, %vm1580_vm15 }
 0x324   :  { %v2726_v14 = vpop.eup %1965  ;;  %v1576_v41 = vsub.f32 1.0, %v1575_v13  ;;  %1973 = vrcp.f32 %v2722_v7  ;;  %v2733_v10 = vadd.f32 1.0, %v1964_v32  ;;  %v1615_v58 = vand.u32 2147483648, %v2722_v7 }
 0x325   :  { %v1620_v46 = vmul.f32 %v2726_v14, %v2716_v38  ;;  %1975 = vrcp.f32 %v2724_v45  ;;  %vm1625_vm11 = vweird.f32 %v2726_v14  ;;  %v1613_v16 = vand.u32 2147483647, %v2722_v7 }
 0x326   :  { %v1577_v22 = vmul.f32 %v2719_v50, %v1576_v41  ;;  %1977 = vrcp.f32 %v2733_v10  ;;  %vm2777_vm0 = vmor %vm1624_vm7, %vm1625_vm11  ;;  %vm1609_vm8 = vweird.f32 %v2722_v7  ;;  %v1616_v19 = vor.u32 1.1754944e-38, %v1615_v58 }
 0x327   :  { %v1968_v28 = vpop.eup %1967  ;;  %v1621_v9 = vsub.f32 1.0, %v1620_v46  ;;  %vm1614_vm2 = vcmp.eq.f32.partialorder %v1613_v16, 8.507059e+37  ;;  %v1645_v31 = vand.u32 2147483648, %v2724_v45  ;;  %vm1639_vm1 = vweird.f32 %v2724_v45 }
 0x328   :  { %v1970_v47 = vpop.eup %1969  ;;  %v1590_v23 = vmul.f32 %v1968_v28, %v1567_v26  ;;  %v1578_v17 = vadd.f32 %v2719_v50, %v1577_v22  ;;  %vm1595_vm9 = vweird.f32 %v1968_v28  ;;  %v1643_v32 = vand.u32 2147483647, %v2724_v45 }
 0x329   :  { %v1972_v15 = vpop.eup %1971  ;;  %v1622_v29 = vmul.f32 %v2726_v14, %v1621_v9  ;;  %v2762_v53 = vadd.f32 1.0, %v1970_v47  ;;  %vm1596_vm3 = vmor %vm1594_vm4, %vm1595_vm9  ;;  %v1646_v41 = vor.u32 1.1754944e-38, %v1645_v31  ;;  %vm1684_vm7 = vweird.f32 %v2733_v10 }
 0x32a   :  { %v1974_v20 = vpop.eup %1973  ;;  %v1591_v8 = vsub.f32 1.0, %v1590_v23  ;;  %v1582_v61 = vsel %vm2756_vm10, %v2719_v50, %v1578_v17  ;;  %v2768_v55 = vadd.f32 1.0, %v1972_v15  ;;  %v1688_v46 = vand.u32 2147483647, %v2733_v10 }
 0x32b   :  { %v2745_v57 = vpop.eup %1975  ;;  %v1605_v0 = vmul.f32 %v1974_v20, %v2722_v7  ;;  %v1623_v59 = vadd.f32 %v2726_v14, %v1622_v29  ;;  %vm1610_vm6 = vweird.f32 %v1974_v20  ;;  %1979 = vrcp.f32 %v2762_v53 }
 0x32c   :  { %v1592_v52 = vmul.f32 %v1968_v28, %v1591_v8  ;;  %v1635_v18 = vmul.f32 %v2745_v57, %v2724_v45  ;;  %v2770_v1 = vpop.eup %1977  ;;  %v1587_v6 = vsel %vm2735_vm5, %v1586_v62, %v1582_v61  ;;  %vm1611_vm14 = vmor %vm1609_vm8, %vm1610_vm6  ;;  %1981 = vrcp.f32 %v2768_v55 }
 0x32d   :  { %v1606_v30 = vsub.f32 1.0, %v1605_v0  ;;  %v1680_v43 = vmul.f32 %v2770_v1, %v2733_v10  ;;  %v1627_v49 = vsel %vm2777_vm0, %v2726_v14, %v1623_v59  ;;  %vm1640_vm5 = vweird.f32 %v2745_v57 }
 0x32e   :  { %v1593_v37 = vadd.f32 %v1968_v28, %v1592_v52  ;;  %v1636_v5 = vsub.f32 1.0, %v1635_v18  ;;  %v1632_v24 = vsel %vm1629_vm12, %v1631_v36, %v1627_v49  ;;  %v1660_v25 = vand.u32 2147483648, %v2762_v53  ;;  %vm2813_vm4 = vmor %vm1639_vm1, %vm1640_vm5 }
 0x32f   :  { %v1607_v4 = vmul.f32 %v1974_v20, %v1606_v30  ;;  %v1681_v27 = vsub.f32 1.0, %v1680_v43  ;;  %v1690_v47 = vand.u32 2147483648, %v2733_v10  ;;  %vm1654_vm9 = vweird.f32 %v2762_v53 }
 0x330   :  { %v1597_v3 = vsel %vm1596_vm3, %v1968_v28, %v1593_v37  ;;  %v1637_v54 = vmul.f32 %v2745_v57, %v1636_v5  ;;  %v1658_v28 = vand.u32 2147483647, %v2762_v53  ;;  %v1675_v45 = vand.u32 2147483648, %v2768_v55 }
 0x331   :  { %v1602_v39 = vsel %vm2748_vm13, %v1601_v60, %v1597_v3  ;;  %v1608_v11 = vadd.f32 %v1974_v20, %v1607_v4  ;;  %v1980_v35 = vpop.eup %1979  ;;  %v1682_v51 = vmul.f32 %v2770_v1, %v1681_v27  ;;  %vm1685_vm13 = vweird.f32 %v2770_v1 }
 0x332   :  { %v1694_v56 = vpack.c.bf16 %v1602_v39, %v1587_v6  ;;  %v1650_v50 = vmul.f32 %v1980_v35, %v2762_v53  ;;  %v1982_v13 = vpop.eup %1981  ;;  %v1638_v7 = vadd.f32 %v2745_v57, %v1637_v54  ;;  %vm1655_vm15 = vweird.f32 %v1980_v35  ;;  %vm2828_vm6 = vmor %vm1684_vm7, %vm1685_vm13 }
 0x333   :  { %v1612_v38 = vsel %vm1611_vm14, %v1974_v20, %v1608_v11  ;;  %v1665_v12 = vmul.f32 %v1982_v13, %v2768_v55  ;;  %v1683_v33 = vadd.f32 %v2770_v1, %v1682_v51  ;;  %vm1656_vm10 = vmor %vm1654_vm9, %vm1655_vm15  ;;  %v1661_v15 = vor.u32 1.1754944e-38, %v1660_v25 }
 0x334   :  { %1698 = vst [vmem:[%s2845_s3] sm:$0xff] %v1694_v56  ;;  %v1617_v26 = vsel %vm1614_vm2, %v1616_v19, %v1612_v38  ;;  %v1651_v14 = vsub.f32 1.0, %v1650_v50  ;;  %v1642_v23 = vsel %vm2813_vm4, %v2745_v57, %v1638_v7  ;;  %vm1670_vm11 = vweird.f32 %v1982_v13 }
 0x335   :  { %v1695_v40 = vpack.c.bf16 %v1632_v24, %v1617_v26  ;;  %v1666_v34 = vsub.f32 1.0, %v1665_v12  ;;  %v1673_v29 = vand.u32 2147483647, %v2768_v55  ;;  %vm1644_vm3 = vcmp.eq.f32.partialorder %v1643_v32, 8.507059e+37 }
 0x336   :  { %v1652_v22 = vmul.f32 %v1980_v35, %v1651_v14  ;;  %vm1659_vm0 = vcmp.eq.f32.partialorder %v1658_v28, 8.507059e+37  ;;  %vm1669_vm8 = vweird.f32 %v2768_v55  ;;  %v1647_v2 = vsel %vm1644_vm3, %v1646_v41, %v1642_v23 }
 0x337   :  { %1699 = vst [vmem:[%s2845_s3 + $0x8] sm:$0xff] %v1695_v40  ;;  %v1667_v62 = vmul.f32 %v1982_v13, %v1666_v34  ;;  %v1687_v8 = vsel %vm2828_vm6, %v2770_v1, %v1683_v33  ;;  %v1691_v48 = vor.u32 1.1754944e-38, %v1690_v47  ;;  %vm1671_vm14 = vmor %vm1669_vm8, %vm1670_vm11  ;;  %v1676_v52 = vor.u32 1.1754944e-38, %v1675_v45 }
 0x338   :  { %v1653_v44 = vadd.f32 %v1980_v35, %v1652_v22  ;;  %vm1689_vm12 = vcmp.eq.f32.partialorder %v1688_v46, 8.507059e+37  ;;  %vm1674_vm2 = vcmp.eq.f32.partialorder %v1673_v29, 8.507059e+37 }
 0x339   :  { %v1668_v63 = vadd.f32 %v1982_v13, %v1667_v62  ;;  %v1692_v60 = vsel %vm1689_vm12, %v1691_v48, %v1687_v8 }
 0x33a   :  { %v1657_v17 = vsel %vm1656_vm10, %v1980_v35, %v1653_v44 }
 0x33b   :  { %v1662_v57 = vsel %vm1659_vm0, %v1661_v15, %v1657_v17  ;;  %v1672_v10 = vsel %vm1671_vm14, %v1982_v13, %v1668_v63 }
 0x33c   :  { %v1696_v0 = vpack.c.bf16 %v1662_v57, %v1647_v2  ;;  %v1677_v18 = vsel %vm1674_vm2, %v1676_v52, %v1672_v10 }
 0x33d   :  { %v1697_v42 = vpack.c.bf16 %v1692_v60, %v1677_v18 }
 0x33e   :  { %1700 = vst [vmem:[%s2845_s3 + $0x10] sm:$0xff] %v1696_v0 }
 0x33f   :  { %1701 = vst [vmem:[%s2845_s3 + $0x18] sm:$0xff] %v1697_v42 }
 0x340   :  { %1706 = vsyncpa [#allocation6], 1 }
 0x341   :  { %1707 = vsyncpa [#allocation8], 1 }

// kernel: bird_rgb_forward.3
= control target key start
LH: loop header
LB: loop body
LE: loop exit
PB: predicated region body
PF: predicated region fallthrough
CT: control target
= control target key end

     0   :  { %10 = vsyncpa [#allocation4], 0  ;;  %s7998_s0 = inlined_call_operand.vmem [shape: bf16[1,8192], index: 0, kind: input, shape index: {}]   ;;  %s7999_s1 = inlined_call_operand.hbm [shape: bf16[8192,128], index: 1, kind: input, shape index: {}]   ;;  %s8000_s2 = inlined_call_operand.vmem [shape: f32[128,2], index: 2, kind: input, shape index: {}]   ;;  %s8001_s3 = inlined_call_operand.hbm [shape: s32[1,1], index: 3, kind: output, shape index: {0}]   ;;  %s8002_s4 = inlined_call_operand.hbm [shape: f32[1,2], index: 4, kind: output, shape index: {1}]  }
   0x1   :  { %11 = vsyncpa [#allocation5], 0 }
   0x2   :  { %12 = vsyncpa [#allocation8], 0  ;;  %s19_s17 = sshll.u32 %s7999_s1, 4  ;;  %s7871_s18 = smov [#allocation3]   ;;  %s20_s17 = int_to_ptr.hbm [resolvable:$true] %s19_s17 }
   0x3   :  { %s21_s19 = sshll.u32 %s7871_s18, 4  ;;  %s7872_s20 = smov 64   ;;  %s22_s19 = int_to_ptr.vmem [resolvable:$true] %s21_s19 }
   0x4   :  { %s7873_s21 = smov 4  }
   0x5   :  { %27 = dma.hbm_to_vmem [thread:$0]  %s20_s17, 65536, %s22_s19, [#allocation4], %s7872_s20, %s7872_s20, %s7873_s21  }
   0x6   :  { %7865 = dma.done.wait [#allocation4], 65536  }
   0x7   :  { %7866 = vsyncadd [#allocation4], 4294901760  ;;  %v7282_v0 = vld [vmem:[#allocation3 + $0x38] sm:$0xff]  ;;  %v7281_v4 = vld [vmem:[#allocation3 + $0x30] sm:$0xff]  ;;  %vm5167_vm0 = vcmask 8192   ;;  %s5211_s17 = sshll.u32 %s8002_s4, 4  ;;  %s5212_s17 = int_to_ptr.hbm [resolvable:$true] %s5211_s17 }
   0x8   :  { %v7290_v1 = vld [vmem:[#allocation3 + $0x78] sm:$0xff]  ;;  %4292 = vmatpush.bf16.msra.mxu0 %v7282_v0  ;;  %v7289_v5 = vld [vmem:[#allocation3 + $0x70] sm:$0xff]  ;;  %v7280_v8 = vld [vmem:[#allocation3 + $0x28] sm:$0xff]  ;;  %s7876_s18 = smov [#allocation6]   ;;  %s5200_s1 = sshll.u32 %s8001_s3, 4  ;;  %vm5191_vm3 = vcmask 0   ;;  %s5201_s1 = int_to_ptr.hbm [resolvable:$true] %s5200_s1 }
   0x9   :  { %v7298_v2 = vld [vmem:[#allocation3 + $0xb8] sm:$0xff]  ;;  %4305 = vmatpush.bf16.msra.mxu1 %v7290_v1  ;;  %v7297_v6 = vld [vmem:[#allocation3 + $0xb0] sm:$0xff]  ;;  %v7288_v9 = vld [vmem:[#allocation3 + $0x68] sm:$0xff]  ;;  %s5198_s19 = sshll.u32 %s7876_s18, 4  ;;  %s5199_s19 = int_to_ptr.vmem [resolvable:$true] %s5198_s19 }
   0xa   :  { %v7306_v3 = vld [vmem:[#allocation3 + $0xf8] sm:$0xff]  ;;  %4318 = vmatpush.bf16.msra.mxu2 %v7298_v2  ;;  %v7305_v7 = vld [vmem:[#allocation3 + $0xf0] sm:$0xff]  ;;  %v7296_v10 = vld [vmem:[#allocation3 + $0xa8] sm:$0xff] }
   0xb   :  { %4331 = vmatpush.bf16.msra.mxu3 %v7306_v3  ;;  %v7304_v11 = vld [vmem:[#allocation3 + $0xe8] sm:$0xff]  ;;  %v7279_v12 = vld [vmem:[#allocation3 + $0x20] sm:$0xff]  ;;  %v7278_v16 = vld [vmem:[#allocation3 + $0x18] sm:$0xff] }
   0xc   :  { %4293 = vmatpush.bf16.msra.mxu0 %v7281_v4  ;;  %v7287_v13 = vld [vmem:[#allocation3 + $0x60] sm:$0xff]  ;;  %v7286_v17 = vld [vmem:[#allocation3 + $0x58] sm:$0xff]  ;;  %v7277_v21 = vld [vmem:[#allocation3 + $0x10] sm:$0xff] }
   0xd   :  { %4306 = vmatpush.bf16.msra.mxu1 %v7289_v5  ;;  %v7295_v14 = vld [vmem:[#allocation3 + $0xa0] sm:$0xff]  ;;  %v7294_v18 = vld [vmem:[#allocation3 + $0x98] sm:$0xff]  ;;  %v7285_v22 = vld [vmem:[#allocation3 + $0x50] sm:$0xff] }
   0xe   :  { %4319 = vmatpush.bf16.msra.mxu2 %v7297_v6  ;;  %v7303_v15 = vld [vmem:[#allocation3 + $0xe0] sm:$0xff]  ;;  %v7302_v19 = vld [vmem:[#allocation3 + $0xd8] sm:$0xff]  ;;  %v7293_v23 = vld [vmem:[#allocation3 + $0x90] sm:$0xff] }
   0xf   :  { %4332 = vmatpush.bf16.msra.mxu3 %v7305_v7  ;;  %v43_v20 = vld [vmem:[%s7998_s0] sm:$0xff]  ;;  %v7276_v25 = vld [vmem:[#allocation3 + $0x8] sm:$0xff]  ;;  %v7275_v29 = vld [vmem:[#allocation3] sm:$0xff] }
  0x10   :  { %4294 = vmatpush.bf16.msra.mxu0 %v7280_v8  ;;  %1077 = vst [vmem:[#allocation1] ss:$9 sm:$0xff] %v43_v20  ;;  %v7301_v24 = vld [vmem:[#allocation3 + $0xd0] sm:$0xff]  ;;  %v7284_v26 = vld [vmem:[#allocation3 + $0x48] sm:$0xff]  ;;  %v7283_v30 = vld [vmem:[#allocation3 + $0x40] sm:$0xff] }
  0x11   :  { %4307 = vmatpush.bf16.msra.mxu1 %v7288_v9  ;;  %v7292_v27 = vld [vmem:[#allocation3 + $0x88] sm:$0xff]  ;;  %v7291_v31 = vld [vmem:[#allocation3 + $0x80] sm:$0xff]  ;;  %v7314_v33 = vld [vmem:[#allocation3 + $0x138] sm:$0xff] }
  0x12   :  { %4320 = vmatpush.bf16.msra.mxu2 %v7296_v10  ;;  %v7300_v28 = vld [vmem:[#allocation3 + $0xc8] sm:$0xff]  ;;  %v7299_v32 = vld [vmem:[#allocation3 + $0xc0] sm:$0xff]  ;;  %v7322_v34 = vld [vmem:[#allocation3 + $0x178] sm:$0xff] }
  0x13   :  { %4333 = vmatpush.bf16.msra.mxu3 %v7304_v11  ;;  %v7330_v35 = vld [vmem:[#allocation3 + $0x1b8] sm:$0xff]  ;;  %v7313_v37 = vld [vmem:[#allocation3 + $0x130] sm:$0xff]  ;;  %v7312_v45 = vld [vmem:[#allocation3 + $0x128] sm:$0xff] }
  0x14   :  { %4295 = vmatpush.bf16.msra.mxu0 %v7279_v12  ;;  %v7338_v36 = vld [vmem:[#allocation3 + $0x1f8] sm:$0xff]  ;;  %v7321_v40 = vld [vmem:[#allocation3 + $0x170] sm:$0xff]  ;;  %v7320_v46 = vld [vmem:[#allocation3 + $0x168] sm:$0xff] }
  0x15   :  { %4308 = vmatpush.bf16.msra.mxu1 %v7287_v13  ;;  %v7329_v43 = vld [vmem:[#allocation3 + $0x1b0] sm:$0xff]  ;;  %v7328_v47 = vld [vmem:[#allocation3 + $0x1a8] sm:$0xff]  ;;  %v7311_v49 = vld [vmem:[#allocation3 + $0x120] sm:$0xff] }
  0x16   :  { %4321 = vmatpush.bf16.msra.mxu2 %v7295_v14  ;;  %v7337_v44 = vld [vmem:[#allocation3 + $0x1f0] sm:$0xff]  ;;  %v7336_v48 = vld [vmem:[#allocation3 + $0x1e8] sm:$0xff]  ;;  %v7319_v50 = vld [vmem:[#allocation3 + $0x160] sm:$0xff] }
  0x17   :  { %4334 = vmatpush.bf16.msra.mxu3 %v7303_v15  ;;  %v1080_v38 = vld [vmem:[#allocation1 + $0x12] sm:$0xff]  ;;  %v1078_v39 = vld [vmem:[#allocation1] sm:$0xff]  ;;  %v1079_v42 = vld [vmem:[#allocation1 + $0x9] sm:$0xff] }
  0x18   :  { %4296 = vmatpush.bf16.msra.mxu0 %v7278_v16  ;;  %v1081_v41 = vld [vmem:[#allocation1 + $0x1b] sm:$0xff]  ;;  %v7327_v51 = vld [vmem:[#allocation3 + $0x1a0] sm:$0xff]  ;;  %v7308_v61 = vld [vmem:[#allocation3 + $0x108] sm:$0xff] }
  0x19   :  { %4309 = vmatpush.bf16.msra.mxu1 %v7286_v17  ;;  %v7335_v52 = vld [vmem:[#allocation3 + $0x1e0] sm:$0xff]  ;;  %v7310_v53 = vld [vmem:[#allocation3 + $0x118] sm:$0xff]  ;;  %v7309_v57 = vld [vmem:[#allocation3 + $0x110] sm:$0xff] }
  0x1a   :  { %4322 = vmatpush.bf16.msra.mxu2 %v7294_v18  ;;  %v7318_v54 = vld [vmem:[#allocation3 + $0x158] sm:$0xff]  ;;  %v7317_v58 = vld [vmem:[#allocation3 + $0x150] sm:$0xff]  ;;  %v7316_v62 = vld [vmem:[#allocation3 + $0x148] sm:$0xff] }
  0x1b   :  { %4335 = vmatpush.bf16.msra.mxu3 %v7302_v19  ;;  %v7326_v55 = vld [vmem:[#allocation3 + $0x198] sm:$0xff]  ;;  %v7325_v59 = vld [vmem:[#allocation3 + $0x190] sm:$0xff]  ;;  %v7324_v63 = vld [vmem:[#allocation3 + $0x188] sm:$0xff] }
  0x1c   :  { %4297 = vmatpush.bf16.msra.mxu0 %v7277_v21  ;;  %v7334_v56 = vld [vmem:[#allocation3 + $0x1d8] sm:$0xff]  ;;  %v7333_v60 = vld [vmem:[#allocation3 + $0x1d0] sm:$0xff]  ;;  %v7332_v0 = vld [vmem:[#allocation3 + $0x1c8] sm:$0xff] }
  0x1d   :  { %4310 = vmatpush.bf16.msra.mxu1 %v7285_v22  ;;  %v1084_v1 = vld [vmem:[#allocation1 + $0x36] sm:$0xff]  ;;  %v1082_v2 = vld [vmem:[#allocation1 + $0x24] sm:$0xff]  ;;  %v1083_v4 = vld [vmem:[#allocation1 + $0x2d] sm:$0xff] }
  0x1e   :  { %4323 = vmatpush.bf16.msra.mxu2 %v7293_v23  ;;  %v1085_v3 = vld [vmem:[#allocation1 + $0x3f] sm:$0xff]  ;;  %v44_v5 = vld [vmem:[%s7998_s0 + $0x8] sm:$0xff]  ;;  %v7344_v18 = vld [vmem:[#allocation3 + $0x228] sm:$0xff] }
  0x1f   :  { %4336 = vmatpush.bf16.msra.mxu3 %v7301_v24  ;;  %1087 = vst [vmem:[#allocation1] ss:$9 sm:$0xff] %v44_v5  ;;  %v7307_v6 = vld [vmem:[#allocation3 + $0x100] sm:$0xff]  ;;  %v7346_v10 = vld [vmem:[#allocation3 + $0x238] sm:$0xff]  ;;  %v7345_v14 = vld [vmem:[#allocation3 + $0x230] sm:$0xff] }
  0x20   :  { %4298 = vmatpush.bf16.msra.mxu0 %v7276_v25  ;;  %v7315_v7 = vld [vmem:[#allocation3 + $0x140] sm:$0xff]  ;;  %v7354_v11 = vld [vmem:[#allocation3 + $0x278] sm:$0xff]  ;;  %v7353_v15 = vld [vmem:[#allocation3 + $0x270] sm:$0xff] }
  0x21   :  { %4311 = vmatpush.bf16.msra.mxu1 %v7284_v26  ;;  %v7323_v8 = vld [vmem:[#allocation3 + $0x180] sm:$0xff]  ;;  %v7362_v12 = vld [vmem:[#allocation3 + $0x2b8] sm:$0xff]  ;;  %v7361_v16 = vld [vmem:[#allocation3 + $0x2b0] sm:$0xff] }
  0x22   :  { %4324 = vmatpush.bf16.msra.mxu2 %v7292_v27  ;;  %v7331_v9 = vld [vmem:[#allocation3 + $0x1c0] sm:$0xff]  ;;  %v7370_v13 = vld [vmem:[#allocation3 + $0x2f8] sm:$0xff]  ;;  %v7369_v17 = vld [vmem:[#allocation3 + $0x2f0] sm:$0xff] }
  0x23   :  { %4337 = vmatpush.bf16.msra.mxu3 %v7300_v28  ;;  %v7352_v19 = vld [vmem:[#allocation3 + $0x268] sm:$0xff]  ;;  %v7343_v22 = vld [vmem:[#allocation3 + $0x220] sm:$0xff]  ;;  %v7342_v26 = vld [vmem:[#allocation3 + $0x218] sm:$0xff] }
  0x24   :  { %4299 = vmatpush.bf16.msra.mxu0 %v7275_v29  ;;  %v7360_v20 = vld [vmem:[#allocation3 + $0x2a8] sm:$0xff]  ;;  %v7351_v23 = vld [vmem:[#allocation3 + $0x260] sm:$0xff]  ;;  %v7350_v27 = vld [vmem:[#allocation3 + $0x258] sm:$0xff] }
  0x25   :  { %4312 = vmatpush.bf16.msra.mxu1 %v7283_v30  ;;  %v7368_v21 = vld [vmem:[#allocation3 + $0x2e8] sm:$0xff]  ;;  %v7359_v24 = vld [vmem:[#allocation3 + $0x2a0] sm:$0xff]  ;;  %v7358_v28 = vld [vmem:[#allocation3 + $0x298] sm:$0xff] }
  0x26   :  { %4325 = vmatpush.bf16.msra.mxu2 %v7291_v31  ;;  %v7367_v25 = vld [vmem:[#allocation3 + $0x2e0] sm:$0xff]  ;;  %v7366_v29 = vld [vmem:[#allocation3 + $0x2d8] sm:$0xff]  ;;  %v7341_v30 = vld [vmem:[#allocation3 + $0x210] sm:$0xff] }
  0x27   :  { %4338 = vmatpush.bf16.msra.mxu3 %v7299_v32  ;;  %4300 = vmatmul.bf16.vlgmr.msra.gmra.mxu0 %v1078_v39  ;;  %v7349_v31 = vld [vmem:[#allocation3 + $0x250] sm:$0xff]  ;;  %v7347_v39 = vld [vmem:[#allocation3 + $0x240] sm:$0xff] }
  0x28   :  { %4344 = vmatpush.bf16.msrb.mxu0 %v7314_v33  ;;  %4313 = vmatmul.bf16.vlgmr.msra.gmra.mxu1 %v1079_v42  ;;  %v7357_v32 = vld [vmem:[#allocation3 + $0x290] sm:$0xff]  ;;  %v7378_v42 = vld [vmem:[#allocation3 + $0x338] sm:$0xff] }
  0x29   :  { %4357 = vmatpush.bf16.msrb.mxu1 %v7322_v34  ;;  %4326 = vmatmul.bf16.vlgmr.msra.gmra.mxu2 %v1080_v38  ;;  %v7365_v33 = vld [vmem:[#allocation3 + $0x2d0] sm:$0xff]  ;;  %v7340_v34 = vld [vmem:[#allocation3 + $0x208] sm:$0xff]  ;;  %v7339_v38 = vld [vmem:[#allocation3 + $0x200] sm:$0xff] }
  0x2a   :  { %4370 = vmatpush.bf16.msrb.mxu2 %v7330_v35  ;;  %4339 = vmatmul.bf16.vlgmr.msra.gmra.mxu3 %v1081_v41  ;;  %v7348_v35 = vld [vmem:[#allocation3 + $0x248] sm:$0xff]  ;;  %v7363_v41 = vld [vmem:[#allocation3 + $0x2c0] sm:$0xff]  ;;  %v7397_v5 = vld [vmem:[#allocation3 + $0x3d0] sm:$0xff] }
  0x2b   :  { %4383 = vmatpush.bf16.msrb.mxu3 %v7338_v36  ;;  %v7356_v36 = vld [vmem:[#allocation3 + $0x288] sm:$0xff] }
  0x2c   :  { %4345 = vmatpush.bf16.msrb.mxu0 %v7313_v37  ;;  %v7364_v37 = vld [vmem:[#allocation3 + $0x2c8] sm:$0xff] }
  0x2d   :  { %4358 = vmatpush.bf16.msrb.mxu1 %v7321_v40  ;;  %v7355_v40 = vld [vmem:[#allocation3 + $0x280] sm:$0xff] }
  0x2e   :  { %4371 = vmatpush.bf16.msrb.mxu2 %v7329_v43  ;;  %v7386_v43 = vld [vmem:[#allocation3 + $0x378] sm:$0xff] }
  0x2f   :  { %4384 = vmatpush.bf16.msrb.mxu3 %v7337_v44  ;;  %v7394_v44 = vld [vmem:[#allocation3 + $0x3b8] sm:$0xff] }
  0x30   :  { %4346 = vmatpush.bf16.msrb.mxu0 %v7312_v45  ;;  %v7402_v45 = vld [vmem:[#allocation3 + $0x3f8] sm:$0xff] }
  0x31   :  { %4359 = vmatpush.bf16.msrb.mxu1 %v7320_v46  ;;  %v1088_v46 = vld [vmem:[#allocation1] sm:$0xff] }
  0x32   :  { %4372 = vmatpush.bf16.msrb.mxu2 %v7328_v47  ;;  %v1090_v47 = vld [vmem:[#allocation1 + $0x12] sm:$0xff] }
  0x33   :  { %4385 = vmatpush.bf16.msrb.mxu3 %v7336_v48  ;;  %v1089_v48 = vld [vmem:[#allocation1 + $0x9] sm:$0xff] }
  0x34   :  { %4347 = vmatpush.bf16.msrb.mxu0 %v7311_v49  ;;  %v1091_v49 = vld [vmem:[#allocation1 + $0x1b] sm:$0xff] }
  0x35   :  { %4360 = vmatpush.bf16.msrb.mxu1 %v7319_v50  ;;  %v7377_v50 = vld [vmem:[#allocation3 + $0x330] sm:$0xff] }
  0x36   :  { %4373 = vmatpush.bf16.msrb.mxu2 %v7327_v51  ;;  %v7385_v51 = vld [vmem:[#allocation3 + $0x370] sm:$0xff] }
  0x37   :  { %4386 = vmatpush.bf16.msrb.mxu3 %v7335_v52  ;;  %v7393_v52 = vld [vmem:[#allocation3 + $0x3b0] sm:$0xff] }
  0x38   :  { %4348 = vmatpush.bf16.msrb.mxu0 %v7310_v53  ;;  %v7401_v53 = vld [vmem:[#allocation3 + $0x3f0] sm:$0xff] }
  0x39   :  { %4361 = vmatpush.bf16.msrb.mxu1 %v7318_v54  ;;  %v7376_v54 = vld [vmem:[#allocation3 + $0x328] sm:$0xff] }
  0x3a   :  { %4374 = vmatpush.bf16.msrb.mxu2 %v7326_v55  ;;  %v7384_v55 = vld [vmem:[#allocation3 + $0x368] sm:$0xff] }
  0x3b   :  { %4387 = vmatpush.bf16.msrb.mxu3 %v7334_v56  ;;  %v7392_v56 = vld [vmem:[#allocation3 + $0x3a8] sm:$0xff] }
  0x3c   :  { %4349 = vmatpush.bf16.msrb.mxu0 %v7309_v57  ;;  %v7400_v57 = vld [vmem:[#allocation3 + $0x3e8] sm:$0xff] }
  0x3d   :  { %4362 = vmatpush.bf16.msrb.mxu1 %v7317_v58  ;;  %v7375_v58 = vld [vmem:[#allocation3 + $0x320] sm:$0xff] }
  0x3e   :  { %4375 = vmatpush.bf16.msrb.mxu2 %v7325_v59  ;;  %v7383_v59 = vld [vmem:[#allocation3 + $0x360] sm:$0xff] }
  0x3f   :  { %4388 = vmatpush.bf16.msrb.mxu3 %v7333_v60  ;;  %v7391_v60 = vld [vmem:[#allocation3 + $0x3a0] sm:$0xff] }
  0x40   :  { %4350 = vmatpush.bf16.msrb.mxu0 %v7308_v61  ;;  %v7399_v61 = vld [vmem:[#allocation3 + $0x3e0] sm:$0xff] }
  0x41   :  { %4363 = vmatpush.bf16.msrb.mxu1 %v7316_v62  ;;  %v7374_v62 = vld [vmem:[#allocation3 + $0x318] sm:$0xff] }
  0x42   :  { %4376 = vmatpush.bf16.msrb.mxu2 %v7324_v63  ;;  %v7382_v63 = vld [vmem:[#allocation3 + $0x358] sm:$0xff] }
  0x43   :  { %4389 = vmatpush.bf16.msrb.mxu3 %v7332_v0  ;;  %v7390_v0 = vld [vmem:[#allocation3 + $0x398] sm:$0xff] }
  0x44   :  { %4351 = vmatpush.bf16.msrb.mxu0 %v7307_v6  ;;  %v7372_v6 = vld [vmem:[#allocation3 + $0x308] sm:$0xff] }
  0x45   :  { %4364 = vmatpush.bf16.msrb.mxu1 %v7315_v7  ;;  %v7380_v7 = vld [vmem:[#allocation3 + $0x348] sm:$0xff] }
  0x46   :  { %4377 = vmatpush.bf16.msrb.mxu2 %v7323_v8  ;;  %v7388_v8 = vld [vmem:[#allocation3 + $0x388] sm:$0xff] }
  0x47   :  { %4390 = vmatpush.bf16.msrb.mxu3 %v7331_v9  ;;  %4352 = vmatmul.bf16.vlgmr.msrb.gmra.mxu0 %v1082_v2  ;;  %v7373_v2 = vld [vmem:[#allocation3 + $0x310] sm:$0xff]  ;;  %v7396_v9 = vld [vmem:[#allocation3 + $0x3c8] sm:$0xff] }
  0x48   :  { %4396 = vmatpush.bf16.msra.mxu0 %v7346_v10  ;;  %4365 = vmatmul.bf16.vlgmr.msrb.gmra.mxu1 %v1083_v4  ;;  %v7389_v4 = vld [vmem:[#allocation3 + $0x390] sm:$0xff]  ;;  %v1092_v10 = vld [vmem:[#allocation1 + $0x24] sm:$0xff] }
  0x49   :  { %4409 = vmatpush.bf16.msra.mxu1 %v7354_v11  ;;  %4378 = vmatmul.bf16.vlgmr.msrb.gmra.mxu2 %v1084_v1  ;;  %v7398_v1 = vld [vmem:[#allocation3 + $0x3d8] sm:$0xff]  ;;  %v1094_v11 = vld [vmem:[#allocation1 + $0x36] sm:$0xff] }
  0x4a   :  { %4422 = vmatpush.bf16.msra.mxu2 %v7362_v12  ;;  %4391 = vmatmul.bf16.vlgmr.msrb.gmra.mxu3 %v1085_v3  ;;  %v7381_v3 = vld [vmem:[#allocation3 + $0x350] sm:$0xff]  ;;  %v1093_v12 = vld [vmem:[#allocation1 + $0x2d] sm:$0xff] }
  0x4b   :  { %4435 = vmatpush.bf16.msra.mxu3 %v7370_v13  ;;  %v1095_v13 = vld [vmem:[#allocation1 + $0x3f] sm:$0xff] }
  0x4c   :  { %4397 = vmatpush.bf16.msra.mxu0 %v7345_v14  ;;  %v45_v14 = vld [vmem:[%s7998_s0 + $0x10] sm:$0xff] }
  0x4d   :  { %4410 = vmatpush.bf16.msra.mxu1 %v7353_v15  ;;  %1097 = vst [vmem:[#allocation1] ss:$9 sm:$0xff] %v45_v14  ;;  %v7371_v15 = vld [vmem:[#allocation3 + $0x300] sm:$0xff] }
  0x4e   :  { %4423 = vmatpush.bf16.msra.mxu2 %v7361_v16  ;;  %v7379_v16 = vld [vmem:[#allocation3 + $0x340] sm:$0xff] }
  0x4f   :  { %4436 = vmatpush.bf16.msra.mxu3 %v7369_v17  ;;  %v7387_v17 = vld [vmem:[#allocation3 + $0x380] sm:$0xff] }
  0x50   :  { %4398 = vmatpush.bf16.msra.mxu0 %v7344_v18  ;;  %v7395_v18 = vld [vmem:[#allocation3 + $0x3c0] sm:$0xff] }
  0x51   :  { %4411 = vmatpush.bf16.msra.mxu1 %v7352_v19  ;;  %v7410_v19 = vld [vmem:[#allocation3 + $0x438] sm:$0xff] }
  0x52   :  { %4424 = vmatpush.bf16.msra.mxu2 %v7360_v20  ;;  %v7418_v20 = vld [vmem:[#allocation3 + $0x478] sm:$0xff] }
  0x53   :  { %4437 = vmatpush.bf16.msra.mxu3 %v7368_v21  ;;  %v7426_v21 = vld [vmem:[#allocation3 + $0x4b8] sm:$0xff] }
  0x54   :  { %4399 = vmatpush.bf16.msra.mxu0 %v7343_v22  ;;  %v7434_v22 = vld [vmem:[#allocation3 + $0x4f8] sm:$0xff] }
  0x55   :  { %4412 = vmatpush.bf16.msra.mxu1 %v7351_v23  ;;  %v7409_v23 = vld [vmem:[#allocation3 + $0x430] sm:$0xff] }
  0x56   :  { %4425 = vmatpush.bf16.msra.mxu2 %v7359_v24  ;;  %v7417_v24 = vld [vmem:[#allocation3 + $0x470] sm:$0xff] }
  0x57   :  { %4438 = vmatpush.bf16.msra.mxu3 %v7367_v25  ;;  %v7425_v25 = vld [vmem:[#allocation3 + $0x4b0] sm:$0xff] }
  0x58   :  { %4400 = vmatpush.bf16.msra.mxu0 %v7342_v26  ;;  %v7433_v26 = vld [vmem:[#allocation3 + $0x4f0] sm:$0xff] }
  0x59   :  { %4413 = vmatpush.bf16.msra.mxu1 %v7350_v27  ;;  %v7408_v27 = vld [vmem:[#allocation3 + $0x428] sm:$0xff] }
  0x5a   :  { %4426 = vmatpush.bf16.msra.mxu2 %v7358_v28  ;;  %v7416_v28 = vld [vmem:[#allocation3 + $0x468] sm:$0xff] }
  0x5b   :  { %4439 = vmatpush.bf16.msra.mxu3 %v7366_v29  ;;  %v7424_v29 = vld [vmem:[#allocation3 + $0x4a8] sm:$0xff] }
  0x5c   :  { %4401 = vmatpush.bf16.msra.mxu0 %v7341_v30  ;;  %v7432_v30 = vld [vmem:[#allocation3 + $0x4e8] sm:$0xff] }
  0x5d   :  { %4414 = vmatpush.bf16.msra.mxu1 %v7349_v31  ;;  %v7407_v31 = vld [vmem:[#allocation3 + $0x420] sm:$0xff] }
  0x5e   :  { %4427 = vmatpush.bf16.msra.mxu2 %v7357_v32  ;;  %v7415_v32 = vld [vmem:[#allocation3 + $0x460] sm:$0xff] }
  0x5f   :  { %4440 = vmatpush.bf16.msra.mxu3 %v7365_v33  ;;  %v7423_v33 = vld [vmem:[#allocation3 + $0x4a0] sm:$0xff] }
  0x60   :  { %4402 = vmatpush.bf16.msra.mxu0 %v7340_v34  ;;  %v7431_v34 = vld [vmem:[#allocation3 + $0x4e0] sm:$0xff] }
  0x61   :  { %4415 = vmatpush.bf16.msra.mxu1 %v7348_v35  ;;  %v7406_v35 = vld [vmem:[#allocation3 + $0x418] sm:$0xff] }
  0x62   :  { %4428 = vmatpush.bf16.msra.mxu2 %v7356_v36  ;;  %v7414_v36 = vld [vmem:[#allocation3 + $0x458] sm:$0xff] }
  0x63   :  { %4441 = vmatpush.bf16.msra.mxu3 %v7364_v37  ;;  %v7422_v37 = vld [vmem:[#allocation3 + $0x498] sm:$0xff] }
  0x64   :  { %4403 = vmatpush.bf16.msra.mxu0 %v7339_v38  ;;  %v7430_v38 = vld [vmem:[#allocation3 + $0x4d8] sm:$0xff] }
  0x65   :  { %4416 = vmatpush.bf16.msra.mxu1 %v7347_v39  ;;  %v7405_v39 = vld [vmem:[#allocation3 + $0x410] sm:$0xff] }
  0x66   :  { %4429 = vmatpush.bf16.msra.mxu2 %v7355_v40  ;;  %v7413_v40 = vld [vmem:[#allocation3 + $0x450] sm:$0xff] }
  0x67   :  { %4442 = vmatpush.bf16.msra.mxu3 %v7363_v41  ;;  %4404 = vmatmul.bf16.vlgmr.msra.gmra.mxu0 %v1088_v46  ;;  %v7421_v41 = vld [vmem:[#allocation3 + $0x490] sm:$0xff]  ;;  %v7428_v46 = vld [vmem:[#allocation3 + $0x4c8] sm:$0xff] }
  0x68   :  { %4448 = vmatpush.bf16.msrb.mxu0 %v7378_v42  ;;  %4417 = vmatmul.bf16.vlgmr.msra.gmra.mxu1 %v1089_v48  ;;  %v7429_v42 = vld [vmem:[#allocation3 + $0x4d0] sm:$0xff]  ;;  %v7411_v48 = vld [vmem:[#allocation3 + $0x440] sm:$0xff] }
  0x69   :  { %4461 = vmatpush.bf16.msrb.mxu1 %v7386_v43  ;;  %4430 = vmatmul.bf16.vlgmr.msra.gmra.mxu2 %v1090_v47  ;;  %v7404_v43 = vld [vmem:[#allocation3 + $0x408] sm:$0xff]  ;;  %v7403_v47 = vld [vmem:[#allocation3 + $0x400] sm:$0xff] }
  0x6a   :  { %4474 = vmatpush.bf16.msrb.mxu2 %v7394_v44  ;;  %4443 = vmatmul.bf16.vlgmr.msra.gmra.mxu3 %v1091_v49  ;;  %v7412_v44 = vld [vmem:[#allocation3 + $0x448] sm:$0xff]  ;;  %v7419_v49 = vld [vmem:[#allocation3 + $0x480] sm:$0xff] }
  0x6b   :  { %4487 = vmatpush.bf16.msrb.mxu3 %v7402_v45  ;;  %v7420_v45 = vld [vmem:[#allocation3 + $0x488] sm:$0xff] }
  0x6c   :  { %4449 = vmatpush.bf16.msrb.mxu0 %v7377_v50  ;;  %v7427_v50 = vld [vmem:[#allocation3 + $0x4c0] sm:$0xff] }
  0x6d   :  { %4462 = vmatpush.bf16.msrb.mxu1 %v7385_v51  ;;  %v7442_v51 = vld [vmem:[#allocation3 + $0x538] sm:$0xff] }
  0x6e   :  { %4475 = vmatpush.bf16.msrb.mxu2 %v7393_v52  ;;  %v7450_v52 = vld [vmem:[#allocation3 + $0x578] sm:$0xff] }
  0x6f   :  { %4488 = vmatpush.bf16.msrb.mxu3 %v7401_v53  ;;  %v7458_v53 = vld [vmem:[#allocation3 + $0x5b8] sm:$0xff] }
  0x70   :  { %4450 = vmatpush.bf16.msrb.mxu0 %v7376_v54  ;;  %v7466_v54 = vld [vmem:[#allocation3 + $0x5f8] sm:$0xff] }
  0x71   :  { %4463 = vmatpush.bf16.msrb.mxu1 %v7384_v55  ;;  %v1098_v55 = vld [vmem:[#allocation1] sm:$0xff] }
  0x72   :  { %4476 = vmatpush.bf16.msrb.mxu2 %v7392_v56  ;;  %v1100_v56 = vld [vmem:[#allocation1 + $0x12] sm:$0xff] }
  0x73   :  { %4489 = vmatpush.bf16.msrb.mxu3 %v7400_v57  ;;  %v1099_v57 = vld [vmem:[#allocation1 + $0x9] sm:$0xff] }
  0x74   :  { %4451 = vmatpush.bf16.msrb.mxu0 %v7375_v58  ;;  %v1101_v58 = vld [vmem:[#allocation1 + $0x1b] sm:$0xff] }
  0x75   :  { %4464 = vmatpush.bf16.msrb.mxu1 %v7383_v59  ;;  %v7441_v59 = vld [vmem:[#allocation3 + $0x530] sm:$0xff] }
  0x76   :  { %4477 = vmatpush.bf16.msrb.mxu2 %v7391_v60  ;;  %v7449_v60 = vld [vmem:[#allocation3 + $0x570] sm:$0xff] }
  0x77   :  { %4490 = vmatpush.bf16.msrb.mxu3 %v7399_v61  ;;  %v7457_v61 = vld [vmem:[#allocation3 + $0x5b0] sm:$0xff] }
  0x78   :  { %4452 = vmatpush.bf16.msrb.mxu0 %v7374_v62  ;;  %v7465_v62 = vld [vmem:[#allocation3 + $0x5f0] sm:$0xff] }
  0x79   :  { %4465 = vmatpush.bf16.msrb.mxu1 %v7382_v63  ;;  %v7440_v63 = vld [vmem:[#allocation3 + $0x528] sm:$0xff] }
  0x7a   :  { %4478 = vmatpush.bf16.msrb.mxu2 %v7390_v0  ;;  %v7448_v0 = vld [vmem:[#allocation3 + $0x568] sm:$0xff] }
  0x7b   :  { %4491 = vmatpush.bf16.msrb.mxu3 %v7398_v1  ;;  %v7456_v1 = vld [vmem:[#allocation3 + $0x5a8] sm:$0xff] }
  0x7c   :  { %4453 = vmatpush.bf16.msrb.mxu0 %v7373_v2  ;;  %v7464_v2 = vld [vmem:[#allocation3 + $0x5e8] sm:$0xff] }
  0x7d   :  { %4466 = vmatpush.bf16.msrb.mxu1 %v7381_v3 }
  0x7e   :  { %4479 = vmatpush.bf16.msrb.mxu2 %v7389_v4  ;;  %v7439_v4 = vld [vmem:[#allocation3 + $0x520] sm:$0xff] }
  0x7f   :  { %4492 = vmatpush.bf16.msrb.mxu3 %v7397_v5  ;;  %v7447_v5 = vld [vmem:[#allocation3 + $0x560] sm:$0xff] }
  0x80   :  { %4454 = vmatpush.bf16.msrb.mxu0 %v7372_v6 }
  0x81   :  { %4467 = vmatpush.bf16.msrb.mxu1 %v7380_v7  ;;  %v7455_v7 = vld [vmem:[#allocation3 + $0x5a0] sm:$0xff] }
  0x82   :  { %4480 = vmatpush.bf16.msrb.mxu2 %v7388_v8  ;;  %v7463_v8 = vld [vmem:[#allocation3 + $0x5e0] sm:$0xff] }
  0x83   :  { %4493 = vmatpush.bf16.msrb.mxu3 %v7396_v9 }
  0x84   :  { %4455 = vmatpush.bf16.msrb.mxu0 %v7371_v15 }
  0x85   :  { %4468 = vmatpush.bf16.msrb.mxu1 %v7379_v16 }
  0x86   :  { %4481 = vmatpush.bf16.msrb.mxu2 %v7387_v17 }
  0x87   :  { %4494 = vmatpush.bf16.msrb.mxu3 %v7395_v18  ;;  %4456 = vmatmul.bf16.vlgmr.msrb.gmra.mxu0 %v1092_v10  ;;  %v7438_v10 = vld [vmem:[#allocation3 + $0x518] sm:$0xff]  ;;  %v7437_v18 = vld [vmem:[#allocation3 + $0x510] sm:$0xff] }
  0x88   :  { %4500 = vmatpush.bf16.msra.mxu0 %v7410_v19  ;;  %4469 = vmatmul.bf16.vlgmr.msrb.gmra.mxu1 %v1093_v12  ;;  %v7454_v12 = vld [vmem:[#allocation3 + $0x598] sm:$0xff]  ;;  %v7445_v19 = vld [vmem:[#allocation3 + $0x550] sm:$0xff] }
  0x89   :  { %4513 = vmatpush.bf16.msra.mxu1 %v7418_v20  ;;  %4482 = vmatmul.bf16.vlgmr.msrb.gmra.mxu2 %v1094_v11  ;;  %v7446_v11 = vld [vmem:[#allocation3 + $0x558] sm:$0xff] }
  0x8a   :  { %4526 = vmatpush.bf16.msra.mxu2 %v7426_v21  ;;  %4495 = vmatmul.bf16.vlgmr.msrb.gmra.mxu3 %v1095_v13  ;;  %v7462_v13 = vld [vmem:[#allocation3 + $0x5d8] sm:$0xff] }
  0x8b   :  { %4539 = vmatpush.bf16.msra.mxu3 %v7434_v22  ;;  %v7453_v22 = vld [vmem:[#allocation3 + $0x590] sm:$0xff] }
  0x8c   :  { %4501 = vmatpush.bf16.msra.mxu0 %v7409_v23  ;;  %v7461_v23 = vld [vmem:[#allocation3 + $0x5d0] sm:$0xff] }
  0x8d   :  { %4514 = vmatpush.bf16.msra.mxu1 %v7417_v24  ;;  %v7436_v24 = vld [vmem:[#allocation3 + $0x508] sm:$0xff] }
  0x8e   :  { %4527 = vmatpush.bf16.msra.mxu2 %v7425_v25  ;;  %v7444_v25 = vld [vmem:[#allocation3 + $0x548] sm:$0xff] }
  0x8f   :  { %4540 = vmatpush.bf16.msra.mxu3 %v7433_v26  ;;  %v7452_v26 = vld [vmem:[#allocation3 + $0x588] sm:$0xff] }
  0x90   :  { %4502 = vmatpush.bf16.msra.mxu0 %v7408_v27  ;;  %v7460_v27 = vld [vmem:[#allocation3 + $0x5c8] sm:$0xff] }
  0x91   :  { %4515 = vmatpush.bf16.msra.mxu1 %v7416_v28  ;;  %v1102_v28 = vld [vmem:[#allocation1 + $0x24] sm:$0xff] }
  0x92   :  { %4528 = vmatpush.bf16.msra.mxu2 %v7424_v29  ;;  %v1104_v29 = vld [vmem:[#allocation1 + $0x36] sm:$0xff] }
  0x93   :  { %4541 = vmatpush.bf16.msra.mxu3 %v7432_v30 }
  0x94   :  { %4503 = vmatpush.bf16.msra.mxu0 %v7407_v31  ;;  %v1103_v31 = vld [vmem:[#allocation1 + $0x2d] sm:$0xff] }
  0x95   :  { %4516 = vmatpush.bf16.msra.mxu1 %v7415_v32  ;;  %v1105_v32 = vld [vmem:[#allocation1 + $0x3f] sm:$0xff] }
  0x96   :  { %4529 = vmatpush.bf16.msra.mxu2 %v7423_v33 }
  0x97   :  { %4542 = vmatpush.bf16.msra.mxu3 %v7431_v34  ;;  %v46_v34 = vld [vmem:[%s7998_s0 + $0x18] sm:$0xff] }
  0x98   :  { %4504 = vmatpush.bf16.msra.mxu0 %v7406_v35  ;;  %1107 = vst [vmem:[#allocation1] ss:$9 sm:$0xff] %v46_v34  ;;  %v7435_v35 = vld [vmem:[#allocation3 + $0x500] sm:$0xff]  ;;  %v7528_v34 = vld [vmem:[#allocation3 + $0x7e8] sm:$0xff] }
  0x99   :  { %4517 = vmatpush.bf16.msra.mxu1 %v7414_v36  ;;  %v7443_v36 = vld [vmem:[#allocation3 + $0x540] sm:$0xff] }
  0x9a   :  { %4530 = vmatpush.bf16.msra.mxu2 %v7422_v37  ;;  %v7451_v37 = vld [vmem:[#allocation3 + $0x580] sm:$0xff] }
  0x9b   :  { %4543 = vmatpush.bf16.msra.mxu3 %v7430_v38  ;;  %v7459_v38 = vld [vmem:[#allocation3 + $0x5c0] sm:$0xff] }
  0x9c   :  { %4505 = vmatpush.bf16.msra.mxu0 %v7405_v39  ;;  %v7474_v39 = vld [vmem:[#allocation3 + $0x638] sm:$0xff] }
  0x9d   :  { %4518 = vmatpush.bf16.msra.mxu1 %v7413_v40  ;;  %v7482_v40 = vld [vmem:[#allocation3 + $0x678] sm:$0xff] }
  0x9e   :  { %4531 = vmatpush.bf16.msra.mxu2 %v7421_v41  ;;  %v7490_v41 = vld [vmem:[#allocation3 + $0x6b8] sm:$0xff] }
  0x9f   :  { %4544 = vmatpush.bf16.msra.mxu3 %v7429_v42  ;;  %v7498_v42 = vld [vmem:[#allocation3 + $0x6f8] sm:$0xff] }
  0xa0   :  { %4506 = vmatpush.bf16.msra.mxu0 %v7404_v43  ;;  %v7473_v43 = vld [vmem:[#allocation3 + $0x630] sm:$0xff] }
  0xa1   :  { %4519 = vmatpush.bf16.msra.mxu1 %v7412_v44  ;;  %v7481_v44 = vld [vmem:[#allocation3 + $0x670] sm:$0xff] }
  0xa2   :  { %4532 = vmatpush.bf16.msra.mxu2 %v7420_v45  ;;  %v7489_v45 = vld [vmem:[#allocation3 + $0x6b0] sm:$0xff] }
  0xa3   :  { %4545 = vmatpush.bf16.msra.mxu3 %v7428_v46  ;;  %v7497_v46 = vld [vmem:[#allocation3 + $0x6f0] sm:$0xff] }
  0xa4   :  { %4507 = vmatpush.bf16.msra.mxu0 %v7403_v47  ;;  %v4301_v3 = vpop.f32.mrf.mxu0  ;;  %v7472_v47 = vld [vmem:[#allocation3 + $0x628] sm:$0xff] }
  0xa5   :  { %4520 = vmatpush.bf16.msra.mxu1 %v7411_v48  ;;  %v4314_v6 = vpop.f32.mrf.mxu1  ;;  %v7480_v48 = vld [vmem:[#allocation3 + $0x668] sm:$0xff] }
  0xa6   :  { %4533 = vmatpush.bf16.msra.mxu2 %v7419_v49  ;;  %v4315_v9 = vadd.f32 %v4314_v6, %v4301_v3  ;;  %v7488_v49 = vld [vmem:[#allocation3 + $0x6a8] sm:$0xff]  ;;  %v7469_v3 = vld [vmem:[#allocation3 + $0x610] sm:$0xff] }
  0xa7   :  { %4546 = vmatpush.bf16.msra.mxu3 %v7427_v50  ;;  %4508 = vmatmul.bf16.vlgmr.msra.gmra.mxu0 %v1098_v55  ;;  %v7496_v50 = vld [vmem:[#allocation3 + $0x6e8] sm:$0xff] }
  0xa8   :  { %4552 = vmatpush.bf16.msrb.mxu0 %v7442_v51  ;;  %4521 = vmatmul.bf16.vlgmr.msra.gmra.mxu1 %v1099_v57  ;;  %v7495_v57 = vld [vmem:[#allocation3 + $0x6e0] sm:$0xff] }
  0xa9   :  { %4565 = vmatpush.bf16.msrb.mxu1 %v7450_v52  ;;  %4534 = vmatmul.bf16.vlgmr.msra.gmra.mxu2 %v1100_v56  ;;  %v7471_v52 = vld [vmem:[#allocation3 + $0x620] sm:$0xff] }
  0xaa   :  { %4578 = vmatpush.bf16.msrb.mxu2 %v7458_v53  ;;  %4547 = vmatmul.bf16.vlgmr.msra.gmra.mxu3 %v1101_v58  ;;  %v7479_v53 = vld [vmem:[#allocation3 + $0x660] sm:$0xff] }
  0xab   :  { %4591 = vmatpush.bf16.msrb.mxu3 %v7466_v54  ;;  %v7487_v56 = vld [vmem:[#allocation3 + $0x6a0] sm:$0xff] }
  0xac   :  { %4553 = vmatpush.bf16.msrb.mxu0 %v7441_v59  ;;  %v4327_v14 = vpop.f32.mrf.mxu2  ;;  %v4303_v17 = vpop.f32.mrf.mxu0  ;;  %v7470_v59 = vld [vmem:[#allocation3 + $0x618] sm:$0xff] }
  0xad   :  { %4566 = vmatpush.bf16.msrb.mxu1 %v7449_v60  ;;  %v4328_v15 = vadd.f32 %v4327_v14, %v4315_v9  ;;  %v4340_v16 = vpop.f32.mrf.mxu3  ;;  %v4316_v21 = vpop.f32.mrf.mxu1  ;;  %v7478_v60 = vld [vmem:[#allocation3 + $0x658] sm:$0xff]  ;;  %v7468_v9 = vld [vmem:[#allocation3 + $0x608] sm:$0xff]  ;;  %v7483_v17 = vld [vmem:[#allocation3 + $0x680] sm:$0xff] }
  0xae   :  { %4579 = vmatpush.bf16.msrb.mxu2 %v7457_v61  ;;  %v7486_v61 = vld [vmem:[#allocation3 + $0x698] sm:$0xff] }
  0xaf   :  { %4592 = vmatpush.bf16.msrb.mxu3 %v7465_v62  ;;  %v7914_v20 = vadd.f32 %v4340_v16, %v4328_v15  ;;  %v7494_v62 = vld [vmem:[#allocation3 + $0x6d8] sm:$0xff]  ;;  %v7467_v15 = vld [vmem:[#allocation3 + $0x600] sm:$0xff] }
  0xb0   :  { %4554 = vmatpush.bf16.msrb.mxu0 %v7440_v63  ;;  %v7475_v16 = vld [vmem:[#allocation3 + $0x640] sm:$0xff]  ;;  %v7522_v21 = vld [vmem:[#allocation3 + $0x7b8] sm:$0xff] }
  0xb1   :  { %4567 = vmatpush.bf16.msrb.mxu1 %v7448_v0 }
  0xb2   :  { %4580 = vmatpush.bf16.msrb.mxu2 %v7456_v1 }
  0xb3   :  { %4593 = vmatpush.bf16.msrb.mxu3 %v7464_v2 }
  0xb4   :  { %4555 = vmatpush.bf16.msrb.mxu0 %v7439_v4  ;;  %v4329_v30 = vpop.f32.mrf.mxu2  ;;  %v7477_v4 = vld [vmem:[#allocation3 + $0x650] sm:$0xff] }
  0xb5   :  { %4568 = vmatpush.bf16.msrb.mxu1 %v7447_v5  ;;  %v4342_v33 = vpop.f32.mrf.mxu3  ;;  %v7529_v30 = vld [vmem:[#allocation3 + $0x7f0] sm:$0xff] }
  0xb6   :  { %4581 = vmatpush.bf16.msrb.mxu2 %v7455_v7  ;;  %v7485_v7 = vld [vmem:[#allocation3 + $0x690] sm:$0xff]  ;;  %v7520_v33 = vld [vmem:[#allocation3 + $0x7a8] sm:$0xff] }
  0xb7   :  { %4594 = vmatpush.bf16.msrb.mxu3 %v7463_v8  ;;  %v7493_v8 = vld [vmem:[#allocation3 + $0x6d0] sm:$0xff] }
  0xb8   :  { %4556 = vmatpush.bf16.msrb.mxu0 %v7438_v10  ;;  %v7476_v10 = vld [vmem:[#allocation3 + $0x648] sm:$0xff] }
  0xb9   :  { %4569 = vmatpush.bf16.msrb.mxu1 %v7446_v11  ;;  %v7484_v11 = vld [vmem:[#allocation3 + $0x688] sm:$0xff] }
  0xba   :  { %4582 = vmatpush.bf16.msrb.mxu2 %v7454_v12  ;;  %v7492_v12 = vld [vmem:[#allocation3 + $0x6c8] sm:$0xff] }
  0xbb   :  { %4595 = vmatpush.bf16.msrb.mxu3 %v7462_v13 }
  0xbc   :  { %4557 = vmatpush.bf16.msrb.mxu0 %v7437_v18  ;;  %v7491_v18 = vld [vmem:[#allocation3 + $0x6c0] sm:$0xff] }
  0xbd   :  { %4570 = vmatpush.bf16.msrb.mxu1 %v7445_v19  ;;  %v7506_v19 = vld [vmem:[#allocation3 + $0x738] sm:$0xff] }
  0xbe   :  { %4583 = vmatpush.bf16.msrb.mxu2 %v7453_v22  ;;  %v7530_v22 = vld [vmem:[#allocation3 + $0x7f8] sm:$0xff] }
  0xbf   :  { %4596 = vmatpush.bf16.msrb.mxu3 %v7461_v23  ;;  %v1108_v23 = vld [vmem:[#allocation1] sm:$0xff] }
  0xc0   :  { %4558 = vmatpush.bf16.msrb.mxu0 %v7436_v24  ;;  %v1110_v24 = vld [vmem:[#allocation1 + $0x12] sm:$0xff] }
  0xc1   :  { %4571 = vmatpush.bf16.msrb.mxu1 %v7444_v25  ;;  %v1109_v25 = vld [vmem:[#allocation1 + $0x9] sm:$0xff] }
  0xc2   :  { %4584 = vmatpush.bf16.msrb.mxu2 %v7452_v26  ;;  %v1111_v26 = vld [vmem:[#allocation1 + $0x1b] sm:$0xff] }
  0xc3   :  { %4597 = vmatpush.bf16.msrb.mxu3 %v7460_v27  ;;  %v7505_v27 = vld [vmem:[#allocation3 + $0x730] sm:$0xff] }
  0xc4   :  { %4559 = vmatpush.bf16.msrb.mxu0 %v7435_v35  ;;  %v4353_v51 = vpop.f32.mrf.mxu0 }
  0xc5   :  { %4572 = vmatpush.bf16.msrb.mxu1 %v7443_v36  ;;  %v4354_v54 = vadd.f32 %v4353_v51, %v7914_v20  ;;  %v4366_v55 = vpop.f32.mrf.mxu1  ;;  %v7514_v20 = vld [vmem:[#allocation3 + $0x778] sm:$0xff] }
  0xc6   :  { %4585 = vmatpush.bf16.msrb.mxu2 %v7451_v37  ;;  %v7503_v37 = vld [vmem:[#allocation3 + $0x720] sm:$0xff] }
  0xc7   :  { %4598 = vmatpush.bf16.msrb.mxu3 %v7459_v38  ;;  %4560 = vmatmul.bf16.vlgmr.msrb.gmra.mxu0 %v1102_v28  ;;  %v4367_v58 = vadd.f32 %v4366_v55, %v4354_v54  ;;  %v7513_v28 = vld [vmem:[#allocation3 + $0x770] sm:$0xff]  ;;  %v7511_v38 = vld [vmem:[#allocation3 + $0x760] sm:$0xff] }
  0xc8   :  { %4604 = vmatpush.bf16.msra.mxu0 %v7474_v39  ;;  %4573 = vmatmul.bf16.vlgmr.msrb.gmra.mxu1 %v1103_v31  ;;  %v7504_v31 = vld [vmem:[#allocation3 + $0x728] sm:$0xff]  ;;  %v7517_v55 = vld [vmem:[#allocation3 + $0x790] sm:$0xff] }
  0xc9   :  { %4617 = vmatpush.bf16.msra.mxu1 %v7482_v40  ;;  %4586 = vmatmul.bf16.vlgmr.msrb.gmra.mxu2 %v1104_v29  ;;  %v7521_v29 = vld [vmem:[#allocation3 + $0x7b0] sm:$0xff]  ;;  %v7519_v40 = vld [vmem:[#allocation3 + $0x7a0] sm:$0xff] }
  0xca   :  { %4630 = vmatpush.bf16.msra.mxu2 %v7490_v41  ;;  %4599 = vmatmul.bf16.vlgmr.msrb.gmra.mxu3 %v1105_v32  ;;  %v7512_v32 = vld [vmem:[#allocation3 + $0x768] sm:$0xff]  ;;  %v7527_v41 = vld [vmem:[#allocation3 + $0x7e0] sm:$0xff] }
  0xcb   :  { %4643 = vmatpush.bf16.msra.mxu3 %v7498_v42 }
  0xcc   :  { %4605 = vmatpush.bf16.msra.mxu0 %v7473_v43  ;;  %v4379_v63 = vpop.f32.mrf.mxu2  ;;  %v4355_v2 = vpop.f32.mrf.mxu0  ;;  %v7502_v43 = vld [vmem:[#allocation3 + $0x718] sm:$0xff] }
  0xcd   :  { %4618 = vmatpush.bf16.msra.mxu1 %v7481_v44  ;;  %v4380_v0 = vadd.f32 %v4379_v63, %v4367_v58  ;;  %v4392_v1 = vpop.f32.mrf.mxu3  ;;  %v4368_v6 = vpop.f32.mrf.mxu1  ;;  %v7510_v44 = vld [vmem:[#allocation3 + $0x758] sm:$0xff]  ;;  %v7508_v58 = vld [vmem:[#allocation3 + $0x748] sm:$0xff] }
  0xce   :  { %4631 = vmatpush.bf16.msra.mxu2 %v7489_v45  ;;  %v7518_v45 = vld [vmem:[#allocation3 + $0x798] sm:$0xff]  ;;  %v7515_v6 = vld [vmem:[#allocation3 + $0x780] sm:$0xff] }
  0xcf   :  { %4644 = vmatpush.bf16.msra.mxu3 %v7497_v46  ;;  %v4393_v5 = vadd.f32 %v4392_v1, %v4380_v0  ;;  %v7526_v46 = vld [vmem:[#allocation3 + $0x7d8] sm:$0xff]  ;;  %v1113_v0 = vld [vmem:[#allocation1 + $0x2d] sm:$0xff] }
  0xd0   :  { %4606 = vmatpush.bf16.msra.mxu0 %v7472_v47  ;;  %v1115_v1 = vld [vmem:[#allocation1 + $0x3f] sm:$0xff] }
  0xd1   :  { %4619 = vmatpush.bf16.msra.mxu1 %v7480_v48 }
  0xd2   :  { %4632 = vmatpush.bf16.msra.mxu2 %v7488_v49 }
  0xd3   :  { %4645 = vmatpush.bf16.msra.mxu3 %v7496_v50 }
  0xd4   :  { %4607 = vmatpush.bf16.msra.mxu0 %v7471_v52  ;;  %v4381_v13 = vpop.f32.mrf.mxu2  ;;  %v7501_v52 = vld [vmem:[#allocation3 + $0x710] sm:$0xff] }
  0xd5   :  { %4620 = vmatpush.bf16.msra.mxu1 %v7479_v53  ;;  %v4394_v14 = vpop.f32.mrf.mxu3  ;;  %v7509_v53 = vld [vmem:[#allocation3 + $0x750] sm:$0xff] }
  0xd6   :  { %4633 = vmatpush.bf16.msra.mxu2 %v7487_v56  ;;  %v7525_v56 = vld [vmem:[#allocation3 + $0x7d0] sm:$0xff] }
  0xd7   :  { %4646 = vmatpush.bf16.msra.mxu3 %v7495_v57  ;;  %v7500_v57 = vld [vmem:[#allocation3 + $0x708] sm:$0xff]  ;;  %v7545_v13 = vld [vmem:[#allocation3 + $0x870] sm:$0xff] }
  0xd8   :  { %4608 = vmatpush.bf16.msra.mxu0 %v7470_v59  ;;  %v7516_v59 = vld [vmem:[#allocation3 + $0x788] sm:$0xff]  ;;  %v7553_v14 = vld [vmem:[#allocation3 + $0x8b0] sm:$0xff] }
  0xd9   :  { %4621 = vmatpush.bf16.msra.mxu1 %v7478_v60  ;;  %v7524_v60 = vld [vmem:[#allocation3 + $0x7c8] sm:$0xff] }
  0xda   :  { %4634 = vmatpush.bf16.msra.mxu2 %v7486_v61  ;;  %v1112_v61 = vld [vmem:[#allocation1 + $0x24] sm:$0xff] }
  0xdb   :  { %4647 = vmatpush.bf16.msra.mxu3 %v7494_v62  ;;  %v1114_v62 = vld [vmem:[#allocation1 + $0x36] sm:$0xff] }
  0xdc   :  { %4609 = vmatpush.bf16.msra.mxu0 %v7469_v3  ;;  %v47_v3 = vld [vmem:[%s7998_s0 + $0x20] sm:$0xff] }
  0xdd   :  { %4622 = vmatpush.bf16.msra.mxu1 %v7477_v4  ;;  %1117 = vst [vmem:[#allocation1] ss:$9 sm:$0xff] %v47_v3  ;;  %v7499_v4 = vld [vmem:[#allocation3 + $0x700] sm:$0xff]  ;;  %v7592_v3 = vld [vmem:[#allocation3 + $0x9e8] sm:$0xff] }
  0xde   :  { %4635 = vmatpush.bf16.msra.mxu2 %v7485_v7  ;;  %v7523_v7 = vld [vmem:[#allocation3 + $0x7c0] sm:$0xff] }
  0xdf   :  { %4648 = vmatpush.bf16.msra.mxu3 %v7493_v8  ;;  %v7538_v8 = vld [vmem:[#allocation3 + $0x838] sm:$0xff] }
  0xe0   :  { %4610 = vmatpush.bf16.msra.mxu0 %v7468_v9  ;;  %v7546_v9 = vld [vmem:[#allocation3 + $0x878] sm:$0xff] }
  0xe1   :  { %4623 = vmatpush.bf16.msra.mxu1 %v7476_v10  ;;  %v7554_v10 = vld [vmem:[#allocation3 + $0x8b8] sm:$0xff] }
  0xe2   :  { %4636 = vmatpush.bf16.msra.mxu2 %v7484_v11  ;;  %v7562_v11 = vld [vmem:[#allocation3 + $0x8f8] sm:$0xff] }
  0xe3   :  { %4649 = vmatpush.bf16.msra.mxu3 %v7492_v12  ;;  %v7537_v12 = vld [vmem:[#allocation3 + $0x830] sm:$0xff] }
  0xe4   :  { %4611 = vmatpush.bf16.msra.mxu0 %v7467_v15  ;;  %v4405_v35 = vpop.f32.mrf.mxu0  ;;  %v7561_v15 = vld [vmem:[#allocation3 + $0x8f0] sm:$0xff] }
  0xe5   :  { %4624 = vmatpush.bf16.msra.mxu1 %v7475_v16  ;;  %v4406_v36 = vadd.f32 %v4405_v35, %v4393_v5  ;;  %v4418_v39 = vpop.f32.mrf.mxu1  ;;  %v7507_v5 = vld [vmem:[#allocation3 + $0x740] sm:$0xff]  ;;  %v7536_v16 = vld [vmem:[#allocation3 + $0x828] sm:$0xff] }
  0xe6   :  { %4637 = vmatpush.bf16.msra.mxu2 %v7483_v17  ;;  %v7544_v17 = vld [vmem:[#allocation3 + $0x868] sm:$0xff] }
  0xe7   :  { %4650 = vmatpush.bf16.msra.mxu3 %v7491_v18  ;;  %4612 = vmatmul.bf16.vlgmr.msra.gmra.mxu0 %v1108_v23  ;;  %v4419_v42 = vadd.f32 %v4418_v39, %v4406_v36  ;;  %v7552_v18 = vld [vmem:[#allocation3 + $0x8a8] sm:$0xff]  ;;  %v7543_v23 = vld [vmem:[#allocation3 + $0x860] sm:$0xff] }
  0xe8   :  { %4656 = vmatpush.bf16.msrb.mxu0 %v7506_v19  ;;  %4625 = vmatmul.bf16.vlgmr.msra.gmra.mxu1 %v1109_v25  ;;  %v7560_v19 = vld [vmem:[#allocation3 + $0x8e8] sm:$0xff]  ;;  %v7551_v25 = vld [vmem:[#allocation3 + $0x8a0] sm:$0xff] }
  0xe9   :  { %4669 = vmatpush.bf16.msrb.mxu1 %v7514_v20  ;;  %4638 = vmatmul.bf16.vlgmr.msra.gmra.mxu2 %v1110_v24 }
  0xea   :  { %4682 = vmatpush.bf16.msrb.mxu2 %v7522_v21  ;;  %4651 = vmatmul.bf16.vlgmr.msra.gmra.mxu3 %v1111_v26  ;;  %v7559_v26 = vld [vmem:[#allocation3 + $0x8e0] sm:$0xff] }
  0xeb   :  { %4695 = vmatpush.bf16.msrb.mxu3 %v7530_v22  ;;  %v7535_v22 = vld [vmem:[#allocation3 + $0x820] sm:$0xff] }
  0xec   :  { %4657 = vmatpush.bf16.msrb.mxu0 %v7505_v27  ;;  %v4431_v47 = vpop.f32.mrf.mxu2  ;;  %v4407_v50 = vpop.f32.mrf.mxu0 }
  0xed   :  { %4670 = vmatpush.bf16.msrb.mxu1 %v7513_v28  ;;  %v4432_v48 = vadd.f32 %v4431_v47, %v4419_v42  ;;  %v4444_v49 = vpop.f32.mrf.mxu3  ;;  %v4420_v54 = vpop.f32.mrf.mxu1  ;;  %v7534_v28 = vld [vmem:[#allocation3 + $0x818] sm:$0xff]  ;;  %v7532_v42 = vld [vmem:[#allocation3 + $0x808] sm:$0xff]  ;;  %v7547_v50 = vld [vmem:[#allocation3 + $0x880] sm:$0xff] }
  0xee   :  { %4683 = vmatpush.bf16.msrb.mxu2 %v7521_v29  ;;  %v7542_v29 = vld [vmem:[#allocation3 + $0x858] sm:$0xff] }
  0xef   :  { %4696 = vmatpush.bf16.msrb.mxu3 %v7529_v30  ;;  %v7920_v51 = vadd.f32 %v4444_v49, %v4432_v48  ;;  %v7550_v30 = vld [vmem:[#allocation3 + $0x898] sm:$0xff]  ;;  %v7531_v48 = vld [vmem:[#allocation3 + $0x800] sm:$0xff] }
  0xf0   :  { %4658 = vmatpush.bf16.msrb.mxu0 %v7504_v31  ;;  %v7558_v31 = vld [vmem:[#allocation3 + $0x8d8] sm:$0xff]  ;;  %v7539_v49 = vld [vmem:[#allocation3 + $0x840] sm:$0xff] }
  0xf1   :  { %4671 = vmatpush.bf16.msrb.mxu1 %v7512_v32  ;;  %v7586_v54 = vld [vmem:[#allocation3 + $0x9b8] sm:$0xff] }
  0xf2   :  { %4684 = vmatpush.bf16.msrb.mxu2 %v7520_v33 }
  0xf3   :  { %4697 = vmatpush.bf16.msrb.mxu3 %v7528_v34 }
  0xf4   :  { %4659 = vmatpush.bf16.msrb.mxu0 %v7503_v37  ;;  %v4433_v63 = vpop.f32.mrf.mxu2  ;;  %v7533_v37 = vld [vmem:[#allocation3 + $0x810] sm:$0xff] }
  0xf5   :  { %4672 = vmatpush.bf16.msrb.mxu1 %v7511_v38  ;;  %v4446_v2 = vpop.f32.mrf.mxu3  ;;  %v7541_v38 = vld [vmem:[#allocation3 + $0x850] sm:$0xff] }
  0xf6   :  { %4685 = vmatpush.bf16.msrb.mxu2 %v7519_v40  ;;  %v7549_v40 = vld [vmem:[#allocation3 + $0x890] sm:$0xff]  ;;  %v7584_v2 = vld [vmem:[#allocation3 + $0x9a8] sm:$0xff] }
  0xf7   :  { %4698 = vmatpush.bf16.msrb.mxu3 %v7527_v41  ;;  %v7557_v41 = vld [vmem:[#allocation3 + $0x8d0] sm:$0xff] }
  0xf8   :  { %4660 = vmatpush.bf16.msrb.mxu0 %v7502_v43  ;;  %v7540_v43 = vld [vmem:[#allocation3 + $0x848] sm:$0xff]  ;;  %v7593_v63 = vld [vmem:[#allocation3 + $0x9f0] sm:$0xff] }
  0xf9   :  { %4673 = vmatpush.bf16.msrb.mxu1 %v7510_v44  ;;  %v7548_v44 = vld [vmem:[#allocation3 + $0x888] sm:$0xff] }
  0xfa   :  { %4686 = vmatpush.bf16.msrb.mxu2 %v7518_v45  ;;  %v7556_v45 = vld [vmem:[#allocation3 + $0x8c8] sm:$0xff] }
  0xfb   :  { %4699 = vmatpush.bf16.msrb.mxu3 %v7526_v46 }
  0xfc   :  { %4661 = vmatpush.bf16.msrb.mxu0 %v7501_v52  ;;  %v7570_v52 = vld [vmem:[#allocation3 + $0x938] sm:$0xff] }
  0xfd   :  { %4674 = vmatpush.bf16.msrb.mxu1 %v7509_v53  ;;  %v7578_v53 = vld [vmem:[#allocation3 + $0x978] sm:$0xff] }
  0xfe   :  { %4687 = vmatpush.bf16.msrb.mxu2 %v7517_v55  ;;  %v7594_v55 = vld [vmem:[#allocation3 + $0x9f8] sm:$0xff] }
  0xff   :  { %4700 = vmatpush.bf16.msrb.mxu3 %v7525_v56  ;;  %v1118_v56 = vld [vmem:[#allocation1] sm:$0xff] }
 0x100   :  { %4662 = vmatpush.bf16.msrb.mxu0 %v7500_v57  ;;  %v1120_v57 = vld [vmem:[#allocation1 + $0x12] sm:$0xff] }
 0x101   :  { %4675 = vmatpush.bf16.msrb.mxu1 %v7508_v58  ;;  %v1119_v58 = vld [vmem:[#allocation1 + $0x9] sm:$0xff] }
 0x102   :  { %4688 = vmatpush.bf16.msrb.mxu2 %v7516_v59  ;;  %v1121_v59 = vld [vmem:[#allocation1 + $0x1b] sm:$0xff] }
 0x103   :  { %4701 = vmatpush.bf16.msrb.mxu3 %v7524_v60  ;;  %v7569_v60 = vld [vmem:[#allocation3 + $0x930] sm:$0xff] }
 0x104   :  { %4663 = vmatpush.bf16.msrb.mxu0 %v7499_v4  ;;  %v4457_v20 = vpop.f32.mrf.mxu0 }
 0x105   :  { %4676 = vmatpush.bf16.msrb.mxu1 %v7507_v5  ;;  %v4458_v21 = vadd.f32 %v4457_v20, %v7920_v51  ;;  %v4470_v24 = vpop.f32.mrf.mxu1  ;;  %v7555_v51 = vld [vmem:[#allocation3 + $0x8c0] sm:$0xff] }
 0x106   :  { %4689 = vmatpush.bf16.msrb.mxu2 %v7515_v6  ;;  %v7567_v6 = vld [vmem:[#allocation3 + $0x920] sm:$0xff] }
 0x107   :  { %4702 = vmatpush.bf16.msrb.mxu3 %v7523_v7  ;;  %4664 = vmatmul.bf16.vlgmr.msrb.gmra.mxu0 %v1112_v61  ;;  %v4471_v27 = vadd.f32 %v4470_v24, %v4458_v21  ;;  %v7577_v61 = vld [vmem:[#allocation3 + $0x970] sm:$0xff]  ;;  %v7575_v7 = vld [vmem:[#allocation3 + $0x960] sm:$0xff] }
 0x108   :  { %4708 = vmatpush.bf16.msra.mxu0 %v7538_v8  ;;  %4677 = vmatmul.bf16.vlgmr.msrb.gmra.mxu1 %v1113_v0  ;;  %v7568_v0 = vld [vmem:[#allocation3 + $0x928] sm:$0xff]  ;;  %v7565_v21 = vld [vmem:[#allocation3 + $0x910] sm:$0xff] }
 0x109   :  { %4721 = vmatpush.bf16.msra.mxu1 %v7546_v9  ;;  %4690 = vmatmul.bf16.vlgmr.msrb.gmra.mxu2 %v1114_v62  ;;  %v7585_v62 = vld [vmem:[#allocation3 + $0x9b0] sm:$0xff]  ;;  %v7583_v9 = vld [vmem:[#allocation3 + $0x9a0] sm:$0xff] }
 0x10a   :  { %4734 = vmatpush.bf16.msra.mxu2 %v7554_v10  ;;  %4703 = vmatmul.bf16.vlgmr.msrb.gmra.mxu3 %v1115_v1  ;;  %v7576_v1 = vld [vmem:[#allocation3 + $0x968] sm:$0xff]  ;;  %v7591_v10 = vld [vmem:[#allocation3 + $0x9e0] sm:$0xff]  ;;  %v7581_v24 = vld [vmem:[#allocation3 + $0x990] sm:$0xff] }
 0x10b   :  { %4747 = vmatpush.bf16.msra.mxu3 %v7562_v11 }
 0x10c   :  { %4709 = vmatpush.bf16.msra.mxu0 %v7537_v12  ;;  %v4483_v32 = vpop.f32.mrf.mxu2  ;;  %v4459_v35 = vpop.f32.mrf.mxu0  ;;  %v7566_v12 = vld [vmem:[#allocation3 + $0x918] sm:$0xff] }
 0x10d   :  { %4722 = vmatpush.bf16.msra.mxu1 %v7545_v13  ;;  %v4484_v33 = vadd.f32 %v4483_v32, %v4471_v27  ;;  %v4496_v34 = vpop.f32.mrf.mxu3  ;;  %v4472_v39 = vpop.f32.mrf.mxu1  ;;  %v7574_v13 = vld [vmem:[#allocation3 + $0x958] sm:$0xff]  ;;  %v7572_v27 = vld [vmem:[#allocation3 + $0x948] sm:$0xff] }
 0x10e   :  { %4735 = vmatpush.bf16.msra.mxu2 %v7553_v14  ;;  %v7582_v14 = vld [vmem:[#allocation3 + $0x998] sm:$0xff]  ;;  %v7579_v39 = vld [vmem:[#allocation3 + $0x980] sm:$0xff] }
 0x10f   :  { %4748 = vmatpush.bf16.msra.mxu3 %v7561_v15  ;;  %v4497_v36 = vadd.f32 %v4496_v34, %v4484_v33  ;;  %v7590_v15 = vld [vmem:[#allocation3 + $0x9d8] sm:$0xff]  ;;  %v1123_v33 = vld [vmem:[#allocation1 + $0x2d] sm:$0xff] }
 0x110   :  { %4710 = vmatpush.bf16.msra.mxu0 %v7536_v16  ;;  %v1125_v34 = vld [vmem:[#allocation1 + $0x3f] sm:$0xff] }
 0x111   :  { %4723 = vmatpush.bf16.msra.mxu1 %v7544_v17 }
 0x112   :  { %4736 = vmatpush.bf16.msra.mxu2 %v7552_v18 }
 0x113   :  { %4749 = vmatpush.bf16.msra.mxu3 %v7560_v19 }
 0x114   :  { %4711 = vmatpush.bf16.msra.mxu0 %v7535_v22  ;;  %v4485_v46 = vpop.f32.mrf.mxu2  ;;  %v7573_v22 = vld [vmem:[#allocation3 + $0x950] sm:$0xff] }
 0x115   :  { %4724 = vmatpush.bf16.msra.mxu1 %v7543_v23  ;;  %v4498_v47 = vpop.f32.mrf.mxu3  ;;  %v7609_v46 = vld [vmem:[#allocation3 + $0xa70] sm:$0xff] }
 0x116   :  { %4737 = vmatpush.bf16.msra.mxu2 %v7551_v25  ;;  %v7589_v25 = vld [vmem:[#allocation3 + $0x9d0] sm:$0xff] }
 0x117   :  { %4750 = vmatpush.bf16.msra.mxu3 %v7559_v26  ;;  %v7564_v26 = vld [vmem:[#allocation3 + $0x908] sm:$0xff]  ;;  %v7617_v47 = vld [vmem:[#allocation3 + $0xab0] sm:$0xff] }
 0x118   :  { %4712 = vmatpush.bf16.msra.mxu0 %v7534_v28  ;;  %v7580_v28 = vld [vmem:[#allocation3 + $0x988] sm:$0xff] }
 0x119   :  { %4725 = vmatpush.bf16.msra.mxu1 %v7542_v29  ;;  %v7588_v29 = vld [vmem:[#allocation3 + $0x9c8] sm:$0xff] }
 0x11a   :  { %4738 = vmatpush.bf16.msra.mxu2 %v7550_v30  ;;  %v1122_v30 = vld [vmem:[#allocation1 + $0x24] sm:$0xff] }
 0x11b   :  { %4751 = vmatpush.bf16.msra.mxu3 %v7558_v31  ;;  %v1124_v31 = vld [vmem:[#allocation1 + $0x36] sm:$0xff] }
 0x11c   :  { %4713 = vmatpush.bf16.msra.mxu0 %v7533_v37  ;;  %v7563_v37 = vld [vmem:[#allocation3 + $0x900] sm:$0xff] }
 0x11d   :  { %4726 = vmatpush.bf16.msra.mxu1 %v7541_v38  ;;  %v7571_v38 = vld [vmem:[#allocation3 + $0x940] sm:$0xff] }
 0x11e   :  { %4739 = vmatpush.bf16.msra.mxu2 %v7549_v40  ;;  %v7587_v40 = vld [vmem:[#allocation3 + $0x9c0] sm:$0xff] }
 0x11f   :  { %4752 = vmatpush.bf16.msra.mxu3 %v7557_v41  ;;  %v7602_v41 = vld [vmem:[#allocation3 + $0xa38] sm:$0xff] }
 0x120   :  { %4714 = vmatpush.bf16.msra.mxu0 %v7532_v42  ;;  %v7610_v42 = vld [vmem:[#allocation3 + $0xa78] sm:$0xff] }
 0x121   :  { %4727 = vmatpush.bf16.msra.mxu1 %v7540_v43  ;;  %v7618_v43 = vld [vmem:[#allocation3 + $0xab8] sm:$0xff] }
 0x122   :  { %4740 = vmatpush.bf16.msra.mxu2 %v7548_v44  ;;  %v7626_v44 = vld [vmem:[#allocation3 + $0xaf8] sm:$0xff] }
 0x123   :  { %4753 = vmatpush.bf16.msra.mxu3 %v7556_v45  ;;  %v7601_v45 = vld [vmem:[#allocation3 + $0xa30] sm:$0xff] }
 0x124   :  { %4715 = vmatpush.bf16.msra.mxu0 %v7531_v48  ;;  %v4509_v4 = vpop.f32.mrf.mxu0  ;;  %v7625_v48 = vld [vmem:[#allocation3 + $0xaf0] sm:$0xff] }
 0x125   :  { %4728 = vmatpush.bf16.msra.mxu1 %v7539_v49  ;;  %v4510_v5 = vadd.f32 %v4509_v4, %v4497_v36  ;;  %v4522_v8 = vpop.f32.mrf.mxu1  ;;  %v48_v36 = vld [vmem:[%s7998_s0 + $0x28] sm:$0xff]  ;;  %v7600_v49 = vld [vmem:[#allocation3 + $0xa28] sm:$0xff] }
 0x126   :  { %4741 = vmatpush.bf16.msra.mxu2 %v7547_v50  ;;  %1127 = vst [vmem:[#allocation1] ss:$9 sm:$0xff] %v48_v36  ;;  %v7608_v50 = vld [vmem:[#allocation3 + $0xa68] sm:$0xff] }
 0x127   :  { %4754 = vmatpush.bf16.msra.mxu3 %v7555_v51  ;;  %4716 = vmatmul.bf16.vlgmr.msra.gmra.mxu0 %v1118_v56  ;;  %v4523_v11 = vadd.f32 %v4522_v8, %v4510_v5  ;;  %v7616_v51 = vld [vmem:[#allocation3 + $0xaa8] sm:$0xff]  ;;  %v7607_v56 = vld [vmem:[#allocation3 + $0xa60] sm:$0xff] }
 0x128   :  { %4760 = vmatpush.bf16.msrb.mxu0 %v7570_v52  ;;  %4729 = vmatmul.bf16.vlgmr.msra.gmra.mxu1 %v1119_v58  ;;  %v7624_v52 = vld [vmem:[#allocation3 + $0xae8] sm:$0xff]  ;;  %v7615_v58 = vld [vmem:[#allocation3 + $0xaa0] sm:$0xff] }
 0x129   :  { %4773 = vmatpush.bf16.msrb.mxu1 %v7578_v53  ;;  %4742 = vmatmul.bf16.vlgmr.msra.gmra.mxu2 %v1120_v57  ;;  %v7656_v36 = vld [vmem:[#allocation3 + $0xbe8] sm:$0xff] }
 0x12a   :  { %4786 = vmatpush.bf16.msrb.mxu2 %v7586_v54  ;;  %4755 = vmatmul.bf16.vlgmr.msra.gmra.mxu3 %v1121_v59  ;;  %v7623_v59 = vld [vmem:[#allocation3 + $0xae0] sm:$0xff] }
 0x12b   :  { %4799 = vmatpush.bf16.msrb.mxu3 %v7594_v55  ;;  %v7599_v55 = vld [vmem:[#allocation3 + $0xa20] sm:$0xff] }
 0x12c   :  { %4761 = vmatpush.bf16.msrb.mxu0 %v7569_v60  ;;  %v4535_v16 = vpop.f32.mrf.mxu2  ;;  %v4511_v19 = vpop.f32.mrf.mxu0 }
 0x12d   :  { %4774 = vmatpush.bf16.msrb.mxu1 %v7577_v61  ;;  %v4536_v17 = vadd.f32 %v4535_v16, %v4523_v11  ;;  %v4548_v18 = vpop.f32.mrf.mxu3  ;;  %v4524_v23 = vpop.f32.mrf.mxu1  ;;  %v7598_v61 = vld [vmem:[#allocation3 + $0xa18] sm:$0xff]  ;;  %v7596_v11 = vld [vmem:[#allocation3 + $0xa08] sm:$0xff]  ;;  %v7611_v19 = vld [vmem:[#allocation3 + $0xa80] sm:$0xff] }
 0x12e   :  { %4787 = vmatpush.bf16.msrb.mxu2 %v7585_v62  ;;  %v7606_v62 = vld [vmem:[#allocation3 + $0xa58] sm:$0xff] }
 0x12f   :  { %4800 = vmatpush.bf16.msrb.mxu3 %v7593_v63  ;;  %v7926_v20 = vadd.f32 %v4548_v18, %v4536_v17  ;;  %v7614_v63 = vld [vmem:[#allocation3 + $0xa98] sm:$0xff]  ;;  %v7595_v17 = vld [vmem:[#allocation3 + $0xa00] sm:$0xff] }
 0x130   :  { %4762 = vmatpush.bf16.msrb.mxu0 %v7568_v0  ;;  %v7622_v0 = vld [vmem:[#allocation3 + $0xad8] sm:$0xff]  ;;  %v7603_v18 = vld [vmem:[#allocation3 + $0xa40] sm:$0xff] }
 0x131   :  { %4775 = vmatpush.bf16.msrb.mxu1 %v7576_v1  ;;  %v7650_v23 = vld [vmem:[#allocation3 + $0xbb8] sm:$0xff] }
 0x132   :  { %4788 = vmatpush.bf16.msrb.mxu2 %v7584_v2 }
 0x133   :  { %4801 = vmatpush.bf16.msrb.mxu3 %v7592_v3 }
 0x134   :  { %4763 = vmatpush.bf16.msrb.mxu0 %v7567_v6  ;;  %v4537_v32 = vpop.f32.mrf.mxu2  ;;  %v7597_v6 = vld [vmem:[#allocation3 + $0xa10] sm:$0xff] }
 0x135   :  { %4776 = vmatpush.bf16.msrb.mxu1 %v7575_v7  ;;  %v4550_v35 = vpop.f32.mrf.mxu3  ;;  %v7605_v7 = vld [vmem:[#allocation3 + $0xa50] sm:$0xff] }
 0x136   :  { %4789 = vmatpush.bf16.msrb.mxu2 %v7583_v9  ;;  %v7613_v9 = vld [vmem:[#allocation3 + $0xa90] sm:$0xff]  ;;  %v7648_v35 = vld [vmem:[#allocation3 + $0xba8] sm:$0xff] }
 0x137   :  { %4802 = vmatpush.bf16.msrb.mxu3 %v7591_v10  ;;  %v7621_v10 = vld [vmem:[#allocation3 + $0xad0] sm:$0xff] }
 0x138   :  { %4764 = vmatpush.bf16.msrb.mxu0 %v7566_v12  ;;  %v7604_v12 = vld [vmem:[#allocation3 + $0xa48] sm:$0xff]  ;;  %v7657_v32 = vld [vmem:[#allocation3 + $0xbf0] sm:$0xff] }
 0x139   :  { %4777 = vmatpush.bf16.msrb.mxu1 %v7574_v13  ;;  %v7612_v13 = vld [vmem:[#allocation3 + $0xa88] sm:$0xff] }
 0x13a   :  { %4790 = vmatpush.bf16.msrb.mxu2 %v7582_v14  ;;  %v7620_v14 = vld [vmem:[#allocation3 + $0xac8] sm:$0xff] }
 0x13b   :  { %4803 = vmatpush.bf16.msrb.mxu3 %v7590_v15 }
 0x13c   :  { %4765 = vmatpush.bf16.msrb.mxu0 %v7565_v21  ;;  %v7634_v21 = vld [vmem:[#allocation3 + $0xb38] sm:$0xff] }
 0x13d   :  { %4778 = vmatpush.bf16.msrb.mxu1 %v7573_v22  ;;  %v7642_v22 = vld [vmem:[#allocation3 + $0xb78] sm:$0xff] }
 0x13e   :  { %4791 = vmatpush.bf16.msrb.mxu2 %v7581_v24  ;;  %v7658_v24 = vld [vmem:[#allocation3 + $0xbf8] sm:$0xff] }
 0x13f   :  { %4804 = vmatpush.bf16.msrb.mxu3 %v7589_v25  ;;  %v1128_v25 = vld [vmem:[#allocation1] sm:$0xff] }
 0x140   :  { %4766 = vmatpush.bf16.msrb.mxu0 %v7564_v26  ;;  %v1130_v26 = vld [vmem:[#allocation1 + $0x12] sm:$0xff] }
 0x141   :  { %4779 = vmatpush.bf16.msrb.mxu1 %v7572_v27  ;;  %v1129_v27 = vld [vmem:[#allocation1 + $0x9] sm:$0xff] }
 0x142   :  { %4792 = vmatpush.bf16.msrb.mxu2 %v7580_v28  ;;  %v1131_v28 = vld [vmem:[#allocation1 + $0x1b] sm:$0xff] }
 0x143   :  { %4805 = vmatpush.bf16.msrb.mxu3 %v7588_v29  ;;  %v7633_v29 = vld [vmem:[#allocation3 + $0xb30] sm:$0xff] }
 0x144   :  { %4767 = vmatpush.bf16.msrb.mxu0 %v7563_v37  ;;  %v4561_v53 = vpop.f32.mrf.mxu0 }
 0x145   :  { %4780 = vmatpush.bf16.msrb.mxu1 %v7571_v38  ;;  %v4562_v54 = vadd.f32 %v4561_v53, %v7926_v20  ;;  %v4574_v57 = vpop.f32.mrf.mxu1  ;;  %v7619_v20 = vld [vmem:[#allocation3 + $0xac0] sm:$0xff] }
 0x146   :  { %4793 = vmatpush.bf16.msrb.mxu2 %v7579_v39  ;;  %v7631_v39 = vld [vmem:[#allocation3 + $0xb20] sm:$0xff] }
 0x147   :  { %4806 = vmatpush.bf16.msrb.mxu3 %v7587_v40  ;;  %4768 = vmatmul.bf16.vlgmr.msrb.gmra.mxu0 %v1122_v30  ;;  %v4575_v60 = vadd.f32 %v4574_v57, %v4562_v54  ;;  %v7641_v30 = vld [vmem:[#allocation3 + $0xb70] sm:$0xff]  ;;  %v7639_v40 = vld [vmem:[#allocation3 + $0xb60] sm:$0xff] }
 0x148   :  { %4812 = vmatpush.bf16.msra.mxu0 %v7602_v41  ;;  %4781 = vmatmul.bf16.vlgmr.msrb.gmra.mxu1 %v1123_v33  ;;  %v7632_v33 = vld [vmem:[#allocation3 + $0xb28] sm:$0xff]  ;;  %v7629_v54 = vld [vmem:[#allocation3 + $0xb10] sm:$0xff] }
 0x149   :  { %4825 = vmatpush.bf16.msra.mxu1 %v7610_v42  ;;  %4794 = vmatmul.bf16.vlgmr.msrb.gmra.mxu2 %v1124_v31  ;;  %v7649_v31 = vld [vmem:[#allocation3 + $0xbb0] sm:$0xff]  ;;  %v7647_v42 = vld [vmem:[#allocation3 + $0xba0] sm:$0xff] }
 0x14a   :  { %4838 = vmatpush.bf16.msra.mxu2 %v7618_v43  ;;  %4807 = vmatmul.bf16.vlgmr.msrb.gmra.mxu3 %v1125_v34  ;;  %v7640_v34 = vld [vmem:[#allocation3 + $0xb68] sm:$0xff]  ;;  %v7655_v43 = vld [vmem:[#allocation3 + $0xbe0] sm:$0xff]  ;;  %v7645_v57 = vld [vmem:[#allocation3 + $0xb90] sm:$0xff] }
 0x14b   :  { %4851 = vmatpush.bf16.msra.mxu3 %v7626_v44 }
 0x14c   :  { %4813 = vmatpush.bf16.msra.mxu0 %v7601_v45  ;;  %v4587_v1 = vpop.f32.mrf.mxu2  ;;  %v4563_v4 = vpop.f32.mrf.mxu0  ;;  %v7630_v45 = vld [vmem:[#allocation3 + $0xb18] sm:$0xff] }
 0x14d   :  { %4826 = vmatpush.bf16.msra.mxu1 %v7609_v46  ;;  %v4588_v2 = vadd.f32 %v4587_v1, %v4575_v60  ;;  %v4600_v3 = vpop.f32.mrf.mxu3  ;;  %v4576_v8 = vpop.f32.mrf.mxu1  ;;  %v7638_v46 = vld [vmem:[#allocation3 + $0xb58] sm:$0xff]  ;;  %v7636_v60 = vld [vmem:[#allocation3 + $0xb48] sm:$0xff] }
 0x14e   :  { %4839 = vmatpush.bf16.msra.mxu2 %v7617_v47  ;;  %v7646_v47 = vld [vmem:[#allocation3 + $0xb98] sm:$0xff]  ;;  %v7643_v8 = vld [vmem:[#allocation3 + $0xb80] sm:$0xff] }
 0x14f   :  { %4852 = vmatpush.bf16.msra.mxu3 %v7625_v48  ;;  %v4601_v5 = vadd.f32 %v4600_v3, %v4588_v2  ;;  %v7654_v48 = vld [vmem:[#allocation3 + $0xbd8] sm:$0xff]  ;;  %v1133_v2 = vld [vmem:[#allocation1 + $0x2d] sm:$0xff] }
 0x150   :  { %4814 = vmatpush.bf16.msra.mxu0 %v7600_v49  ;;  %v1135_v3 = vld [vmem:[#allocation1 + $0x3f] sm:$0xff] }
 0x151   :  { %4827 = vmatpush.bf16.msra.mxu1 %v7608_v50 }
 0x152   :  { %4840 = vmatpush.bf16.msra.mxu2 %v7616_v51 }
 0x153   :  { %4853 = vmatpush.bf16.msra.mxu3 %v7624_v52 }
 0x154   :  { %4815 = vmatpush.bf16.msra.mxu0 %v7599_v55  ;;  %v4589_v15 = vpop.f32.mrf.mxu2  ;;  %v7637_v55 = vld [vmem:[#allocation3 + $0xb50] sm:$0xff] }
 0x155   :  { %4828 = vmatpush.bf16.msra.mxu1 %v7607_v56  ;;  %v4602_v16 = vpop.f32.mrf.mxu3  ;;  %v7673_v15 = vld [vmem:[#allocation3 + $0xc70] sm:$0xff] }
 0x156   :  { %4841 = vmatpush.bf16.msra.mxu2 %v7615_v58  ;;  %v7653_v58 = vld [vmem:[#allocation3 + $0xbd0] sm:$0xff] }
 0x157   :  { %4854 = vmatpush.bf16.msra.mxu3 %v7623_v59  ;;  %v7628_v59 = vld [vmem:[#allocation3 + $0xb08] sm:$0xff]  ;;  %v7681_v16 = vld [vmem:[#allocation3 + $0xcb0] sm:$0xff] }
 0x158   :  { %4816 = vmatpush.bf16.msra.mxu0 %v7598_v61  ;;  %v7644_v61 = vld [vmem:[#allocation3 + $0xb88] sm:$0xff] }
 0x159   :  { %4829 = vmatpush.bf16.msra.mxu1 %v7606_v62  ;;  %v7652_v62 = vld [vmem:[#allocation3 + $0xbc8] sm:$0xff] }
 0x15a   :  { %4842 = vmatpush.bf16.msra.mxu2 %v7614_v63  ;;  %v1132_v63 = vld [vmem:[#allocation1 + $0x24] sm:$0xff] }
 0x15b   :  { %4855 = vmatpush.bf16.msra.mxu3 %v7622_v0  ;;  %v1134_v0 = vld [vmem:[#allocation1 + $0x36] sm:$0xff] }
 0x15c   :  { %4817 = vmatpush.bf16.msra.mxu0 %v7597_v6  ;;  %v7627_v6 = vld [vmem:[#allocation3 + $0xb00] sm:$0xff] }
 0x15d   :  { %4830 = vmatpush.bf16.msra.mxu1 %v7605_v7  ;;  %v7635_v7 = vld [vmem:[#allocation3 + $0xb40] sm:$0xff] }
 0x15e   :  { %4843 = vmatpush.bf16.msra.mxu2 %v7613_v9  ;;  %v7651_v9 = vld [vmem:[#allocation3 + $0xbc0] sm:$0xff] }
 0x15f   :  { %4856 = vmatpush.bf16.msra.mxu3 %v7621_v10  ;;  %v7666_v10 = vld [vmem:[#allocation3 + $0xc38] sm:$0xff] }
 0x160   :  { %4818 = vmatpush.bf16.msra.mxu0 %v7596_v11  ;;  %v7674_v11 = vld [vmem:[#allocation3 + $0xc78] sm:$0xff] }
 0x161   :  { %4831 = vmatpush.bf16.msra.mxu1 %v7604_v12  ;;  %v7682_v12 = vld [vmem:[#allocation3 + $0xcb8] sm:$0xff] }
 0x162   :  { %4844 = vmatpush.bf16.msra.mxu2 %v7612_v13  ;;  %v7690_v13 = vld [vmem:[#allocation3 + $0xcf8] sm:$0xff] }
 0x163   :  { %4857 = vmatpush.bf16.msra.mxu3 %v7620_v14  ;;  %v7665_v14 = vld [vmem:[#allocation3 + $0xc30] sm:$0xff] }
 0x164   :  { %4819 = vmatpush.bf16.msra.mxu0 %v7595_v17  ;;  %v4613_v37 = vpop.f32.mrf.mxu0  ;;  %v7689_v17 = vld [vmem:[#allocation3 + $0xcf0] sm:$0xff] }
 0x165   :  { %4832 = vmatpush.bf16.msra.mxu1 %v7603_v18  ;;  %v4614_v38 = vadd.f32 %v4613_v37, %v4601_v5  ;;  %v4626_v41 = vpop.f32.mrf.mxu1  ;;  %v49_v5 = vld [vmem:[%s7998_s0 + $0x30] sm:$0xff] }
 0x166   :  { %4845 = vmatpush.bf16.msra.mxu2 %v7611_v19  ;;  %1137 = vst [vmem:[#allocation1] ss:$9 sm:$0xff] %v49_v5  ;;  %v7664_v18 = vld [vmem:[#allocation3 + $0xc28] sm:$0xff] }
 0x167   :  { %4858 = vmatpush.bf16.msra.mxu3 %v7619_v20  ;;  %4820 = vmatmul.bf16.vlgmr.msra.gmra.mxu0 %v1128_v25  ;;  %v4627_v44 = vadd.f32 %v4626_v41, %v4614_v38  ;;  %v7672_v19 = vld [vmem:[#allocation3 + $0xc68] sm:$0xff]  ;;  %v7671_v25 = vld [vmem:[#allocation3 + $0xc60] sm:$0xff] }
 0x168   :  { %4864 = vmatpush.bf16.msrb.mxu0 %v7634_v21  ;;  %4833 = vmatmul.bf16.vlgmr.msra.gmra.mxu1 %v1129_v27  ;;  %v7680_v20 = vld [vmem:[#allocation3 + $0xca8] sm:$0xff]  ;;  %v7679_v27 = vld [vmem:[#allocation3 + $0xca0] sm:$0xff] }
 0x169   :  { %4877 = vmatpush.bf16.msrb.mxu1 %v7642_v22  ;;  %4846 = vmatmul.bf16.vlgmr.msra.gmra.mxu2 %v1130_v26  ;;  %v7688_v21 = vld [vmem:[#allocation3 + $0xce8] sm:$0xff] }
 0x16a   :  { %4890 = vmatpush.bf16.msrb.mxu2 %v7650_v23  ;;  %4859 = vmatmul.bf16.vlgmr.msra.gmra.mxu3 %v1131_v28  ;;  %v7687_v28 = vld [vmem:[#allocation3 + $0xce0] sm:$0xff]  ;;  %v7720_v5 = vld [vmem:[#allocation3 + $0xde8] sm:$0xff] }
 0x16b   :  { %4903 = vmatpush.bf16.msrb.mxu3 %v7658_v24  ;;  %v7663_v24 = vld [vmem:[#allocation3 + $0xc20] sm:$0xff] }
 0x16c   :  { %4865 = vmatpush.bf16.msrb.mxu0 %v7633_v29  ;;  %v4639_v49 = vpop.f32.mrf.mxu2  ;;  %v4615_v52 = vpop.f32.mrf.mxu0 }
 0x16d   :  { %4878 = vmatpush.bf16.msrb.mxu1 %v7641_v30  ;;  %v4640_v50 = vadd.f32 %v4639_v49, %v4627_v44  ;;  %v4652_v51 = vpop.f32.mrf.mxu3  ;;  %v4628_v56 = vpop.f32.mrf.mxu1  ;;  %v7662_v30 = vld [vmem:[#allocation3 + $0xc18] sm:$0xff]  ;;  %v7660_v44 = vld [vmem:[#allocation3 + $0xc08] sm:$0xff]  ;;  %v7675_v52 = vld [vmem:[#allocation3 + $0xc80] sm:$0xff] }
 0x16e   :  { %4891 = vmatpush.bf16.msrb.mxu2 %v7649_v31  ;;  %v7670_v31 = vld [vmem:[#allocation3 + $0xc58] sm:$0xff] }
 0x16f   :  { %4904 = vmatpush.bf16.msrb.mxu3 %v7657_v32  ;;  %v7932_v53 = vadd.f32 %v4652_v51, %v4640_v50  ;;  %v7678_v32 = vld [vmem:[#allocation3 + $0xc98] sm:$0xff]  ;;  %v7659_v50 = vld [vmem:[#allocation3 + $0xc00] sm:$0xff] }
 0x170   :  { %4866 = vmatpush.bf16.msrb.mxu0 %v7632_v33  ;;  %v7686_v33 = vld [vmem:[#allocation3 + $0xcd8] sm:$0xff]  ;;  %v7667_v51 = vld [vmem:[#allocation3 + $0xc40] sm:$0xff] }
 0x171   :  { %4879 = vmatpush.bf16.msrb.mxu1 %v7640_v34  ;;  %v7714_v56 = vld [vmem:[#allocation3 + $0xdb8] sm:$0xff] }
 0x172   :  { %4892 = vmatpush.bf16.msrb.mxu2 %v7648_v35 }
 0x173   :  { %4905 = vmatpush.bf16.msrb.mxu3 %v7656_v36 }
 0x174   :  { %4867 = vmatpush.bf16.msrb.mxu0 %v7631_v39  ;;  %v4641_v1 = vpop.f32.mrf.mxu2  ;;  %v7661_v39 = vld [vmem:[#allocation3 + $0xc10] sm:$0xff] }
 0x175   :  { %4880 = vmatpush.bf16.msrb.mxu1 %v7639_v40  ;;  %v4654_v4 = vpop.f32.mrf.mxu3  ;;  %v7669_v40 = vld [vmem:[#allocation3 + $0xc50] sm:$0xff] }
 0x176   :  { %4893 = vmatpush.bf16.msrb.mxu2 %v7647_v42  ;;  %v7677_v42 = vld [vmem:[#allocation3 + $0xc90] sm:$0xff]  ;;  %v7712_v4 = vld [vmem:[#allocation3 + $0xda8] sm:$0xff] }
 0x177   :  { %4906 = vmatpush.bf16.msrb.mxu3 %v7655_v43  ;;  %v7685_v43 = vld [vmem:[#allocation3 + $0xcd0] sm:$0xff] }
 0x178   :  { %4868 = vmatpush.bf16.msrb.mxu0 %v7630_v45  ;;  %v7668_v45 = vld [vmem:[#allocation3 + $0xc48] sm:$0xff]  ;;  %v7721_v1 = vld [vmem:[#allocation3 + $0xdf0] sm:$0xff] }
 0x179   :  { %4881 = vmatpush.bf16.msrb.mxu1 %v7638_v46  ;;  %v7676_v46 = vld [vmem:[#allocation3 + $0xc88] sm:$0xff] }
 0x17a   :  { %4894 = vmatpush.bf16.msrb.mxu2 %v7646_v47  ;;  %v7684_v47 = vld [vmem:[#allocation3 + $0xcc8] sm:$0xff] }
 0x17b   :  { %4907 = vmatpush.bf16.msrb.mxu3 %v7654_v48 }
 0x17c   :  { %4869 = vmatpush.bf16.msrb.mxu0 %v7629_v54  ;;  %v7698_v54 = vld [vmem:[#allocation3 + $0xd38] sm:$0xff] }
 0x17d   :  { %4882 = vmatpush.bf16.msrb.mxu1 %v7637_v55  ;;  %v7706_v55 = vld [vmem:[#allocation3 + $0xd78] sm:$0xff] }
 0x17e   :  { %4895 = vmatpush.bf16.msrb.mxu2 %v7645_v57  ;;  %v7722_v57 = vld [vmem:[#allocation3 + $0xdf8] sm:$0xff] }
 0x17f   :  { %4908 = vmatpush.bf16.msrb.mxu3 %v7653_v58  ;;  %v1138_v58 = vld [vmem:[#allocation1] sm:$0xff] }
 0x180   :  { %4870 = vmatpush.bf16.msrb.mxu0 %v7628_v59  ;;  %v1140_v59 = vld [vmem:[#allocation1 + $0x12] sm:$0xff] }
 0x181   :  { %4883 = vmatpush.bf16.msrb.mxu1 %v7636_v60  ;;  %v1139_v60 = vld [vmem:[#allocation1 + $0x9] sm:$0xff] }
 0x182   :  { %4896 = vmatpush.bf16.msrb.mxu2 %v7644_v61  ;;  %v1141_v61 = vld [vmem:[#allocation1 + $0x1b] sm:$0xff] }
 0x183   :  { %4909 = vmatpush.bf16.msrb.mxu3 %v7652_v62  ;;  %v7697_v62 = vld [vmem:[#allocation3 + $0xd30] sm:$0xff] }
 0x184   :  { %4871 = vmatpush.bf16.msrb.mxu0 %v7627_v6  ;;  %v4665_v22 = vpop.f32.mrf.mxu0 }
 0x185   :  { %4884 = vmatpush.bf16.msrb.mxu1 %v7635_v7  ;;  %v4666_v23 = vadd.f32 %v4665_v22, %v7932_v53  ;;  %v4678_v26 = vpop.f32.mrf.mxu1  ;;  %v7683_v53 = vld [vmem:[#allocation3 + $0xcc0] sm:$0xff] }
 0x186   :  { %4897 = vmatpush.bf16.msrb.mxu2 %v7643_v8  ;;  %v7695_v8 = vld [vmem:[#allocation3 + $0xd20] sm:$0xff] }
 0x187   :  { %4910 = vmatpush.bf16.msrb.mxu3 %v7651_v9  ;;  %4872 = vmatmul.bf16.vlgmr.msrb.gmra.mxu0 %v1132_v63  ;;  %v4679_v29 = vadd.f32 %v4678_v26, %v4666_v23  ;;  %v7705_v63 = vld [vmem:[#allocation3 + $0xd70] sm:$0xff]  ;;  %v7703_v9 = vld [vmem:[#allocation3 + $0xd60] sm:$0xff] }
 0x188   :  { %4916 = vmatpush.bf16.msra.mxu0 %v7666_v10  ;;  %4885 = vmatmul.bf16.vlgmr.msrb.gmra.mxu1 %v1133_v2  ;;  %v7696_v2 = vld [vmem:[#allocation3 + $0xd28] sm:$0xff]  ;;  %v7693_v23 = vld [vmem:[#allocation3 + $0xd10] sm:$0xff] }
 0x189   :  { %4929 = vmatpush.bf16.msra.mxu1 %v7674_v11  ;;  %4898 = vmatmul.bf16.vlgmr.msrb.gmra.mxu2 %v1134_v0  ;;  %v7713_v0 = vld [vmem:[#allocation3 + $0xdb0] sm:$0xff]  ;;  %v7711_v11 = vld [vmem:[#allocation3 + $0xda0] sm:$0xff] }
 0x18a   :  { %4942 = vmatpush.bf16.msra.mxu2 %v7682_v12  ;;  %4911 = vmatmul.bf16.vlgmr.msrb.gmra.mxu3 %v1135_v3  ;;  %v7704_v3 = vld [vmem:[#allocation3 + $0xd68] sm:$0xff]  ;;  %v7719_v12 = vld [vmem:[#allocation3 + $0xde0] sm:$0xff]  ;;  %v7709_v26 = vld [vmem:[#allocation3 + $0xd90] sm:$0xff] }
 0x18b   :  { %4955 = vmatpush.bf16.msra.mxu3 %v7690_v13 }
 0x18c   :  { %4917 = vmatpush.bf16.msra.mxu0 %v7665_v14  ;;  %v4691_v34 = vpop.f32.mrf.mxu2  ;;  %v4667_v37 = vpop.f32.mrf.mxu0  ;;  %v7694_v14 = vld [vmem:[#allocation3 + $0xd18] sm:$0xff] }
 0x18d   :  { %4930 = vmatpush.bf16.msra.mxu1 %v7673_v15  ;;  %v4692_v35 = vadd.f32 %v4691_v34, %v4679_v29  ;;  %v4704_v36 = vpop.f32.mrf.mxu3  ;;  %v4680_v41 = vpop.f32.mrf.mxu1  ;;  %v7702_v15 = vld [vmem:[#allocation3 + $0xd58] sm:$0xff]  ;;  %v7700_v29 = vld [vmem:[#allocation3 + $0xd48] sm:$0xff] }
 0x18e   :  { %4943 = vmatpush.bf16.msra.mxu2 %v7681_v16  ;;  %v7710_v16 = vld [vmem:[#allocation3 + $0xd98] sm:$0xff]  ;;  %v7707_v41 = vld [vmem:[#allocation3 + $0xd80] sm:$0xff] }
 0x18f   :  { %4956 = vmatpush.bf16.msra.mxu3 %v7689_v17  ;;  %v4705_v38 = vadd.f32 %v4704_v36, %v4692_v35  ;;  %v7718_v17 = vld [vmem:[#allocation3 + $0xdd8] sm:$0xff]  ;;  %v1143_v35 = vld [vmem:[#allocation1 + $0x2d] sm:$0xff] }
 0x190   :  { %4918 = vmatpush.bf16.msra.mxu0 %v7664_v18  ;;  %v1145_v36 = vld [vmem:[#allocation1 + $0x3f] sm:$0xff] }
 0x191   :  { %4931 = vmatpush.bf16.msra.mxu1 %v7672_v19 }
 0x192   :  { %4944 = vmatpush.bf16.msra.mxu2 %v7680_v20 }
 0x193   :  { %4957 = vmatpush.bf16.msra.mxu3 %v7688_v21 }
 0x194   :  { %4919 = vmatpush.bf16.msra.mxu0 %v7663_v24  ;;  %v4693_v48 = vpop.f32.mrf.mxu2  ;;  %v7701_v24 = vld [vmem:[#allocation3 + $0xd50] sm:$0xff] }
 0x195   :  { %4932 = vmatpush.bf16.msra.mxu1 %v7671_v25  ;;  %v4706_v49 = vpop.f32.mrf.mxu3  ;;  %v7737_v48 = vld [vmem:[#allocation3 + $0xe70] sm:$0xff] }
 0x196   :  { %4945 = vmatpush.bf16.msra.mxu2 %v7679_v27  ;;  %v7717_v27 = vld [vmem:[#allocation3 + $0xdd0] sm:$0xff] }
 0x197   :  { %4958 = vmatpush.bf16.msra.mxu3 %v7687_v28  ;;  %v7692_v28 = vld [vmem:[#allocation3 + $0xd08] sm:$0xff]  ;;  %v7745_v49 = vld [vmem:[#allocation3 + $0xeb0] sm:$0xff] }
 0x198   :  { %4920 = vmatpush.bf16.msra.mxu0 %v7662_v30  ;;  %v7708_v30 = vld [vmem:[#allocation3 + $0xd88] sm:$0xff] }
 0x199   :  { %4933 = vmatpush.bf16.msra.mxu1 %v7670_v31  ;;  %v7716_v31 = vld [vmem:[#allocation3 + $0xdc8] sm:$0xff] }
 0x19a   :  { %4946 = vmatpush.bf16.msra.mxu2 %v7678_v32  ;;  %v1142_v32 = vld [vmem:[#allocation1 + $0x24] sm:$0xff] }
 0x19b   :  { %4959 = vmatpush.bf16.msra.mxu3 %v7686_v33  ;;  %v1144_v33 = vld [vmem:[#allocation1 + $0x36] sm:$0xff] }
 0x19c   :  { %4921 = vmatpush.bf16.msra.mxu0 %v7661_v39  ;;  %v7691_v39 = vld [vmem:[#allocation3 + $0xd00] sm:$0xff] }
 0x19d   :  { %4934 = vmatpush.bf16.msra.mxu1 %v7669_v40  ;;  %v7699_v40 = vld [vmem:[#allocation3 + $0xd40] sm:$0xff] }
 0x19e   :  { %4947 = vmatpush.bf16.msra.mxu2 %v7677_v42  ;;  %v7715_v42 = vld [vmem:[#allocation3 + $0xdc0] sm:$0xff] }
 0x19f   :  { %4960 = vmatpush.bf16.msra.mxu3 %v7685_v43  ;;  %v7730_v43 = vld [vmem:[#allocation3 + $0xe38] sm:$0xff] }
 0x1a0   :  { %4922 = vmatpush.bf16.msra.mxu0 %v7660_v44  ;;  %v7738_v44 = vld [vmem:[#allocation3 + $0xe78] sm:$0xff] }
 0x1a1   :  { %4935 = vmatpush.bf16.msra.mxu1 %v7668_v45  ;;  %v7746_v45 = vld [vmem:[#allocation3 + $0xeb8] sm:$0xff] }
 0x1a2   :  { %4948 = vmatpush.bf16.msra.mxu2 %v7676_v46  ;;  %v7754_v46 = vld [vmem:[#allocation3 + $0xef8] sm:$0xff] }
 0x1a3   :  { %4961 = vmatpush.bf16.msra.mxu3 %v7684_v47  ;;  %v7729_v47 = vld [vmem:[#allocation3 + $0xe30] sm:$0xff] }
 0x1a4   :  { %4923 = vmatpush.bf16.msra.mxu0 %v7659_v50  ;;  %v4717_v6 = vpop.f32.mrf.mxu0  ;;  %v7753_v50 = vld [vmem:[#allocation3 + $0xef0] sm:$0xff] }
 0x1a5   :  { %4936 = vmatpush.bf16.msra.mxu1 %v7667_v51  ;;  %v4718_v7 = vadd.f32 %v4717_v6, %v4705_v38  ;;  %v4730_v10 = vpop.f32.mrf.mxu1  ;;  %v50_v38 = vld [vmem:[%s7998_s0 + $0x38] sm:$0xff] }
 0x1a6   :  { %4949 = vmatpush.bf16.msra.mxu2 %v7675_v52  ;;  %1147 = vst [vmem:[#allocation1] ss:$9 sm:$0xff] %v50_v38  ;;  %v7728_v51 = vld [vmem:[#allocation3 + $0xe28] sm:$0xff] }
 0x1a7   :  { %4962 = vmatpush.bf16.msra.mxu3 %v7683_v53  ;;  %4924 = vmatmul.bf16.vlgmr.msra.gmra.mxu0 %v1138_v58  ;;  %v4731_v13 = vadd.f32 %v4730_v10, %v4718_v7  ;;  %v7736_v52 = vld [vmem:[#allocation3 + $0xe68] sm:$0xff]  ;;  %v7735_v58 = vld [vmem:[#allocation3 + $0xe60] sm:$0xff] }
 0x1a8   :  { %4968 = vmatpush.bf16.msrb.mxu0 %v7698_v54  ;;  %4937 = vmatmul.bf16.vlgmr.msra.gmra.mxu1 %v1139_v60  ;;  %v7744_v53 = vld [vmem:[#allocation3 + $0xea8] sm:$0xff]  ;;  %v7743_v60 = vld [vmem:[#allocation3 + $0xea0] sm:$0xff] }
 0x1a9   :  { %4981 = vmatpush.bf16.msrb.mxu1 %v7706_v55  ;;  %4950 = vmatmul.bf16.vlgmr.msra.gmra.mxu2 %v1140_v59  ;;  %v7752_v54 = vld [vmem:[#allocation3 + $0xee8] sm:$0xff] }
 0x1aa   :  { %4994 = vmatpush.bf16.msrb.mxu2 %v7714_v56  ;;  %4963 = vmatmul.bf16.vlgmr.msra.gmra.mxu3 %v1141_v61  ;;  %v7751_v61 = vld [vmem:[#allocation3 + $0xee0] sm:$0xff]  ;;  %v7784_v38 = vld [vmem:[#allocation3 + $0xfe8] sm:$0xff] }
 0x1ab   :  { %5007 = vmatpush.bf16.msrb.mxu3 %v7722_v57  ;;  %v7727_v57 = vld [vmem:[#allocation3 + $0xe20] sm:$0xff] }
 0x1ac   :  { %4969 = vmatpush.bf16.msrb.mxu0 %v7697_v62  ;;  %v4743_v18 = vpop.f32.mrf.mxu2  ;;  %v4719_v21 = vpop.f32.mrf.mxu0 }
 0x1ad   :  { %4982 = vmatpush.bf16.msrb.mxu1 %v7705_v63  ;;  %v4744_v19 = vadd.f32 %v4743_v18, %v4731_v13  ;;  %v4756_v20 = vpop.f32.mrf.mxu3  ;;  %v4732_v25 = vpop.f32.mrf.mxu1  ;;  %v7726_v63 = vld [vmem:[#allocation3 + $0xe18] sm:$0xff]  ;;  %v7724_v13 = vld [vmem:[#allocation3 + $0xe08] sm:$0xff]  ;;  %v7739_v21 = vld [vmem:[#allocation3 + $0xe80] sm:$0xff] }
 0x1ae   :  { %4995 = vmatpush.bf16.msrb.mxu2 %v7713_v0  ;;  %v7734_v0 = vld [vmem:[#allocation3 + $0xe58] sm:$0xff] }
 0x1af   :  { %5008 = vmatpush.bf16.msrb.mxu3 %v7721_v1  ;;  %v7938_v22 = vadd.f32 %v4756_v20, %v4744_v19  ;;  %v7742_v1 = vld [vmem:[#allocation3 + $0xe98] sm:$0xff]  ;;  %v7723_v19 = vld [vmem:[#allocation3 + $0xe00] sm:$0xff] }
 0x1b0   :  { %4970 = vmatpush.bf16.msrb.mxu0 %v7696_v2  ;;  %v7750_v2 = vld [vmem:[#allocation3 + $0xed8] sm:$0xff]  ;;  %v7731_v20 = vld [vmem:[#allocation3 + $0xe40] sm:$0xff] }
 0x1b1   :  { %4983 = vmatpush.bf16.msrb.mxu1 %v7704_v3  ;;  %v7778_v25 = vld [vmem:[#allocation3 + $0xfb8] sm:$0xff] }
 0x1b2   :  { %4996 = vmatpush.bf16.msrb.mxu2 %v7712_v4 }
 0x1b3   :  { %5009 = vmatpush.bf16.msrb.mxu3 %v7720_v5 }
 0x1b4   :  { %4971 = vmatpush.bf16.msrb.mxu0 %v7695_v8  ;;  %v4745_v34 = vpop.f32.mrf.mxu2  ;;  %v7725_v8 = vld [vmem:[#allocation3 + $0xe10] sm:$0xff] }
 0x1b5   :  { %4984 = vmatpush.bf16.msrb.mxu1 %v7703_v9  ;;  %v4758_v37 = vpop.f32.mrf.mxu3  ;;  %v7733_v9 = vld [vmem:[#allocation3 + $0xe50] sm:$0xff] }
 0x1b6   :  { %4997 = vmatpush.bf16.msrb.mxu2 %v7711_v11  ;;  %v7741_v11 = vld [vmem:[#allocation3 + $0xe90] sm:$0xff]  ;;  %v7776_v37 = vld [vmem:[#allocation3 + $0xfa8] sm:$0xff] }
 0x1b7   :  { %5010 = vmatpush.bf16.msrb.mxu3 %v7719_v12  ;;  %v7749_v12 = vld [vmem:[#allocation3 + $0xed0] sm:$0xff] }
 0x1b8   :  { %4972 = vmatpush.bf16.msrb.mxu0 %v7694_v14  ;;  %v7732_v14 = vld [vmem:[#allocation3 + $0xe48] sm:$0xff]  ;;  %v7785_v34 = vld [vmem:[#allocation3 + $0xff0] sm:$0xff] }
 0x1b9   :  { %4985 = vmatpush.bf16.msrb.mxu1 %v7702_v15  ;;  %v7740_v15 = vld [vmem:[#allocation3 + $0xe88] sm:$0xff] }
 0x1ba   :  { %4998 = vmatpush.bf16.msrb.mxu2 %v7710_v16  ;;  %v7748_v16 = vld [vmem:[#allocation3 + $0xec8] sm:$0xff] }
 0x1bb   :  { %5011 = vmatpush.bf16.msrb.mxu3 %v7718_v17 }
 0x1bc   :  { %4973 = vmatpush.bf16.msrb.mxu0 %v7693_v23  ;;  %v7762_v23 = vld [vmem:[#allocation3 + $0xf38] sm:$0xff] }
 0x1bd   :  { %4986 = vmatpush.bf16.msrb.mxu1 %v7701_v24  ;;  %v7770_v24 = vld [vmem:[#allocation3 + $0xf78] sm:$0xff] }
 0x1be   :  { %4999 = vmatpush.bf16.msrb.mxu2 %v7709_v26  ;;  %v7786_v26 = vld [vmem:[#allocation3 + $0xff8] sm:$0xff] }
 0x1bf   :  { %5012 = vmatpush.bf16.msrb.mxu3 %v7717_v27  ;;  %v1148_v27 = vld [vmem:[#allocation1] sm:$0xff] }
 0x1c0   :  { %4974 = vmatpush.bf16.msrb.mxu0 %v7692_v28  ;;  %v1150_v28 = vld [vmem:[#allocation1 + $0x12] sm:$0xff] }
 0x1c1   :  { %4987 = vmatpush.bf16.msrb.mxu1 %v7700_v29  ;;  %v1149_v29 = vld [vmem:[#allocation1 + $0x9] sm:$0xff] }
 0x1c2   :  { %5000 = vmatpush.bf16.msrb.mxu2 %v7708_v30  ;;  %v1151_v30 = vld [vmem:[#allocation1 + $0x1b] sm:$0xff] }
 0x1c3   :  { %5013 = vmatpush.bf16.msrb.mxu3 %v7716_v31  ;;  %v7761_v31 = vld [vmem:[#allocation3 + $0xf30] sm:$0xff] }
 0x1c4   :  { %4975 = vmatpush.bf16.msrb.mxu0 %v7691_v39  ;;  %v4769_v55 = vpop.f32.mrf.mxu0 }
 0x1c5   :  { %4988 = vmatpush.bf16.msrb.mxu1 %v7699_v40  ;;  %v4770_v56 = vadd.f32 %v4769_v55, %v7938_v22  ;;  %v4782_v59 = vpop.f32.mrf.mxu1  ;;  %v7747_v22 = vld [vmem:[#allocation3 + $0xec0] sm:$0xff] }
 0x1c6   :  { %5001 = vmatpush.bf16.msrb.mxu2 %v7707_v41  ;;  %v7759_v41 = vld [vmem:[#allocation3 + $0xf20] sm:$0xff] }
 0x1c7   :  { %5014 = vmatpush.bf16.msrb.mxu3 %v7715_v42  ;;  %4976 = vmatmul.bf16.vlgmr.msrb.gmra.mxu0 %v1142_v32  ;;  %v4783_v62 = vadd.f32 %v4782_v59, %v4770_v56  ;;  %v7769_v32 = vld [vmem:[#allocation3 + $0xf70] sm:$0xff]  ;;  %v7767_v42 = vld [vmem:[#allocation3 + $0xf60] sm:$0xff] }
 0x1c8   :  { %5020 = vmatpush.bf16.msra.mxu0 %v7730_v43  ;;  %4989 = vmatmul.bf16.vlgmr.msrb.gmra.mxu1 %v1143_v35  ;;  %v7760_v35 = vld [vmem:[#allocation3 + $0xf28] sm:$0xff]  ;;  %v7757_v56 = vld [vmem:[#allocation3 + $0xf10] sm:$0xff] }
 0x1c9   :  { %5033 = vmatpush.bf16.msra.mxu1 %v7738_v44  ;;  %5002 = vmatmul.bf16.vlgmr.msrb.gmra.mxu2 %v1144_v33  ;;  %v7777_v33 = vld [vmem:[#allocation3 + $0xfb0] sm:$0xff]  ;;  %v7775_v44 = vld [vmem:[#allocation3 + $0xfa0] sm:$0xff] }
 0x1ca   :  { %5046 = vmatpush.bf16.msra.mxu2 %v7746_v45  ;;  %5015 = vmatmul.bf16.vlgmr.msrb.gmra.mxu3 %v1145_v36  ;;  %v7768_v36 = vld [vmem:[#allocation3 + $0xf68] sm:$0xff]  ;;  %v7783_v45 = vld [vmem:[#allocation3 + $0xfe0] sm:$0xff]  ;;  %v7773_v59 = vld [vmem:[#allocation3 + $0xf90] sm:$0xff] }
 0x1cb   :  { %5059 = vmatpush.bf16.msra.mxu3 %v7754_v46 }
 0x1cc   :  { %5021 = vmatpush.bf16.msra.mxu0 %v7729_v47  ;;  %v4795_v3 = vpop.f32.mrf.mxu2  ;;  %v4771_v6 = vpop.f32.mrf.mxu0  ;;  %v7758_v47 = vld [vmem:[#allocation3 + $0xf18] sm:$0xff] }
 0x1cd   :  { %5034 = vmatpush.bf16.msra.mxu1 %v7737_v48  ;;  %v4796_v4 = vadd.f32 %v4795_v3, %v4783_v62  ;;  %v4808_v5 = vpop.f32.mrf.mxu3  ;;  %v4784_v10 = vpop.f32.mrf.mxu1  ;;  %v7766_v48 = vld [vmem:[#allocation3 + $0xf58] sm:$0xff]  ;;  %v7764_v62 = vld [vmem:[#allocation3 + $0xf48] sm:$0xff]  ;;  %v7755_v3 = vld [vmem:[#allocation3 + $0xf00] sm:$0xff] }
 0x1ce   :  { %5047 = vmatpush.bf16.msra.mxu2 %v7745_v49  ;;  %v7774_v49 = vld [vmem:[#allocation3 + $0xf98] sm:$0xff]  ;;  %v7779_v6 = vld [vmem:[#allocation3 + $0xfc0] sm:$0xff] }
 0x1cf   :  { %5060 = vmatpush.bf16.msra.mxu3 %v7753_v50  ;;  %v4809_v7 = vadd.f32 %v4808_v5, %v4796_v4  ;;  %v7782_v50 = vld [vmem:[#allocation3 + $0xfd8] sm:$0xff]  ;;  %v7763_v4 = vld [vmem:[#allocation3 + $0xf40] sm:$0xff] }
 0x1d0   :  { %5022 = vmatpush.bf16.msra.mxu0 %v7728_v51  ;;  %v7771_v5 = vld [vmem:[#allocation3 + $0xf80] sm:$0xff]  ;;  %v1155_v10 = vld [vmem:[#allocation1 + $0x3f] sm:$0xff] }
 0x1d1   :  { %5035 = vmatpush.bf16.msra.mxu1 %v7736_v52 }
 0x1d2   :  { %5048 = vmatpush.bf16.msra.mxu2 %v7744_v53 }
 0x1d3   :  { %5061 = vmatpush.bf16.msra.mxu3 %v7752_v54 }
 0x1d4   :  { %5023 = vmatpush.bf16.msra.mxu0 %v7727_v57  ;;  %v4797_v17 = vpop.f32.mrf.mxu2  ;;  %v7765_v57 = vld [vmem:[#allocation3 + $0xf50] sm:$0xff] }
 0x1d5   :  { %5036 = vmatpush.bf16.msra.mxu1 %v7735_v58  ;;  %v4810_v18 = vpop.f32.mrf.mxu3 }
 0x1d6   :  { %5049 = vmatpush.bf16.msra.mxu2 %v7743_v60  ;;  %v7781_v60 = vld [vmem:[#allocation3 + $0xfd0] sm:$0xff] }
 0x1d7   :  { %5062 = vmatpush.bf16.msra.mxu3 %v7751_v61  ;;  %v7756_v61 = vld [vmem:[#allocation3 + $0xf08] sm:$0xff] }
 0x1d8   :  { %5024 = vmatpush.bf16.msra.mxu0 %v7726_v63  ;;  %v7772_v63 = vld [vmem:[#allocation3 + $0xf88] sm:$0xff] }
 0x1d9   :  { %5037 = vmatpush.bf16.msra.mxu1 %v7734_v0  ;;  %v7780_v0 = vld [vmem:[#allocation3 + $0xfc8] sm:$0xff] }
 0x1da   :  { %5050 = vmatpush.bf16.msra.mxu2 %v7742_v1 }
 0x1db   :  { %5063 = vmatpush.bf16.msra.mxu3 %v7750_v2 }
 0x1dc   :  { %5025 = vmatpush.bf16.msra.mxu0 %v7725_v8  ;;  %v1153_v8 = vld [vmem:[#allocation1 + $0x2d] sm:$0xff] }
 0x1dd   :  { %5038 = vmatpush.bf16.msra.mxu1 %v7733_v9  ;;  %v1154_v9 = vld [vmem:[#allocation1 + $0x36] sm:$0xff] }
 0x1de   :  { %5051 = vmatpush.bf16.msra.mxu2 %v7741_v11 }
 0x1df   :  { %5064 = vmatpush.bf16.msra.mxu3 %v7749_v12 }
 0x1e0   :  { %5026 = vmatpush.bf16.msra.mxu0 %v7724_v13 }
 0x1e1   :  { %5039 = vmatpush.bf16.msra.mxu1 %v7732_v14 }
 0x1e2   :  { %5052 = vmatpush.bf16.msra.mxu2 %v7740_v15 }
 0x1e3   :  { %5065 = vmatpush.bf16.msra.mxu3 %v7748_v16 }
 0x1e4   :  { %5027 = vmatpush.bf16.msra.mxu0 %v7723_v19  ;;  %v4821_v39 = vpop.f32.mrf.mxu0 }
 0x1e5   :  { %5040 = vmatpush.bf16.msra.mxu1 %v7731_v20  ;;  %v4822_v40 = vadd.f32 %v4821_v39, %v4809_v7  ;;  %v4834_v43 = vpop.f32.mrf.mxu1  ;;  %v1152_v7 = vld [vmem:[#allocation1 + $0x24] sm:$0xff] }
 0x1e6   :  { %5053 = vmatpush.bf16.msra.mxu2 %v7739_v21 }
 0x1e7   :  { %5066 = vmatpush.bf16.msra.mxu3 %v7747_v22  ;;  %5028 = vmatmul.bf16.vlgmr.msra.gmra.mxu0 %v1148_v27  ;;  %v4835_v46 = vadd.f32 %v4834_v43, %v4822_v40 }
 0x1e8   :  { %5072 = vmatpush.bf16.msrb.mxu0 %v7762_v23  ;;  %5041 = vmatmul.bf16.vlgmr.msra.gmra.mxu1 %v1149_v29 }
 0x1e9   :  { %5085 = vmatpush.bf16.msrb.mxu1 %v7770_v24  ;;  %5054 = vmatmul.bf16.vlgmr.msra.gmra.mxu2 %v1150_v28 }
 0x1ea   :  { %5098 = vmatpush.bf16.msrb.mxu2 %v7778_v25  ;;  %5067 = vmatmul.bf16.vlgmr.msra.gmra.mxu3 %v1151_v30 }
 0x1eb   :  { %5111 = vmatpush.bf16.msrb.mxu3 %v7786_v26 }
 0x1ec   :  { %5073 = vmatpush.bf16.msrb.mxu0 %v7761_v31  ;;  %v4847_v51 = vpop.f32.mrf.mxu2  ;;  %v4823_v54 = vpop.f32.mrf.mxu0 }
 0x1ed   :  { %5086 = vmatpush.bf16.msrb.mxu1 %v7769_v32  ;;  %v4848_v52 = vadd.f32 %v4847_v51, %v4835_v46  ;;  %v4860_v53 = vpop.f32.mrf.mxu3  ;;  %v4836_v58 = vpop.f32.mrf.mxu1  ;;  %v5143_v46 = vld [vmem:[%s8000_s2 + $0x60] sm:$0xff]  ;;  %v5138_v54 = vld [vmem:[%s8000_s2 + $0x38] sm:$0xff] }
 0x1ee   :  { %5099 = vmatpush.bf16.msrb.mxu2 %v7777_v33  ;;  %v5137_v58 = vld [vmem:[%s8000_s2 + $0x30] sm:$0xff] }
 0x1ef   :  { %5112 = vmatpush.bf16.msrb.mxu3 %v7785_v34  ;;  %v4861_v55 = vadd.f32 %v4860_v53, %v4848_v52  ;;  %v7874_v52 = vmov 0.0   ;;  %v5139_v53 = vld [vmem:[%s8000_s2 + $0x40] sm:$0xff] }
 0x1f0   :  { %5074 = vmatpush.bf16.msrb.mxu0 %v7760_v35  ;;  %38 = vst [vmem:[#allocation2] sm:$0x1] %v7874_v52 }
 0x1f1   :  { %5087 = vmatpush.bf16.msrb.mxu1 %v7768_v36 }
 0x1f2   :  { %5100 = vmatpush.bf16.msrb.mxu2 %v7776_v37 }
 0x1f3   :  { %5113 = vmatpush.bf16.msrb.mxu3 %v7784_v38 }
 0x1f4   :  { %5075 = vmatpush.bf16.msrb.mxu0 %v7759_v41  ;;  %v4849_v1 = vpop.f32.mrf.mxu2  ;;  %v5146_v41 = vld [vmem:[%s8000_s2 + $0x78] sm:$0xff] }
 0x1f5   :  { %5088 = vmatpush.bf16.msrb.mxu1 %v7767_v42  ;;  %v4862_v2 = vpop.f32.mrf.mxu3  ;;  %v5145_v42 = vld [vmem:[%s8000_s2 + $0x70] sm:$0xff] }
 0x1f6   :  { %5101 = vmatpush.bf16.msrb.mxu2 %v7775_v44  ;;  %v5133_v2 = vld [vmem:[%s8000_s2 + $0x10] sm:$0xff] }
 0x1f7   :  { %5114 = vmatpush.bf16.msrb.mxu3 %v7783_v45  ;;  %v5144_v45 = vld [vmem:[%s8000_s2 + $0x68] sm:$0xff] }
 0x1f8   :  { %5076 = vmatpush.bf16.msrb.mxu0 %v7758_v47  ;;  %v5142_v47 = vld [vmem:[%s8000_s2 + $0x58] sm:$0xff] }
 0x1f9   :  { %5089 = vmatpush.bf16.msrb.mxu1 %v7766_v48  ;;  %v5141_v48 = vld [vmem:[%s8000_s2 + $0x50] sm:$0xff] }
 0x1fa   :  { %5102 = vmatpush.bf16.msrb.mxu2 %v7774_v49 }
 0x1fb   :  { %5115 = vmatpush.bf16.msrb.mxu3 %v7782_v50  ;;  %v5140_v50 = vld [vmem:[%s8000_s2 + $0x48] sm:$0xff] }
 0x1fc   :  { %5077 = vmatpush.bf16.msrb.mxu0 %v7757_v56 }
 0x1fd   :  { %5090 = vmatpush.bf16.msrb.mxu1 %v7765_v57 }
 0x1fe   :  { %5103 = vmatpush.bf16.msrb.mxu2 %v7773_v59 }
 0x1ff   :  { %5116 = vmatpush.bf16.msrb.mxu3 %v7781_v60 }
 0x200   :  { %5078 = vmatpush.bf16.msrb.mxu0 %v7756_v61  ;;  %v5136_v61 = vld [vmem:[%s8000_s2 + $0x28] sm:$0xff] }
 0x201   :  { %5091 = vmatpush.bf16.msrb.mxu1 %v7764_v62 }
 0x202   :  { %5104 = vmatpush.bf16.msrb.mxu2 %v7772_v63  ;;  %v5135_v63 = vld [vmem:[%s8000_s2 + $0x20] sm:$0xff] }
 0x203   :  { %5117 = vmatpush.bf16.msrb.mxu3 %v7780_v0  ;;  %v5134_v0 = vld [vmem:[%s8000_s2 + $0x18] sm:$0xff] }
 0x204   :  { %5079 = vmatpush.bf16.msrb.mxu0 %v7755_v3  ;;  %v4873_v11 = vpop.f32.mrf.mxu0 }
 0x205   :  { %5092 = vmatpush.bf16.msrb.mxu1 %v7763_v4  ;;  %v4874_v12 = vadd.f32 %v4873_v11, %v4861_v55  ;;  %v4886_v13 = vpop.f32.mrf.mxu1 }
 0x206   :  { %5105 = vmatpush.bf16.msrb.mxu2 %v7771_v5  ;;  %v5132_v5 = vld [vmem:[%s8000_s2 + $0x8] sm:$0xff] }
 0x207   :  { %5118 = vmatpush.bf16.msrb.mxu3 %v7779_v6  ;;  %5080 = vmatmul.bf16.vlgmr.msrb.gmra.mxu0 %v1152_v7  ;;  %v4887_v14 = vadd.f32 %v4886_v13, %v4874_v12  ;;  %v5131_v7 = vld [vmem:[%s8000_s2] sm:$0xff]  ;;  %s7875_s2 = smov [#allocation7]  }
 0x208   :  { %5093 = vmatmul.bf16.vlgmr.msrb.gmra.mxu1 %v1153_v8  ;;  %5147 = vmatpush.msra.mxu0 %v5146_v41  ;;  %s5209_s14 = sshll.u32 %s7875_s2, 4  ;;  %s5210_s14 = int_to_ptr.vmem [resolvable:$true] %s5209_s14 }
 0x209   :  { %5106 = vmatmul.bf16.vlgmr.msrb.gmra.mxu2 %v1154_v9 }
 0x20a   :  { %5119 = vmatmul.bf16.vlgmr.msrb.gmra.mxu3 %v1155_v10  ;;  %5148 = vmatpush.msra.mxu0 %v5145_v42 }
 0x20c   :  { %v4899_v15 = vpop.f32.mrf.mxu2  ;;  %v4875_v18 = vpop.f32.mrf.mxu0  ;;  %5149 = vmatpush.msra.mxu0 %v5144_v45 }
 0x20d   :  { %v4900_v16 = vadd.f32 %v4899_v15, %v4887_v14  ;;  %v4912_v17 = vpop.f32.mrf.mxu3  ;;  %v4888_v20 = vpop.f32.mrf.mxu1 }
 0x20e   :  { %5150 = vmatpush.msra.mxu0 %v5143_v46 }
 0x20f   :  { %v4913_v19 = vadd.f32 %v4912_v17, %v4900_v16 }
 0x210   :  { %5151 = vmatpush.msra.mxu0 %v5142_v47 }
 0x212   :  { %5152 = vmatpush.msra.mxu0 %v5141_v48 }
 0x214   :  { %v4901_v21 = vpop.f32.mrf.mxu2  ;;  %5153 = vmatpush.msra.mxu0 %v5140_v50 }
 0x215   :  { %v4914_v22 = vpop.f32.mrf.mxu3  ;;  %v51_v21 = vld [vmem:[#allocation2] sm:$0x1] }
 0x216   :  { %5154 = vmatpush.msra.mxu0 %v5139_v53 }
 0x218   :  { %5155 = vmatpush.msra.mxu0 %v5138_v54 }
 0x21a   :  { %5156 = vmatpush.msra.mxu0 %v5137_v58 }
 0x21c   :  { %5157 = vmatpush.msra.mxu0 %v5136_v61 }
 0x21e   :  { %5158 = vmatpush.msra.mxu0 %v5135_v63 }
 0x220   :  { %5159 = vmatpush.msra.mxu0 %v5134_v0 }
 0x222   :  { %5160 = vmatpush.msra.mxu0 %v5133_v2 }
 0x224   :  { %v4925_v23 = vpop.f32.mrf.mxu0  ;;  %5161 = vmatpush.msra.mxu0 %v5132_v5 }
 0x225   :  { %v4926_v24 = vadd.f32 %v4925_v23, %v4913_v19  ;;  %v4938_v25 = vpop.f32.mrf.mxu1 }
 0x226   :  { %5162 = vmatpush.msra.mxu0 %v5131_v7 }
 0x227   :  { %v4939_v26 = vadd.f32 %v4938_v25, %v4926_v24 }
 0x22c   :  { %v4951_v27 = vpop.f32.mrf.mxu2  ;;  %v4927_v30 = vpop.f32.mrf.mxu0 }
 0x22d   :  { %v4952_v28 = vadd.f32 %v4951_v27, %v4939_v26  ;;  %v4964_v29 = vpop.f32.mrf.mxu3  ;;  %v4940_v32 = vpop.f32.mrf.mxu1  ;;  %v5169_v30 = vlaneseq }
 0x22f   :  { %v4965_v31 = vadd.f32 %v4964_v29, %v4952_v28 }
 0x234   :  { %v4953_v33 = vpop.f32.mrf.mxu2 }
 0x235   :  { %v4966_v34 = vpop.f32.mrf.mxu3 }
 0x244   :  { %v4977_v35 = vpop.f32.mrf.mxu0 }
 0x245   :  { %v4990_v36 = vpop.f32.mrf.mxu1  ;;  %v4978_v56 = vadd.f32 %v4977_v35, %v4965_v31  ;;  %v5170_v31 = vand.u32 127, %v5169_v30 }
 0x247   :  { %v4991_v62 = vadd.f32 %v4990_v36, %v4978_v56 }
 0x24c   :  { %v5003_v37 = vpop.f32.mrf.mxu2  ;;  %v4979_v39 = vpop.f32.mrf.mxu0 }
 0x24d   :  { %v5016_v38 = vpop.f32.mrf.mxu3  ;;  %v4992_v40 = vpop.f32.mrf.mxu1  ;;  %v5004_v1 = vadd.f32 %v5003_v37, %v4991_v62 }
 0x24f   :  { %v5017_v6 = vadd.f32 %v5016_v38, %v5004_v1 }
 0x254   :  { %v5005_v43 = vpop.f32.mrf.mxu2 }
 0x255   :  { %v5018_v44 = vpop.f32.mrf.mxu3 }
 0x264   :  { %v5029_v49 = vpop.f32.mrf.mxu0 }
 0x265   :  { %v5042_v51 = vpop.f32.mrf.mxu1  ;;  %v5030_v8 = vadd.f32 %v5029_v49, %v5017_v6 }
 0x267   :  { %v5043_v9 = vadd.f32 %v5042_v51, %v5030_v8 }
 0x26c   :  { %v5055_v55 = vpop.f32.mrf.mxu2  ;;  %v5031_v59 = vpop.f32.mrf.mxu0 }
 0x26d   :  { %v5068_v57 = vpop.f32.mrf.mxu3  ;;  %v5044_v60 = vpop.f32.mrf.mxu1  ;;  %v5056_v10 = vadd.f32 %v5055_v55, %v5043_v9 }
 0x26f   :  { %v5069_v11 = vadd.f32 %v5068_v57, %v5056_v10 }
 0x274   :  { %v5057_v3 = vpop.f32.mrf.mxu2 }
 0x275   :  { %v5070_v4 = vpop.f32.mrf.mxu3 }
 0x284   :  { %v5081_v12 = vpop.f32.mrf.mxu0 }
 0x285   :  { %v5094_v13 = vpop.f32.mrf.mxu1  ;;  %v5082_v14 = vadd.f32 %v5081_v12, %v5069_v11 }
 0x287   :  { %v5095_v15 = vadd.f32 %v5094_v13, %v5082_v14 }
 0x28c   :  { %v5107_v16 = vpop.f32.mrf.mxu2  ;;  %v5083_v19 = vpop.f32.mrf.mxu0 }
 0x28d   :  { %v5120_v17 = vpop.f32.mrf.mxu3  ;;  %v5108_v18 = vadd.f32 %v5107_v16, %v5095_v15  ;;  %v5096_v20 = vpop.f32.mrf.mxu1 }
 0x28f   :  { %v5121_v22 = vadd.f32 %v5120_v17, %v5108_v18 }
 0x291   :  { %v5124_v23 = vadd.f32 %v5121_v22, %v51_v21 }
 0x293   :  { %5125 = vst [vmem:[#allocation2] sm:$0x1] %v5124_v23 }
 0x294   :  { %v5109_v24 = vpop.f32.mrf.mxu2 }
 0x295   :  { %v5122_v25 = vpop.f32.mrf.mxu3 }
 0x29a   :  { %v5129_v26 = vld [vmem:[#allocation2] sm:$0x1] }
 0x29b   :  { %v5130_v27 = vmax.f32 %v5129_v26, 0.0 }
 0x29d   :  { %5163 = vmatmul.f32.vlgmr.msra.gmra.mxu0 %v5130_v27 }
 0x31a   :  { %v5164_v28 = vpop.f32.mrf.mxu0 }
 0x31b   :  { %5168 = vst.msk [vmem:[#allocation7] sm:$0x1] %vm5167_vm0, %v5164_v28  ;;  %v5171_v29 = vsel %vm5167_vm0, %v5164_v28, -inf }
 0x31c   :  { %5172 = vmax.xlane.f32.xlu0 %v5171_v29  ;;  %5214 = dma.vmem_to_hbm [thread:$0]  %s5210_s14, 16, %s5212_s17, [#allocation8]  }
 0x38f   :  { %v5173_v32 = vpop.xlane.xlu0 %5172 }
 0x390   :  { %vm5174_vm1 = vcmp.ge.f32.partialorder %v5164_v28, %v5173_v32 }
 0x391   :  { %v5175_v33 = vsel %vm5174_vm1, %v5170_v31, 2 }
 0x392   :  { %v5176_v34 = vsel %vm5167_vm0, %v5175_v33, 2147483647 }
 0x393   :  { %v5178_v35 = vshra.s32 %v5176_v34, 16  ;;  %v5177_v37 = vand.u32 65535, %v5176_v34 }
 0x395   :  { %v5180_v36 = vcvt.s32.f32 %v5178_v35  ;;  %v5179_v39 = vcvt.s32.f32 %v5177_v37 }
 0x397   :  { %5181 = vmin.xlane.f32.xlu0 %v5180_v36 }
 0x40a   :  { %v5182_v38 = vpop.xlane.xlu0 %5181 }
 0x40b   :  { %vm5183_vm2 = vcmp.eq.f32.partialorder %v5180_v36, %v5182_v38  ;;  %v5188_v41 = vcvt.f32.s32 %v5182_v38 }
 0x40c   :  { %v5184_v40 = vsel %vm5183_vm2, %v5179_v39, inf }
 0x40d   :  { %5185 = vmin.xlane.f32.xlu1 %v5184_v40  ;;  %v5189_v43 = vshll.u32 %v5188_v41, 16 }
 0x480   :  { %v5186_v42 = vpop.xlane.xlu1 %5185 }
 0x481   :  { %v5187_v44 = vcvt.f32.s32 %v5186_v42 }
 0x483   :  { %v5190_v45 = vadd.s32 %v5189_v43, %v5187_v44 }
 0x485   :  { %5192 = vst.msk [vmem:[#allocation6] sm:$0x1] %vm5191_vm3, %v5190_v45 }
 0x486   :  { %5203 = dma.vmem_to_hbm [thread:$0]  %s5199_s19, 16, %s5201_s1, [#allocation5]  }
 0x487   :  { %7867 = dma.done.wait [#allocation5], 16  }
 0x488   :  { %7868 = vsyncadd [#allocation5], 4294967280 }
 0x489   :  { %7869 = dma.done.wait [#allocation8], 16  }
 0x48a   :  { %7870 = vsyncadd [#allocation8], 4294967280 }
 0x48b   :  { %5223 = vsyncpa [#allocation4], 1 }
 0x48c   :  { %5224 = vsyncpa [#allocation5], 1 }
 0x48d   :  { %5225 = vsyncpa [#allocation8], 1 }

</bundles_post_ra>
